<compile_context>
chip_gen: v5e
topology: v5e:2x2
jax: 0.10.0
libtpu: 0.0.40
codegen_flags: <defaults>
</compile_context>

<pallas_src>
import jax
import jax.numpy as jnp
import numpy as np
from jax import lax
from jax.experimental import pallas as pl
from jax.experimental.pallas import tpu as pltpu

_BT = 16  # batch tile; multiple of 16 keeps every in-kernel slice bf16-tile aligned


# ------------------------------ fused kernel ------------------------------- #

def _net_fused_kernel(x_ref, w1b_ref, b1t_ref, w2b_ref, b2t_ref,
                      wf1_ref, bf1_ref, wf2_ref, bf2_ref, o_ref):
    """BT images per grid step. x_ref: (1, 4, 7*BT, 28); plane r row t*BT+b = image row 4t+r."""
    f32 = jnp.float32
    bf16 = jnp.bfloat16
    bt = o_ref.shape[0]                                   # = BT

    # Cast input planes to bf16 once (MXU operands bf16, accumulate f32).
    xp = [x_ref[0, r].astype(bf16) for r in range(4)]     # each (7*BT, 28)

    # ---- conv1 (1->10, k=5): output-row phase blocks (ho mod 4), M = 6*BT ----
    # o1[q][t*BT+b, pw*128 + j*10 + c] = conv1(x_b)[ho=4t+q, wo=2j+pw, c]  (no bias)
    def conv1_phase(q):
        acc = None
        for di in range(5):
            r = (q + di) % 4
            s = (q + di) // 4
            xs = xp[r][s * bt:(s + 6) * bt, :]            # (6*BT, 28), 16-row aligned
            term = jnp.dot(xs, w1b_ref[di], preferred_element_type=f32)   # (6*BT, 256)
            acc = term if acc is None else acc + term
        return acc

    # 2x2 max-pool + bias + relu: vertical pool = block max, horizontal pool =
    # exact 128-lane vreg half-split.  Dead lanes (zero weight cols, zero bias)
    # stay exactly 0.  Result cast to bf16 (only used as matmul LHS).
    def _pool(blk_a, blk_b, bias_row):
        m = jnp.maximum(blk_a, blk_b)
        m = jnp.maximum(m[:, :128], m[:, 128:])
        return jnp.maximum(m + bias_row, 0.0).astype(bf16)

    # Compute/consume phase pairs back-to-back to bound liveness.
    a1e = _pool(conv1_phase(0), conv1_phase(1), b1t_ref[...])   # (6*BT,128): pooled rows 0,2,..,10
    a1o = _pool(conv1_phase(2), conv1_phase(3), b1t_ref[...])   # (6*BT,128): pooled rows 1,3,..,11

    # ---- conv2 (10->20, k=5): K=128 (full MXU contraction), M = 4*BT ---------
    # (Dropout2d: identity in eval mode.)
    def conv2_phase(p):
        acc = None
        for di in range(5):
            src = a1e if (p + di) % 2 == 0 else a1o
            s = (p + di) // 2
            xs = src[s * bt:(s + 4) * bt, :]              # (4*BT, 128)
            term = jnp.dot(xs, w2b_ref[di], preferred_element_type=f32)   # (4*BT, 256)
            acc = term if acc is None else acc + term
        return acc

    a2 = _pool(conv2_phase(0), conv2_phase(1), b2t_ref[...])    # (4*BT, 128): lanes (v*20+c)

    # ---- fc1 + relu (torch's NCHW flatten handled by host-side W row permutation) ----
    h = None
    for u in range(4):
        term = jnp.dot(a2[u * bt:(u + 1) * bt, :], wf1_ref[u],
                       preferred_element_type=f32)        # (BT, 50)
        h = term if h is None else h + term
    h = jnp.maximum(h + bf1_ref[...], 0.0).astype(bf16)
    # F.dropout: identity in eval mode.

    # ---- fc2 (padded to 128 lanes, dead-lane bias = -1e30) + log_softmax -----
    logits = jnp.dot(h, wf2_ref[...], preferred_element_type=f32) + bf2_ref[...]  # (BT,128)
    mx = jnp.max(logits, axis=-1, keepdims=True)
    shift = logits - mx
    lse = jnp.log(jnp.sum(jnp.exp(shift), axis=-1, keepdims=True))
    o_ref[...] = (shift - lse).astype(o_ref.dtype)        # one unmasked (BT,128) store


# ------------------------------ wrapper (JAX) ------------------------------ #

def net_forward(x_nchw, params):
    """Forward pass of the PyTorch Net (eval mode) on NCHW float32 [B,1,28,28]."""
    B = x_nchw.shape[0]
    G = pl.cdiv(B, _BT)
    Bp = G * _BT

    x2d = x_nchw[:, 0, :, :]                              # (B, 28, 28), cin = 1
    if Bp != B:
        x2d = jnp.pad(x2d, ((0, Bp - B), (0, 0), (0, 0)))
    # Single fused relayout: (Bp,28,28) -> (G, 4, 7*BT, 28) with plane r,
    # row t*BT + b  <->  image (g*BT+b) row 4t+r.
    xg = (x2d.reshape(Bp, 7, 4, 28)
              .transpose(0, 2, 1, 3)                      # (Bp, 4, 7, 28)
              .reshape(G, _BT, 4, 7, 28)
              .transpose(0, 2, 3, 1, 4)                   # (G, 4, 7, BT, 28)
              .reshape(G, 4, 7 * _BT, 28))

    out = pl.pallas_call(
        _net_fused_kernel,
        out_shape=jax.ShapeDtypeStruct((Bp, 128), jnp.float32),
        grid=(G,),
        in_specs=[
            pl.BlockSpec((1, 4, 7 * _BT, 28), lambda g: (g, 0, 0, 0)),   # batched input planes
            pl.BlockSpec((5, 28, 256), lambda g: (0, 0, 0)),             # conv1 banded W (bf16)
            pl.BlockSpec((1, 128), lambda g: (0, 0)),                    # conv1 bias (padded)
            pl.BlockSpec((5, 128, 256), lambda g: (0, 0, 0)),            # conv2 banded W (bf16)
            pl.BlockSpec((1, 128), lambda g: (0, 0)),                    # conv2 bias (padded)
            pl.BlockSpec((4, 128, 50), lambda g: (0, 0, 0)),             # fc1 W (row-permuted, bf16)
            pl.BlockSpec((1, 50), lambda g: (0, 0)),                     # fc1 bias
            pl.BlockSpec((50, 128), lambda g: (0, 0)),                   # fc2 W^T (lane-padded, bf16)
            pl.BlockSpec((1, 128), lambda g: (0, 0)),                    # fc2 bias (-1e30 pad)
        ],
        out_specs=pl.BlockSpec((_BT, 128), lambda g: (g, 0)),
        compiler_params=pltpu.CompilerParams(dimension_semantics=("parallel",)),
    )(xg, params["w1b"], params["b1t"], params["w2b"], params["b2t"],
      params["wf1p"], params["bf1"], params["wf2t"], params["bf2"])
    return out[:B, :10]


# ------------------- host-side weight packing (runs once) ------------------ #

def prepare_params(p):
    """Convert torch-layout weights into the fused-kernel layouts (zero runtime cost)."""
    w1 = np.asarray(p["conv1_w"], np.float32)   # (10, 1, 5, 5)  [cout, cin, kh, kw]
    b1 = np.asarray(p["conv1_b"], np.float32)   # (10,)
    w2 = np.asarray(p["conv2_w"], np.float32)   # (20, 10, 5, 5)
    b2 = np.asarray(p["conv2_b"], np.float32)   # (20,)
    f1 = np.asarray(p["fc1_w"], np.float32)     # (50, 320) [out, in], torch (c,h,w) flatten
    f1b = np.asarray(p["fc1_b"], np.float32)    # (50,)
    f2 = np.asarray(p["fc2_w"], np.float32)     # (10, 50)
    f2b = np.asarray(p["fc2_b"], np.float32)    # (10,)

    # conv1 banded: 28 input lanes -> 256 output lanes, col = pw*128 + j*10 + c
    # (lanes pw*128+120..pw*128+127 are zero padding).
    w1b = np.zeros((5, 28, 256), np.float32)
    for di in range(5):
        for pw in range(2):
            for j in range(12):
                wo = 2 * j + pw
                col = pw * 128 + j * 10
                for dj in range(5):
                    w1b[di, wo + dj, col:col + 10] += w1[:, 0, di, dj]
    b1t = np.zeros((1, 128), np.float32)
    b1t[0, :120] = np.tile(b1, 12)                        # padded lanes stay exactly 0

    # conv2 banded: 128 input lanes (j*10 + cin; rows 120..127 zero) ->
    #               256 output lanes, col = pw*128 + v*20 + cout (80..127 of each half zero).
    w2b = np.zeros((5, 128, 256), np.float32)
    for di in range(5):
        for pw in range(2):
            for v in range(4):
                wo2 = 2 * v + pw
                col = pw * 128 + v * 20
                for dj in range(5):
                    j = wo2 + dj
                    w2b[di, j * 10:(j + 1) * 10, col:col + 20] += w2[:, :, di, dj].T
    b2t = np.zeros((1, 128), np.float32)
    b2t[0, :80] = np.tile(b2, 4)                          # padded lanes stay exactly 0

    # fc1: permute the 320 input rows from torch's (c, h, w) flatten order to the
    # kernel's (u=h, lane = v*20 + c) layout, zero-padded to 128 lanes -> (4, 128, 50).
    wf1p = np.zeros((4, 128, 50), np.float32)
    for u in range(4):
        for v in range(4):
            for c in range(20):
                wf1p[u, v * 20 + c, :] = f1[:, c * 16 + u * 4 + v]

    # fc2 padded to 128 output lanes; dead-lane bias = -1e30 so those lanes
    # vanish in the 128-lane log_softmax (exp underflows to exactly 0).
    wf2t = np.zeros((50, 128), np.float32)
    wf2t[:, :10] = f2.T
    bf2p = np.full((1, 128), -1e30, np.float32)
    bf2p[0, :10] = f2b

    return dict(
        w1b=jnp.asarray(w1b, jnp.bfloat16),
        b1t=jnp.asarray(b1t),
        w2b=jnp.asarray(w2b, jnp.bfloat16),
        b2t=jnp.asarray(b2t),
        wf1p=jnp.asarray(wf1p, jnp.bfloat16),
        bf1=jnp.asarray(f1b.reshape(1, 50)),
        wf2t=jnp.asarray(wf2t, jnp.bfloat16),
        bf2=jnp.asarray(bf2p),
    )


# --------------------------- pure-JAX reference ----------------------------- #

def reference_forward(x_nchw, p):
    dn = ("NCHW", "OIHW", "NCHW")
    y = lax.conv_general_dilated(x_nchw, p["conv1_w"], (1, 1), "VALID",
                                 dimension_numbers=dn)
    y = y + p["conv1_b"][None, :, None, None]
    y = lax.reduce_window(y, -jnp.inf, lax.max, (1, 1, 2, 2), (1, 1, 2, 2), "VALID")
    y = jnp.maximum(y, 0.0)
    y = lax.conv_general_dilated(y, p["conv2_w"], (1, 1), "VALID",
                                 dimension_numbers=dn)
    y = y + p["conv2_b"][None, :, None, None]
    y = lax.reduce_window(y, -jnp.inf, lax.max, (1, 1, 2, 2), (1, 1, 2, 2), "VALID")
    y = jnp.maximum(y, 0.0)
    flat = y.reshape(y.shape[0], -1)                      # torch x.view(-1, 320)
    h = jnp.maximum(flat @ p["fc1_w"].T + p["fc1_b"], 0.0)
    logits = h @ p["fc2_w"].T + p["fc2_b"]
    return jax.nn.log_softmax(logits, axis=-1)


# ---------------------------------- main ------------------------------------ #

if __name__ == "__main__":
    key = jax.random.PRNGKey(0)
    kx, *kp = jax.random.split(key, 9)
    B = 32                                                # 2 parallel grid steps at BT=16
    x = jax.random.normal(kx, (B, 1, 28, 28), dtype=jnp.float32)   # NCHW, MNIST-shaped
    scale = 0.1
    torch_params = dict(
        conv1_w=scale * jax.random.normal(kp[0], (10, 1, 5, 5), jnp.float32),
        conv1_b=scale * jax.random.normal(kp[1], (10,), jnp.float32),
        conv2_w=scale * jax.random.normal(kp[2], (20, 10, 5, 5), jnp.float32),
        conv2_b=scale * jax.random.normal(kp[3], (20,), jnp.float32),
        fc1_w=scale * jax.random.normal(kp[4], (50, 320), jnp.float32),
        fc1_b=scale * jax.random.normal(kp[5], (50,), jnp.float32),
        fc2_w=scale * jax.random.normal(kp[6], (10, 50), jnp.float32),
        fc2_b=scale * jax.random.normal(kp[7], (10,), jnp.float32),
    )
    params = prepare_params(torch_params)

    out = jax.jit(net_forward)(x, params)
    out = jax.block_until_ready(out)
    assert out.shape == (B, 10) and out.dtype == jnp.float32

    ref = jax.block_until_ready(reference_forward(x, torch_params))
    # bf16 MXU operands (f32 accumulate/epilogue): tolerance loosened vs. the f32 run.
    np.testing.assert_allclose(np.asarray(out), np.asarray(ref), atol=5e-2, rtol=5e-2)
    print("KERNEL_OK")
</pallas_src>

<mosaic_0001>
module attributes {stable_mosaic.version = 11 : i64} {
  func.func @_net_fused_kernel(%arg0: i32, %arg1: memref<1x4x112x28xf32, #tpu.memory_space<vmem>>, %arg2: memref<5x28x256xbf16, #tpu.memory_space<vmem>>, %arg3: memref<1x128xf32, #tpu.memory_space<vmem>>, %arg4: memref<5x128x256xbf16, #tpu.memory_space<vmem>>, %arg5: memref<1x128xf32, #tpu.memory_space<vmem>>, %arg6: memref<4x128x50xbf16, #tpu.memory_space<vmem>>, %arg7: memref<1x50xf32, #tpu.memory_space<vmem>>, %arg8: memref<50x128xbf16, #tpu.memory_space<vmem>>, %arg9: memref<1x128xf32, #tpu.memory_space<vmem>>, %arg10: memref<16x128xf32, #tpu.memory_space<vmem>>) attributes {dimension_semantics = [#tpu.dimension_semantics<parallel>], iteration_bounds = array<i64: 2>, scalar_prefetch = 0 : i64, scratch_operands = 0 : i64, tpu.core_type = #tpu.core_type<tc>, window_params = [{transform_indices = @transform_0, window_bounds = array<i64: 1, 4, 112, 28>}, {pipeline_mode = #tpu.pipeline_mode<synchronous>, transform_indices = @transform_1, window_bounds = array<i64: 5, 28, 256>}, {pipeline_mode = #tpu.pipeline_mode<synchronous>, transform_indices = @transform_2, window_bounds = array<i64: 1, 128>}, {pipeline_mode = #tpu.pipeline_mode<synchronous>, transform_indices = @transform_3, window_bounds = array<i64: 5, 128, 256>}, {pipeline_mode = #tpu.pipeline_mode<synchronous>, transform_indices = @transform_4, window_bounds = array<i64: 1, 128>}, {pipeline_mode = #tpu.pipeline_mode<synchronous>, transform_indices = @transform_5, window_bounds = array<i64: 4, 128, 50>}, {pipeline_mode = #tpu.pipeline_mode<synchronous>, transform_indices = @transform_6, window_bounds = array<i64: 1, 50>}, {pipeline_mode = #tpu.pipeline_mode<synchronous>, transform_indices = @transform_7, window_bounds = array<i64: 50, 128>}, {pipeline_mode = #tpu.pipeline_mode<synchronous>, transform_indices = @transform_8, window_bounds = array<i64: 1, 128>}, {transform_indices = @transform_9, window_bounds = array<i64: 16, 128>}]} {
    %c0 = arith.constant 0 : index
    %c0_0 = arith.constant 0 : index
    %c0_1 = arith.constant 0 : index
    %c0_2 = arith.constant 0 : index
    %0 = vector.load %arg1[%c0, %c0_0, %c0_1, %c0_2] : memref<1x4x112x28xf32, #tpu.memory_space<vmem>>, vector<1x1x112x28xf32>
    %1 = vector.shape_cast %0 : vector<1x1x112x28xf32> to vector<112x28xf32>
    %2 = arith.truncf %1 : vector<112x28xf32> to vector<112x28xbf16>
    %c0_3 = arith.constant 0 : index
    %c1 = arith.constant 1 : index
    %c0_4 = arith.constant 0 : index
    %c0_5 = arith.constant 0 : index
    %3 = vector.load %arg1[%c0_3, %c1, %c0_4, %c0_5] : memref<1x4x112x28xf32, #tpu.memory_space<vmem>>, vector<1x1x112x28xf32>
    %4 = vector.shape_cast %3 : vector<1x1x112x28xf32> to vector<112x28xf32>
    %5 = arith.truncf %4 : vector<112x28xf32> to vector<112x28xbf16>
    %c0_6 = arith.constant 0 : index
    %c2 = arith.constant 2 : index
    %c0_7 = arith.constant 0 : index
    %c0_8 = arith.constant 0 : index
    %6 = vector.load %arg1[%c0_6, %c2, %c0_7, %c0_8] : memref<1x4x112x28xf32, #tpu.memory_space<vmem>>, vector<1x1x112x28xf32>
    %7 = vector.shape_cast %6 : vector<1x1x112x28xf32> to vector<112x28xf32>
    %8 = arith.truncf %7 : vector<112x28xf32> to vector<112x28xbf16>
    %c0_9 = arith.constant 0 : index
    %c3 = arith.constant 3 : index
    %c0_10 = arith.constant 0 : index
    %c0_11 = arith.constant 0 : index
    %9 = vector.load %arg1[%c0_9, %c3, %c0_10, %c0_11] : memref<1x4x112x28xf32, #tpu.memory_space<vmem>>, vector<1x1x112x28xf32>
    %10 = vector.shape_cast %9 : vector<1x1x112x28xf32> to vector<112x28xf32>
    %11 = arith.truncf %10 : vector<112x28xf32> to vector<112x28xbf16>
    %12 = vector.extract_strided_slice %2 {offsets = [0, 0], sizes = [96, 28], strides = [1, 1]} : vector<112x28xbf16> to vector<96x28xbf16>
    %c0_12 = arith.constant 0 : index
    %c0_13 = arith.constant 0 : index
    %c0_14 = arith.constant 0 : index
    %13 = vector.load %arg2[%c0_12, %c0_13, %c0_14] : memref<5x28x256xbf16, #tpu.memory_space<vmem>>, vector<1x28x256xbf16>
    %14 = vector.shape_cast %13 : vector<1x28x256xbf16> to vector<28x256xbf16>
    %cst = arith.constant dense<0.000000e+00> : vector<96x256xf32>
    %15 = tpu.matmul %12, %14, %cst {dimension_numbers = #tpu.dot_dimension_numbers<[1], [0], [0], [1], [0, 0, 1, 1], [], []>} : vector<96x28xbf16>, vector<28x256xbf16>, vector<96x256xf32> -> vector<96x256xf32>
    %16 = vector.extract_strided_slice %5 {offsets = [0, 0], sizes = [96, 28], strides = [1, 1]} : vector<112x28xbf16> to vector<96x28xbf16>
    %c1_15 = arith.constant 1 : index
    %c0_16 = arith.constant 0 : index
    %c0_17 = arith.constant 0 : index
    %17 = vector.load %arg2[%c1_15, %c0_16, %c0_17] : memref<5x28x256xbf16, #tpu.memory_space<vmem>>, vector<1x28x256xbf16>
    %18 = vector.shape_cast %17 : vector<1x28x256xbf16> to vector<28x256xbf16>
    %cst_18 = arith.constant dense<0.000000e+00> : vector<96x256xf32>
    %19 = tpu.matmul %16, %18, %cst_18 {dimension_numbers = #tpu.dot_dimension_numbers<[1], [0], [0], [1], [0, 0, 1, 1], [], []>} : vector<96x28xbf16>, vector<28x256xbf16>, vector<96x256xf32> -> vector<96x256xf32>
    %20 = arith.addf %15, %19 : vector<96x256xf32>
    %21 = vector.extract_strided_slice %8 {offsets = [0, 0], sizes = [96, 28], strides = [1, 1]} : vector<112x28xbf16> to vector<96x28xbf16>
    %c2_19 = arith.constant 2 : index
    %c0_20 = arith.constant 0 : index
    %c0_21 = arith.constant 0 : index
    %22 = vector.load %arg2[%c2_19, %c0_20, %c0_21] : memref<5x28x256xbf16, #tpu.memory_space<vmem>>, vector<1x28x256xbf16>
    %23 = vector.shape_cast %22 : vector<1x28x256xbf16> to vector<28x256xbf16>
    %cst_22 = arith.constant dense<0.000000e+00> : vector<96x256xf32>
    %24 = tpu.matmul %21, %23, %cst_22 {dimension_numbers = #tpu.dot_dimension_numbers<[1], [0], [0], [1], [0, 0, 1, 1], [], []>} : vector<96x28xbf16>, vector<28x256xbf16>, vector<96x256xf32> -> vector<96x256xf32>
    %25 = arith.addf %20, %24 : vector<96x256xf32>
    %26 = vector.extract_strided_slice %11 {offsets = [0, 0], sizes = [96, 28], strides = [1, 1]} : vector<112x28xbf16> to vector<96x28xbf16>
    %c3_23 = arith.constant 3 : index
    %c0_24 = arith.constant 0 : index
    %c0_25 = arith.constant 0 : index
    %27 = vector.load %arg2[%c3_23, %c0_24, %c0_25] : memref<5x28x256xbf16, #tpu.memory_space<vmem>>, vector<1x28x256xbf16>
    %28 = vector.shape_cast %27 : vector<1x28x256xbf16> to vector<28x256xbf16>
    %cst_26 = arith.constant dense<0.000000e+00> : vector<96x256xf32>
    %29 = tpu.matmul %26, %28, %cst_26 {dimension_numbers = #tpu.dot_dimension_numbers<[1], [0], [0], [1], [0, 0, 1, 1], [], []>} : vector<96x28xbf16>, vector<28x256xbf16>, vector<96x256xf32> -> vector<96x256xf32>
    %30 = arith.addf %25, %29 : vector<96x256xf32>
    %31 = vector.extract_strided_slice %2 {offsets = [16, 0], sizes = [96, 28], strides = [1, 1]} : vector<112x28xbf16> to vector<96x28xbf16>
    %c4 = arith.constant 4 : index
    %c0_27 = arith.constant 0 : index
    %c0_28 = arith.constant 0 : index
    %32 = vector.load %arg2[%c4, %c0_27, %c0_28] : memref<5x28x256xbf16, #tpu.memory_space<vmem>>, vector<1x28x256xbf16>
    %33 = vector.shape_cast %32 : vector<1x28x256xbf16> to vector<28x256xbf16>
    %cst_29 = arith.constant dense<0.000000e+00> : vector<96x256xf32>
    %34 = tpu.matmul %31, %33, %cst_29 {dimension_numbers = #tpu.dot_dimension_numbers<[1], [0], [0], [1], [0, 0, 1, 1], [], []>} : vector<96x28xbf16>, vector<28x256xbf16>, vector<96x256xf32> -> vector<96x256xf32>
    %35 = arith.addf %30, %34 : vector<96x256xf32>
    %36 = vector.extract_strided_slice %5 {offsets = [0, 0], sizes = [96, 28], strides = [1, 1]} : vector<112x28xbf16> to vector<96x28xbf16>
    %c0_30 = arith.constant 0 : index
    %c0_31 = arith.constant 0 : index
    %c0_32 = arith.constant 0 : index
    %37 = vector.load %arg2[%c0_30, %c0_31, %c0_32] : memref<5x28x256xbf16, #tpu.memory_space<vmem>>, vector<1x28x256xbf16>
    %38 = vector.shape_cast %37 : vector<1x28x256xbf16> to vector<28x256xbf16>
    %cst_33 = arith.constant dense<0.000000e+00> : vector<96x256xf32>
    %39 = tpu.matmul %36, %38, %cst_33 {dimension_numbers = #tpu.dot_dimension_numbers<[1], [0], [0], [1], [0, 0, 1, 1], [], []>} : vector<96x28xbf16>, vector<28x256xbf16>, vector<96x256xf32> -> vector<96x256xf32>
    %40 = vector.extract_strided_slice %8 {offsets = [0, 0], sizes = [96, 28], strides = [1, 1]} : vector<112x28xbf16> to vector<96x28xbf16>
    %c1_34 = arith.constant 1 : index
    %c0_35 = arith.constant 0 : index
    %c0_36 = arith.constant 0 : index
    %41 = vector.load %arg2[%c1_34, %c0_35, %c0_36] : memref<5x28x256xbf16, #tpu.memory_space<vmem>>, vector<1x28x256xbf16>
    %42 = vector.shape_cast %41 : vector<1x28x256xbf16> to vector<28x256xbf16>
    %cst_37 = arith.constant dense<0.000000e+00> : vector<96x256xf32>
    %43 = tpu.matmul %40, %42, %cst_37 {dimension_numbers = #tpu.dot_dimension_numbers<[1], [0], [0], [1], [0, 0, 1, 1], [], []>} : vector<96x28xbf16>, vector<28x256xbf16>, vector<96x256xf32> -> vector<96x256xf32>
    %44 = arith.addf %39, %43 : vector<96x256xf32>
    %45 = vector.extract_strided_slice %11 {offsets = [0, 0], sizes = [96, 28], strides = [1, 1]} : vector<112x28xbf16> to vector<96x28xbf16>
    %c2_38 = arith.constant 2 : index
    %c0_39 = arith.constant 0 : index
    %c0_40 = arith.constant 0 : index
    %46 = vector.load %arg2[%c2_38, %c0_39, %c0_40] : memref<5x28x256xbf16, #tpu.memory_space<vmem>>, vector<1x28x256xbf16>
    %47 = vector.shape_cast %46 : vector<1x28x256xbf16> to vector<28x256xbf16>
    %cst_41 = arith.constant dense<0.000000e+00> : vector<96x256xf32>
    %48 = tpu.matmul %45, %47, %cst_41 {dimension_numbers = #tpu.dot_dimension_numbers<[1], [0], [0], [1], [0, 0, 1, 1], [], []>} : vector<96x28xbf16>, vector<28x256xbf16>, vector<96x256xf32> -> vector<96x256xf32>
    %49 = arith.addf %44, %48 : vector<96x256xf32>
    %50 = vector.extract_strided_slice %2 {offsets = [16, 0], sizes = [96, 28], strides = [1, 1]} : vector<112x28xbf16> to vector<96x28xbf16>
    %c3_42 = arith.constant 3 : index
    %c0_43 = arith.constant 0 : index
    %c0_44 = arith.constant 0 : index
    %51 = vector.load %arg2[%c3_42, %c0_43, %c0_44] : memref<5x28x256xbf16, #tpu.memory_space<vmem>>, vector<1x28x256xbf16>
    %52 = vector.shape_cast %51 : vector<1x28x256xbf16> to vector<28x256xbf16>
    %cst_45 = arith.constant dense<0.000000e+00> : vector<96x256xf32>
    %53 = tpu.matmul %50, %52, %cst_45 {dimension_numbers = #tpu.dot_dimension_numbers<[1], [0], [0], [1], [0, 0, 1, 1], [], []>} : vector<96x28xbf16>, vector<28x256xbf16>, vector<96x256xf32> -> vector<96x256xf32>
    %54 = arith.addf %49, %53 : vector<96x256xf32>
    %55 = vector.extract_strided_slice %5 {offsets = [16, 0], sizes = [96, 28], strides = [1, 1]} : vector<112x28xbf16> to vector<96x28xbf16>
    %c4_46 = arith.constant 4 : index
    %c0_47 = arith.constant 0 : index
    %c0_48 = arith.constant 0 : index
    %56 = vector.load %arg2[%c4_46, %c0_47, %c0_48] : memref<5x28x256xbf16, #tpu.memory_space<vmem>>, vector<1x28x256xbf16>
    %57 = vector.shape_cast %56 : vector<1x28x256xbf16> to vector<28x256xbf16>
    %cst_49 = arith.constant dense<0.000000e+00> : vector<96x256xf32>
    %58 = tpu.matmul %55, %57, %cst_49 {dimension_numbers = #tpu.dot_dimension_numbers<[1], [0], [0], [1], [0, 0, 1, 1], [], []>} : vector<96x28xbf16>, vector<28x256xbf16>, vector<96x256xf32> -> vector<96x256xf32>
    %59 = arith.addf %54, %58 : vector<96x256xf32>
    %c0_50 = arith.constant 0 : index
    %c0_51 = arith.constant 0 : index
    %60 = vector.load %arg3[%c0_50, %c0_51] : memref<1x128xf32, #tpu.memory_space<vmem>>, vector<1x128xf32>
    %61 = arith.maximumf %35, %59 : vector<96x256xf32>
    %62 = vector.extract_strided_slice %61 {offsets = [0, 0], sizes = [96, 128], strides = [1, 1]} : vector<96x256xf32> to vector<96x128xf32>
    %63 = vector.extract_strided_slice %61 {offsets = [0, 128], sizes = [96, 128], strides = [1, 1]} : vector<96x256xf32> to vector<96x128xf32>
    %64 = arith.maximumf %62, %63 : vector<96x128xf32>
    %65 = vector.broadcast %60 : vector<1x128xf32> to vector<96x128xf32>
    %66 = arith.addf %64, %65 : vector<96x128xf32>
    %cst_52 = arith.constant 0.000000e+00 : f32
    %67 = vector.broadcast %cst_52 : f32 to vector<96x128xf32>
    %68 = arith.maximumf %66, %67 : vector<96x128xf32>
    %69 = arith.truncf %68 : vector<96x128xf32> to vector<96x128xbf16>
    %70 = vector.extract_strided_slice %8 {offsets = [0, 0], sizes = [96, 28], strides = [1, 1]} : vector<112x28xbf16> to vector<96x28xbf16>
    %c0_53 = arith.constant 0 : index
    %c0_54 = arith.constant 0 : index
    %c0_55 = arith.constant 0 : index
    %71 = vector.load %arg2[%c0_53, %c0_54, %c0_55] : memref<5x28x256xbf16, #tpu.memory_space<vmem>>, vector<1x28x256xbf16>
    %72 = vector.shape_cast %71 : vector<1x28x256xbf16> to vector<28x256xbf16>
    %cst_56 = arith.constant dense<0.000000e+00> : vector<96x256xf32>
    %73 = tpu.matmul %70, %72, %cst_56 {dimension_numbers = #tpu.dot_dimension_numbers<[1], [0], [0], [1], [0, 0, 1, 1], [], []>} : vector<96x28xbf16>, vector<28x256xbf16>, vector<96x256xf32> -> vector<96x256xf32>
    %74 = vector.extract_strided_slice %11 {offsets = [0, 0], sizes = [96, 28], strides = [1, 1]} : vector<112x28xbf16> to vector<96x28xbf16>
    %c1_57 = arith.constant 1 : index
    %c0_58 = arith.constant 0 : index
    %c0_59 = arith.constant 0 : index
    %75 = vector.load %arg2[%c1_57, %c0_58, %c0_59] : memref<5x28x256xbf16, #tpu.memory_space<vmem>>, vector<1x28x256xbf16>
    %76 = vector.shape_cast %75 : vector<1x28x256xbf16> to vector<28x256xbf16>
    %cst_60 = arith.constant dense<0.000000e+00> : vector<96x256xf32>
    %77 = tpu.matmul %74, %76, %cst_60 {dimension_numbers = #tpu.dot_dimension_numbers<[1], [0], [0], [1], [0, 0, 1, 1], [], []>} : vector<96x28xbf16>, vector<28x256xbf16>, vector<96x256xf32> -> vector<96x256xf32>
    %78 = arith.addf %73, %77 : vector<96x256xf32>
    %79 = vector.extract_strided_slice %2 {offsets = [16, 0], sizes = [96, 28], strides = [1, 1]} : vector<112x28xbf16> to vector<96x28xbf16>
    %c2_61 = arith.constant 2 : index
    %c0_62 = arith.constant 0 : index
    %c0_63 = arith.constant 0 : index
    %80 = vector.load %arg2[%c2_61, %c0_62, %c0_63] : memref<5x28x256xbf16, #tpu.memory_space<vmem>>, vector<1x28x256xbf16>
    %81 = vector.shape_cast %80 : vector<1x28x256xbf16> to vector<28x256xbf16>
    %cst_64 = arith.constant dense<0.000000e+00> : vector<96x256xf32>
    %82 = tpu.matmul %79, %81, %cst_64 {dimension_numbers = #tpu.dot_dimension_numbers<[1], [0], [0], [1], [0, 0, 1, 1], [], []>} : vector<96x28xbf16>, vector<28x256xbf16>, vector<96x256xf32> -> vector<96x256xf32>
    %83 = arith.addf %78, %82 : vector<96x256xf32>
    %84 = vector.extract_strided_slice %5 {offsets = [16, 0], sizes = [96, 28], strides = [1, 1]} : vector<112x28xbf16> to vector<96x28xbf16>
    %c3_65 = arith.constant 3 : index
    %c0_66 = arith.constant 0 : index
    %c0_67 = arith.constant 0 : index
    %85 = vector.load %arg2[%c3_65, %c0_66, %c0_67] : memref<5x28x256xbf16, #tpu.memory_space<vmem>>, vector<1x28x256xbf16>
    %86 = vector.shape_cast %85 : vector<1x28x256xbf16> to vector<28x256xbf16>
    %cst_68 = arith.constant dense<0.000000e+00> : vector<96x256xf32>
    %87 = tpu.matmul %84, %86, %cst_68 {dimension_numbers = #tpu.dot_dimension_numbers<[1], [0], [0], [1], [0, 0, 1, 1], [], []>} : vector<96x28xbf16>, vector<28x256xbf16>, vector<96x256xf32> -> vector<96x256xf32>
    %88 = arith.addf %83, %87 : vector<96x256xf32>
    %89 = vector.extract_strided_slice %8 {offsets = [16, 0], sizes = [96, 28], strides = [1, 1]} : vector<112x28xbf16> to vector<96x28xbf16>
    %c4_69 = arith.constant 4 : index
    %c0_70 = arith.constant 0 : index
    %c0_71 = arith.constant 0 : index
    %90 = vector.load %arg2[%c4_69, %c0_70, %c0_71] : memref<5x28x256xbf16, #tpu.memory_space<vmem>>, vector<1x28x256xbf16>
    %91 = vector.shape_cast %90 : vector<1x28x256xbf16> to vector<28x256xbf16>
    %cst_72 = arith.constant dense<0.000000e+00> : vector<96x256xf32>
    %92 = tpu.matmul %89, %91, %cst_72 {dimension_numbers = #tpu.dot_dimension_numbers<[1], [0], [0], [1], [0, 0, 1, 1], [], []>} : vector<96x28xbf16>, vector<28x256xbf16>, vector<96x256xf32> -> vector<96x256xf32>
    %93 = arith.addf %88, %92 : vector<96x256xf32>
    %94 = vector.extract_strided_slice %11 {offsets = [0, 0], sizes = [96, 28], strides = [1, 1]} : vector<112x28xbf16> to vector<96x28xbf16>
    %c0_73 = arith.constant 0 : index
    %c0_74 = arith.constant 0 : index
    %c0_75 = arith.constant 0 : index
    %95 = vector.load %arg2[%c0_73, %c0_74, %c0_75] : memref<5x28x256xbf16, #tpu.memory_space<vmem>>, vector<1x28x256xbf16>
    %96 = vector.shape_cast %95 : vector<1x28x256xbf16> to vector<28x256xbf16>
    %cst_76 = arith.constant dense<0.000000e+00> : vector<96x256xf32>
    %97 = tpu.matmul %94, %96, %cst_76 {dimension_numbers = #tpu.dot_dimension_numbers<[1], [0], [0], [1], [0, 0, 1, 1], [], []>} : vector<96x28xbf16>, vector<28x256xbf16>, vector<96x256xf32> -> vector<96x256xf32>
    %98 = vector.extract_strided_slice %2 {offsets = [16, 0], sizes = [96, 28], strides = [1, 1]} : vector<112x28xbf16> to vector<96x28xbf16>
    %c1_77 = arith.constant 1 : index
    %c0_78 = arith.constant 0 : index
    %c0_79 = arith.constant 0 : index
    %99 = vector.load %arg2[%c1_77, %c0_78, %c0_79] : memref<5x28x256xbf16, #tpu.memory_space<vmem>>, vector<1x28x256xbf16>
    %100 = vector.shape_cast %99 : vector<1x28x256xbf16> to vector<28x256xbf16>
    %cst_80 = arith.constant dense<0.000000e+00> : vector<96x256xf32>
    %101 = tpu.matmul %98, %100, %cst_80 {dimension_numbers = #tpu.dot_dimension_numbers<[1], [0], [0], [1], [0, 0, 1, 1], [], []>} : vector<96x28xbf16>, vector<28x256xbf16>, vector<96x256xf32> -> vector<96x256xf32>
    %102 = arith.addf %97, %101 : vector<96x256xf32>
    %103 = vector.extract_strided_slice %5 {offsets = [16, 0], sizes = [96, 28], strides = [1, 1]} : vector<112x28xbf16> to vector<96x28xbf16>
    %c2_81 = arith.constant 2 : index
    %c0_82 = arith.constant 0 : index
    %c0_83 = arith.constant 0 : index
    %104 = vector.load %arg2[%c2_81, %c0_82, %c0_83] : memref<5x28x256xbf16, #tpu.memory_space<vmem>>, vector<1x28x256xbf16>
    %105 = vector.shape_cast %104 : vector<1x28x256xbf16> to vector<28x256xbf16>
    %cst_84 = arith.constant dense<0.000000e+00> : vector<96x256xf32>
    %106 = tpu.matmul %103, %105, %cst_84 {dimension_numbers = #tpu.dot_dimension_numbers<[1], [0], [0], [1], [0, 0, 1, 1], [], []>} : vector<96x28xbf16>, vector<28x256xbf16>, vector<96x256xf32> -> vector<96x256xf32>
    %107 = arith.addf %102, %106 : vector<96x256xf32>
    %108 = vector.extract_strided_slice %8 {offsets = [16, 0], sizes = [96, 28], strides = [1, 1]} : vector<112x28xbf16> to vector<96x28xbf16>
    %c3_85 = arith.constant 3 : index
    %c0_86 = arith.constant 0 : index
    %c0_87 = arith.constant 0 : index
    %109 = vector.load %arg2[%c3_85, %c0_86, %c0_87] : memref<5x28x256xbf16, #tpu.memory_space<vmem>>, vector<1x28x256xbf16>
    %110 = vector.shape_cast %109 : vector<1x28x256xbf16> to vector<28x256xbf16>
    %cst_88 = arith.constant dense<0.000000e+00> : vector<96x256xf32>
    %111 = tpu.matmul %108, %110, %cst_88 {dimension_numbers = #tpu.dot_dimension_numbers<[1], [0], [0], [1], [0, 0, 1, 1], [], []>} : vector<96x28xbf16>, vector<28x256xbf16>, vector<96x256xf32> -> vector<96x256xf32>
    %112 = arith.addf %107, %111 : vector<96x256xf32>
    %113 = vector.extract_strided_slice %11 {offsets = [16, 0], sizes = [96, 28], strides = [1, 1]} : vector<112x28xbf16> to vector<96x28xbf16>
    %c4_89 = arith.constant 4 : index
    %c0_90 = arith.constant 0 : index
    %c0_91 = arith.constant 0 : index
    %114 = vector.load %arg2[%c4_89, %c0_90, %c0_91] : memref<5x28x256xbf16, #tpu.memory_space<vmem>>, vector<1x28x256xbf16>
    %115 = vector.shape_cast %114 : vector<1x28x256xbf16> to vector<28x256xbf16>
    %cst_92 = arith.constant dense<0.000000e+00> : vector<96x256xf32>
    %116 = tpu.matmul %113, %115, %cst_92 {dimension_numbers = #tpu.dot_dimension_numbers<[1], [0], [0], [1], [0, 0, 1, 1], [], []>} : vector<96x28xbf16>, vector<28x256xbf16>, vector<96x256xf32> -> vector<96x256xf32>
    %117 = arith.addf %112, %116 : vector<96x256xf32>
    %c0_93 = arith.constant 0 : index
    %c0_94 = arith.constant 0 : index
    %118 = vector.load %arg3[%c0_93, %c0_94] : memref<1x128xf32, #tpu.memory_space<vmem>>, vector<1x128xf32>
    %119 = arith.maximumf %93, %117 : vector<96x256xf32>
    %120 = vector.extract_strided_slice %119 {offsets = [0, 0], sizes = [96, 128], strides = [1, 1]} : vector<96x256xf32> to vector<96x128xf32>
    %121 = vector.extract_strided_slice %119 {offsets = [0, 128], sizes = [96, 128], strides = [1, 1]} : vector<96x256xf32> to vector<96x128xf32>
    %122 = arith.maximumf %120, %121 : vector<96x128xf32>
    %123 = vector.broadcast %118 : vector<1x128xf32> to vector<96x128xf32>
    %124 = arith.addf %122, %123 : vector<96x128xf32>
    %cst_95 = arith.constant 0.000000e+00 : f32
    %125 = vector.broadcast %cst_95 : f32 to vector<96x128xf32>
    %126 = arith.maximumf %124, %125 : vector<96x128xf32>
    %127 = arith.truncf %126 : vector<96x128xf32> to vector<96x128xbf16>
    %128 = vector.extract_strided_slice %69 {offsets = [0, 0], sizes = [64, 128], strides = [1, 1]} : vector<96x128xbf16> to vector<64x128xbf16>
    %c0_96 = arith.constant 0 : index
    %c0_97 = arith.constant 0 : index
    %c0_98 = arith.constant 0 : index
    %129 = vector.load %arg4[%c0_96, %c0_97, %c0_98] : memref<5x128x256xbf16, #tpu.memory_space<vmem>>, vector<1x128x256xbf16>
    %130 = vector.shape_cast %129 : vector<1x128x256xbf16> to vector<128x256xbf16>
    %cst_99 = arith.constant dense<0.000000e+00> : vector<64x256xf32>
    %131 = tpu.matmul %128, %130, %cst_99 {dimension_numbers = #tpu.dot_dimension_numbers<[1], [0], [0], [1], [0, 0, 1, 1], [], []>} : vector<64x128xbf16>, vector<128x256xbf16>, vector<64x256xf32> -> vector<64x256xf32>
    %132 = vector.extract_strided_slice %127 {offsets = [0, 0], sizes = [64, 128], strides = [1, 1]} : vector<96x128xbf16> to vector<64x128xbf16>
    %c1_100 = arith.constant 1 : index
    %c0_101 = arith.constant 0 : index
    %c0_102 = arith.constant 0 : index
    %133 = vector.load %arg4[%c1_100, %c0_101, %c0_102] : memref<5x128x256xbf16, #tpu.memory_space<vmem>>, vector<1x128x256xbf16>
    %134 = vector.shape_cast %133 : vector<1x128x256xbf16> to vector<128x256xbf16>
    %cst_103 = arith.constant dense<0.000000e+00> : vector<64x256xf32>
    %135 = tpu.matmul %132, %134, %cst_103 {dimension_numbers = #tpu.dot_dimension_numbers<[1], [0], [0], [1], [0, 0, 1, 1], [], []>} : vector<64x128xbf16>, vector<128x256xbf16>, vector<64x256xf32> -> vector<64x256xf32>
    %136 = arith.addf %131, %135 : vector<64x256xf32>
    %137 = vector.extract_strided_slice %69 {offsets = [16, 0], sizes = [64, 128], strides = [1, 1]} : vector<96x128xbf16> to vector<64x128xbf16>
    %c2_104 = arith.constant 2 : index
    %c0_105 = arith.constant 0 : index
    %c0_106 = arith.constant 0 : index
    %138 = vector.load %arg4[%c2_104, %c0_105, %c0_106] : memref<5x128x256xbf16, #tpu.memory_space<vmem>>, vector<1x128x256xbf16>
    %139 = vector.shape_cast %138 : vector<1x128x256xbf16> to vector<128x256xbf16>
    %cst_107 = arith.constant dense<0.000000e+00> : vector<64x256xf32>
    %140 = tpu.matmul %137, %139, %cst_107 {dimension_numbers = #tpu.dot_dimension_numbers<[1], [0], [0], [1], [0, 0, 1, 1], [], []>} : vector<64x128xbf16>, vector<128x256xbf16>, vector<64x256xf32> -> vector<64x256xf32>
    %141 = arith.addf %136, %140 : vector<64x256xf32>
    %142 = vector.extract_strided_slice %127 {offsets = [16, 0], sizes = [64, 128], strides = [1, 1]} : vector<96x128xbf16> to vector<64x128xbf16>
    %c3_108 = arith.constant 3 : index
    %c0_109 = arith.constant 0 : index
    %c0_110 = arith.constant 0 : index
    %143 = vector.load %arg4[%c3_108, %c0_109, %c0_110] : memref<5x128x256xbf16, #tpu.memory_space<vmem>>, vector<1x128x256xbf16>
    %144 = vector.shape_cast %143 : vector<1x128x256xbf16> to vector<128x256xbf16>
    %cst_111 = arith.constant dense<0.000000e+00> : vector<64x256xf32>
    %145 = tpu.matmul %142, %144, %cst_111 {dimension_numbers = #tpu.dot_dimension_numbers<[1], [0], [0], [1], [0, 0, 1, 1], [], []>} : vector<64x128xbf16>, vector<128x256xbf16>, vector<64x256xf32> -> vector<64x256xf32>
    %146 = arith.addf %141, %145 : vector<64x256xf32>
    %147 = vector.extract_strided_slice %69 {offsets = [32, 0], sizes = [64, 128], strides = [1, 1]} : vector<96x128xbf16> to vector<64x128xbf16>
    %c4_112 = arith.constant 4 : index
    %c0_113 = arith.constant 0 : index
    %c0_114 = arith.constant 0 : index
    %148 = vector.load %arg4[%c4_112, %c0_113, %c0_114] : memref<5x128x256xbf16, #tpu.memory_space<vmem>>, vector<1x128x256xbf16>
    %149 = vector.shape_cast %148 : vector<1x128x256xbf16> to vector<128x256xbf16>
    %cst_115 = arith.constant dense<0.000000e+00> : vector<64x256xf32>
    %150 = tpu.matmul %147, %149, %cst_115 {dimension_numbers = #tpu.dot_dimension_numbers<[1], [0], [0], [1], [0, 0, 1, 1], [], []>} : vector<64x128xbf16>, vector<128x256xbf16>, vector<64x256xf32> -> vector<64x256xf32>
    %151 = arith.addf %146, %150 : vector<64x256xf32>
    %152 = vector.extract_strided_slice %127 {offsets = [0, 0], sizes = [64, 128], strides = [1, 1]} : vector<96x128xbf16> to vector<64x128xbf16>
    %c0_116 = arith.constant 0 : index
    %c0_117 = arith.constant 0 : index
    %c0_118 = arith.constant 0 : index
    %153 = vector.load %arg4[%c0_116, %c0_117, %c0_118] : memref<5x128x256xbf16, #tpu.memory_space<vmem>>, vector<1x128x256xbf16>
    %154 = vector.shape_cast %153 : vector<1x128x256xbf16> to vector<128x256xbf16>
    %cst_119 = arith.constant dense<0.000000e+00> : vector<64x256xf32>
    %155 = tpu.matmul %152, %154, %cst_119 {dimension_numbers = #tpu.dot_dimension_numbers<[1], [0], [0], [1], [0, 0, 1, 1], [], []>} : vector<64x128xbf16>, vector<128x256xbf16>, vector<64x256xf32> -> vector<64x256xf32>
    %156 = vector.extract_strided_slice %69 {offsets = [16, 0], sizes = [64, 128], strides = [1, 1]} : vector<96x128xbf16> to vector<64x128xbf16>
    %c1_120 = arith.constant 1 : index
    %c0_121 = arith.constant 0 : index
    %c0_122 = arith.constant 0 : index
    %157 = vector.load %arg4[%c1_120, %c0_121, %c0_122] : memref<5x128x256xbf16, #tpu.memory_space<vmem>>, vector<1x128x256xbf16>
    %158 = vector.shape_cast %157 : vector<1x128x256xbf16> to vector<128x256xbf16>
    %cst_123 = arith.constant dense<0.000000e+00> : vector<64x256xf32>
    %159 = tpu.matmul %156, %158, %cst_123 {dimension_numbers = #tpu.dot_dimension_numbers<[1], [0], [0], [1], [0, 0, 1, 1], [], []>} : vector<64x128xbf16>, vector<128x256xbf16>, vector<64x256xf32> -> vector<64x256xf32>
    %160 = arith.addf %155, %159 : vector<64x256xf32>
    %161 = vector.extract_strided_slice %127 {offsets = [16, 0], sizes = [64, 128], strides = [1, 1]} : vector<96x128xbf16> to vector<64x128xbf16>
    %c2_124 = arith.constant 2 : index
    %c0_125 = arith.constant 0 : index
    %c0_126 = arith.constant 0 : index
    %162 = vector.load %arg4[%c2_124, %c0_125, %c0_126] : memref<5x128x256xbf16, #tpu.memory_space<vmem>>, vector<1x128x256xbf16>
    %163 = vector.shape_cast %162 : vector<1x128x256xbf16> to vector<128x256xbf16>
    %cst_127 = arith.constant dense<0.000000e+00> : vector<64x256xf32>
    %164 = tpu.matmul %161, %163, %cst_127 {dimension_numbers = #tpu.dot_dimension_numbers<[1], [0], [0], [1], [0, 0, 1, 1], [], []>} : vector<64x128xbf16>, vector<128x256xbf16>, vector<64x256xf32> -> vector<64x256xf32>
    %165 = arith.addf %160, %164 : vector<64x256xf32>
    %166 = vector.extract_strided_slice %69 {offsets = [32, 0], sizes = [64, 128], strides = [1, 1]} : vector<96x128xbf16> to vector<64x128xbf16>
    %c3_128 = arith.constant 3 : index
    %c0_129 = arith.constant 0 : index
    %c0_130 = arith.constant 0 : index
    %167 = vector.load %arg4[%c3_128, %c0_129, %c0_130] : memref<5x128x256xbf16, #tpu.memory_space<vmem>>, vector<1x128x256xbf16>
    %168 = vector.shape_cast %167 : vector<1x128x256xbf16> to vector<128x256xbf16>
    %cst_131 = arith.constant dense<0.000000e+00> : vector<64x256xf32>
    %169 = tpu.matmul %166, %168, %cst_131 {dimension_numbers = #tpu.dot_dimension_numbers<[1], [0], [0], [1], [0, 0, 1, 1], [], []>} : vector<64x128xbf16>, vector<128x256xbf16>, vector<64x256xf32> -> vector<64x256xf32>
    %170 = arith.addf %165, %169 : vector<64x256xf32>
    %171 = vector.extract_strided_slice %127 {offsets = [32, 0], sizes = [64, 128], strides = [1, 1]} : vector<96x128xbf16> to vector<64x128xbf16>
    %c4_132 = arith.constant 4 : index
    %c0_133 = arith.constant 0 : index
    %c0_134 = arith.constant 0 : index
    %172 = vector.load %arg4[%c4_132, %c0_133, %c0_134] : memref<5x128x256xbf16, #tpu.memory_space<vmem>>, vector<1x128x256xbf16>
    %173 = vector.shape_cast %172 : vector<1x128x256xbf16> to vector<128x256xbf16>
    %cst_135 = arith.constant dense<0.000000e+00> : vector<64x256xf32>
    %174 = tpu.matmul %171, %173, %cst_135 {dimension_numbers = #tpu.dot_dimension_numbers<[1], [0], [0], [1], [0, 0, 1, 1], [], []>} : vector<64x128xbf16>, vector<128x256xbf16>, vector<64x256xf32> -> vector<64x256xf32>
    %175 = arith.addf %170, %174 : vector<64x256xf32>
    %c0_136 = arith.constant 0 : index
    %c0_137 = arith.constant 0 : index
    %176 = vector.load %arg5[%c0_136, %c0_137] : memref<1x128xf32, #tpu.memory_space<vmem>>, vector<1x128xf32>
    %177 = arith.maximumf %151, %175 : vector<64x256xf32>
    %178 = vector.extract_strided_slice %177 {offsets = [0, 0], sizes = [64, 128], strides = [1, 1]} : vector<64x256xf32> to vector<64x128xf32>
    %179 = vector.extract_strided_slice %177 {offsets = [0, 128], sizes = [64, 128], strides = [1, 1]} : vector<64x256xf32> to vector<64x128xf32>
    %180 = arith.maximumf %178, %179 : vector<64x128xf32>
    %181 = vector.broadcast %176 : vector<1x128xf32> to vector<64x128xf32>
    %182 = arith.addf %180, %181 : vector<64x128xf32>
    %cst_138 = arith.constant 0.000000e+00 : f32
    %183 = vector.broadcast %cst_138 : f32 to vector<64x128xf32>
    %184 = arith.maximumf %182, %183 : vector<64x128xf32>
    %185 = arith.truncf %184 : vector<64x128xf32> to vector<64x128xbf16>
    %186 = vector.extract_strided_slice %185 {offsets = [0, 0], sizes = [16, 128], strides = [1, 1]} : vector<64x128xbf16> to vector<16x128xbf16>
    %c0_139 = arith.constant 0 : index
    %c0_140 = arith.constant 0 : index
    %c0_141 = arith.constant 0 : index
    %187 = vector.load %arg6[%c0_139, %c0_140, %c0_141] : memref<4x128x50xbf16, #tpu.memory_space<vmem>>, vector<1x128x50xbf16>
    %188 = vector.shape_cast %187 : vector<1x128x50xbf16> to vector<128x50xbf16>
    %cst_142 = arith.constant dense<0.000000e+00> : vector<16x50xf32>
    %189 = tpu.matmul %186, %188, %cst_142 {dimension_numbers = #tpu.dot_dimension_numbers<[1], [0], [0], [1], [0, 0, 1, 1], [], []>} : vector<16x128xbf16>, vector<128x50xbf16>, vector<16x50xf32> -> vector<16x50xf32>
    %190 = vector.extract_strided_slice %185 {offsets = [16, 0], sizes = [16, 128], strides = [1, 1]} : vector<64x128xbf16> to vector<16x128xbf16>
    %c1_143 = arith.constant 1 : index
    %c0_144 = arith.constant 0 : index
    %c0_145 = arith.constant 0 : index
    %191 = vector.load %arg6[%c1_143, %c0_144, %c0_145] : memref<4x128x50xbf16, #tpu.memory_space<vmem>>, vector<1x128x50xbf16>
    %192 = vector.shape_cast %191 : vector<1x128x50xbf16> to vector<128x50xbf16>
    %cst_146 = arith.constant dense<0.000000e+00> : vector<16x50xf32>
    %193 = tpu.matmul %190, %192, %cst_146 {dimension_numbers = #tpu.dot_dimension_numbers<[1], [0], [0], [1], [0, 0, 1, 1], [], []>} : vector<16x128xbf16>, vector<128x50xbf16>, vector<16x50xf32> -> vector<16x50xf32>
    %194 = arith.addf %189, %193 : vector<16x50xf32>
    %195 = vector.extract_strided_slice %185 {offsets = [32, 0], sizes = [16, 128], strides = [1, 1]} : vector<64x128xbf16> to vector<16x128xbf16>
    %c2_147 = arith.constant 2 : index
    %c0_148 = arith.constant 0 : index
    %c0_149 = arith.constant 0 : index
    %196 = vector.load %arg6[%c2_147, %c0_148, %c0_149] : memref<4x128x50xbf16, #tpu.memory_space<vmem>>, vector<1x128x50xbf16>
    %197 = vector.shape_cast %196 : vector<1x128x50xbf16> to vector<128x50xbf16>
    %cst_150 = arith.constant dense<0.000000e+00> : vector<16x50xf32>
    %198 = tpu.matmul %195, %197, %cst_150 {dimension_numbers = #tpu.dot_dimension_numbers<[1], [0], [0], [1], [0, 0, 1, 1], [], []>} : vector<16x128xbf16>, vector<128x50xbf16>, vector<16x50xf32> -> vector<16x50xf32>
    %199 = arith.addf %194, %198 : vector<16x50xf32>
    %200 = vector.extract_strided_slice %185 {offsets = [48, 0], sizes = [16, 128], strides = [1, 1]} : vector<64x128xbf16> to vector<16x128xbf16>
    %c3_151 = arith.constant 3 : index
    %c0_152 = arith.constant 0 : index
    %c0_153 = arith.constant 0 : index
    %201 = vector.load %arg6[%c3_151, %c0_152, %c0_153] : memref<4x128x50xbf16, #tpu.memory_space<vmem>>, vector<1x128x50xbf16>
    %202 = vector.shape_cast %201 : vector<1x128x50xbf16> to vector<128x50xbf16>
    %cst_154 = arith.constant dense<0.000000e+00> : vector<16x50xf32>
    %203 = tpu.matmul %200, %202, %cst_154 {dimension_numbers = #tpu.dot_dimension_numbers<[1], [0], [0], [1], [0, 0, 1, 1], [], []>} : vector<16x128xbf16>, vector<128x50xbf16>, vector<16x50xf32> -> vector<16x50xf32>
    %204 = arith.addf %199, %203 : vector<16x50xf32>
    %c0_155 = arith.constant 0 : index
    %c0_156 = arith.constant 0 : index
    %205 = vector.load %arg7[%c0_155, %c0_156] : memref<1x50xf32, #tpu.memory_space<vmem>>, vector<1x50xf32>
    %206 = vector.broadcast %205 : vector<1x50xf32> to vector<16x50xf32>
    %207 = arith.addf %204, %206 : vector<16x50xf32>
    %cst_157 = arith.constant 0.000000e+00 : f32
    %208 = vector.broadcast %cst_157 : f32 to vector<16x50xf32>
    %209 = arith.maximumf %207, %208 : vector<16x50xf32>
    %210 = arith.truncf %209 : vector<16x50xf32> to vector<16x50xbf16>
    %c0_158 = arith.constant 0 : index
    %c0_159 = arith.constant 0 : index
    %211 = vector.load %arg8[%c0_158, %c0_159] : memref<50x128xbf16, #tpu.memory_space<vmem>>, vector<50x128xbf16>
    %cst_160 = arith.constant dense<0.000000e+00> : vector<16x128xf32>
    %212 = tpu.matmul %210, %211, %cst_160 {dimension_numbers = #tpu.dot_dimension_numbers<[1], [0], [0], [1], [0, 0, 1, 1], [], []>} : vector<16x50xbf16>, vector<50x128xbf16>, vector<16x128xf32> -> vector<16x128xf32>
    %c0_161 = arith.constant 0 : index
    %c0_162 = arith.constant 0 : index
    %213 = vector.load %arg9[%c0_161, %c0_162] : memref<1x128xf32, #tpu.memory_space<vmem>>, vector<1x128xf32>
    %214 = vector.broadcast %213 : vector<1x128xf32> to vector<16x128xf32>
    %215 = arith.addf %212, %214 : vector<16x128xf32>
    %cst_163 = arith.constant dense<0xFF800000> : vector<16xf32>
    %216 = vector.multi_reduction <maximumf>, %215, %cst_163 [1] : vector<16x128xf32> to vector<16xf32>
    %217 = vector.shape_cast %216 : vector<16xf32> to vector<16x1xf32>
    %218 = vector.broadcast %217 : vector<16x1xf32> to vector<16x128xf32>
    %219 = arith.subf %215, %218 : vector<16x128xf32>
    %220 = math.exp %219 : vector<16x128xf32>
    %cst_164 = arith.constant dense<0.000000e+00> : vector<16xf32>
    %221 = vector.multi_reduction <add>, %220, %cst_164 [1] : vector<16x128xf32> to vector<16xf32>
    %222 = vector.shape_cast %221 : vector<16xf32> to vector<16x1xf32>
    %223 = math.log %222 : vector<16x1xf32>
    %224 = vector.broadcast %223 : vector<16x1xf32> to vector<16x128xf32>
    %225 = arith.subf %219, %224 : vector<16x128xf32>
    %c0_165 = arith.constant 0 : index
    %c0_166 = arith.constant 0 : index
    %226 = vector.load %arg10[%c0_165, %c0_166] : memref<16x128xf32, #tpu.memory_space<vmem>>, vector<16x128xf32>
    tpu.vector_store %arg10[%c0_165, %c0_166], %225 {strides = array<i32>} : memref<16x128xf32, #tpu.memory_space<vmem>>, vector<16x128xf32>,
    return
  }
  func.func @transform_0(%arg0: i32) -> (i32, i32, i32, i32) {
    %c0_i32 = arith.constant 0 : i32
    %c0_i32_0 = arith.constant 0 : i32
    %c0_i32_1 = arith.constant 0 : i32
    %c0_i32_2 = arith.constant 0 : i32
    return %arg0, %c0_i32, %c0_i32_0, %c0_i32_1 : i32, i32, i32, i32
  }
  func.func @transform_1(%arg0: i32) -> (i32, i32, i32) {
    %c0_i32 = arith.constant 0 : i32
    %c0_i32_0 = arith.constant 0 : i32
    %c0_i32_1 = arith.constant 0 : i32
    %c0_i32_2 = arith.constant 0 : i32
    return %c0_i32, %c0_i32_0, %c0_i32_1 : i32, i32, i32
  }
  func.func @transform_2(%arg0: i32) -> (i32, i32) {
    %c0_i32 = arith.constant 0 : i32
    %c0_i32_0 = arith.constant 0 : i32
    %c0_i32_1 = arith.constant 0 : i32
    return %c0_i32, %c0_i32_0 : i32, i32
  }
  func.func @transform_3(%arg0: i32) -> (i32, i32, i32) {
    %c0_i32 = arith.constant 0 : i32
    %c0_i32_0 = arith.constant 0 : i32
    %c0_i32_1 = arith.constant 0 : i32
    %c0_i32_2 = arith.constant 0 : i32
    return %c0_i32, %c0_i32_0, %c0_i32_1 : i32, i32, i32
  }
  func.func @transform_4(%arg0: i32) -> (i32, i32) {
    %c0_i32 = arith.constant 0 : i32
    %c0_i32_0 = arith.constant 0 : i32
    %c0_i32_1 = arith.constant 0 : i32
    return %c0_i32, %c0_i32_0 : i32, i32
  }
  func.func @transform_5(%arg0: i32) -> (i32, i32, i32) {
    %c0_i32 = arith.constant 0 : i32
    %c0_i32_0 = arith.constant 0 : i32
    %c0_i32_1 = arith.constant 0 : i32
    %c0_i32_2 = arith.constant 0 : i32
    return %c0_i32, %c0_i32_0, %c0_i32_1 : i32, i32, i32
  }
  func.func @transform_6(%arg0: i32) -> (i32, i32) {
    %c0_i32 = arith.constant 0 : i32
    %c0_i32_0 = arith.constant 0 : i32
    %c0_i32_1 = arith.constant 0 : i32
    return %c0_i32, %c0_i32_0 : i32, i32
  }
  func.func @transform_7(%arg0: i32) -> (i32, i32) {
    %c0_i32 = arith.constant 0 : i32
    %c0_i32_0 = arith.constant 0 : i32
    %c0_i32_1 = arith.constant 0 : i32
    return %c0_i32, %c0_i32_0 : i32, i32
  }
  func.func @transform_8(%arg0: i32) -> (i32, i32) {
    %c0_i32 = arith.constant 0 : i32
    %c0_i32_0 = arith.constant 0 : i32
    %c0_i32_1 = arith.constant 0 : i32
    return %c0_i32, %c0_i32_0 : i32, i32
  }
  func.func @transform_9(%arg0: i32) -> (i32, i32) {
    %c0_i32 = arith.constant 0 : i32
    %c0_i32_0 = arith.constant 0 : i32
    return %arg0, %c0_i32 : i32, i32
  }
}

</mosaic_0001>

<bundles_post_ra>
// kernel: net_forward.1
= control target key start
LH: loop header
LB: loop body
LE: loop exit
PB: predicated region body
PF: predicated region fallthrough
CT: control target
= control target key end

     0   :  { %s5760_s30 = smov 0   ;;  %s8693_s0 = inlined_call_operand.vmem [shape: f32[2,4,112,28], index: 0, kind: input, shape index: {}]   ;;  %s8694_s1 = inlined_call_operand.vmem [shape: bf16[5,28,256], index: 1, kind: input, shape index: {}]   ;;  %s8695_s2 = inlined_call_operand.vmem [shape: f32[1,128], index: 2, kind: input, shape index: {}]   ;;  %s8696_s3 = inlined_call_operand.vmem [shape: bf16[5,128,256], index: 3, kind: input, shape index: {}]   ;;  %s8697_s4 = inlined_call_operand.vmem [shape: f32[1,128], index: 4, kind: input, shape index: {}]   ;;  %s8698_s5 = inlined_call_operand.vmem [shape: bf16[4,128,50], index: 5, kind: input, shape index: {}]   ;;  %s8699_s6 = inlined_call_operand.vmem [shape: f32[1,50], index: 6, kind: input, shape index: {}]   ;;  %s8700_s7 = inlined_call_operand.vmem [shape: bf16[50,128], index: 7, kind: input, shape index: {}]   ;;  %s8701_s8 = inlined_call_operand.vmem [shape: f32[1,128], index: 8, kind: input, shape index: {}]   ;;  %s8702_s9 = inlined_call_operand.vmem [shape: f32[32,128], index: 9, kind: output, shape index: {}]  }
   0x1 LB: > { %s5766_s10 = sadd.s32 4294967295, %s5708_s30   ;;  %p4588_p0 = scmp.ge.s32.totalorder %s5708_s30, 1  ;;  %s5708_s30 = sphi %s5760_s30, %s19_s30  }
   0x2   : > { %p287_p1 = scmp.lt.s32.totalorder %s5708_s30, 3 }
   0x4   : > { %p288_p2 = pnand %p4588_p0, %p287_p1 }
   0x6   : > { %291 = sbr.rel (%p288_p2) target bundleno = 2044 (0x7fc), region = 56 }
   0xb   : > { %v4648_v0 = vld [vmem:[%s8694_s1 + $0x30] sm:$0xf]  ;;  %v5552_v1 = vld [vmem:[%s8694_s1 + $0x34] sm:$0x30]  ;;  %vm526_vm0 = vcmask 1045504   ;;  %p323_p3 = scmp.lt.s32.totalorder %s5766_s10, 1 }
   0xc   : > { %v4649_v2 = vor.u32 %v5552_v1, %v4648_v0  ;;  %v5551_v3 = vld [vmem:[%s8694_s1 + $0x34] sm:$0xf]  ;;  %v4650_v4 = vld [vmem:[%s8694_s1 + $0x38] sm:$0x30]  ;;  %v4676_v5 = vld [vmem:[%s8694_s1 + $0x10] sm:$0xf] }
   0xd   : > { %v4653_v6 = vor.u32 %v5551_v3, %v4650_v4  ;;  %v5548_v7 = vld [vmem:[%s8694_s1 + $0x14] sm:$0x30]  ;;  %v5547_v8 = vld [vmem:[%s8694_s1 + $0x14] sm:$0xf]  ;;  %v4678_v9 = vld [vmem:[%s8694_s1 + $0x18] sm:$0x30] }
   0xe   : > { %v5796_v10 = vsel %vm526_vm0, %v4649_v2, 0  ;;  %v4677_v11 = vor.u32 %v5548_v7, %v4676_v5  ;;  %v4681_v12 = vor.u32 %v5547_v8, %v4678_v9  ;;  %v4640_v13 = vld [vmem:[%s8694_s1 + $0x20] sm:$0xf]  ;;  %v5550_v14 = vld [vmem:[%s8694_s1 + $0x24] sm:$0xf0]  ;;  %s324_s12 = scalar_select %p323_p3, %s5766_s10, 1 }
   0xf   : > { %539 = vmatpush.bf16.msra.mxu0 %v5796_v10  ;;  %v5809_v15 = vsel %vm526_vm0, %v4653_v6, 0  ;;  %v5811_v16 = vor.u32 %v5550_v14, %v4640_v13  ;;  %v5549_v17 = vld [vmem:[%s8694_s1 + $0x24] sm:$0xf]  ;;  %v4642_v18 = vld [vmem:[%s8694_s1 + $0x28] sm:$0xf0]  ;;  %vm507_vm1 = vcmask 228352  }
  0x10   : > { %578 = vmatpush.bf16.msra.mxu1 %v5809_v15  ;;  %v5821_v19 = vsel %vm526_vm0, %v4677_v11, 0  ;;  %v5824_v20 = vsel %vm526_vm0, %v4681_v12, 0  ;;  %v5826_v21 = vor.u32 %v5549_v17, %v4642_v18  ;;  %v4668_v22 = vld [vmem:[%s8694_s1] sm:$0xf]  ;;  %v5546_v23 = vld [vmem:[%s8694_s1 + $0x4] sm:$0xf0] }
  0x11   : > { %8805 = vst [vmem:[#allocation2_spill] sm:$0xff] %v5821_v19  ;;  %689 = vmatpush.bf16.msra.mxu2 %v5821_v19  ;;  %728 = vmatpush.bf16.msra.mxu3 %v5824_v20  ;;  %v5836_v24 = vor.u32 %v5546_v23, %v4668_v22  ;;  %v5545_v25 = vld [vmem:[%s8694_s1 + $0x4] sm:$0xf]  ;;  %v4670_v26 = vld [vmem:[%s8694_s1 + $0x8] sm:$0xf0]  ;;  %s5680_s25 = smul.u32 448, %s324_s12 }
  0x12   : > { %8806 = vst [vmem:[#allocation3_spill] sm:$0xff] %v5824_v20  ;;  %v5844_v27 = vor.u32 %v5545_v25, %v4670_v26  ;;  %v4740_v28 = vld [vmem:[%s8694_s1 + $0x70] sm:$0xf]  ;;  %v5560_v29 = vld [vmem:[%s8694_s1 + $0x74] sm:$0x30]  ;;  %vm4488_vm2 = vcmask 1040384  }
  0x13   : > { %8807 = vst [vmem:[#allocation4_spill] sm:$0xff] %v5836_v24  ;;  %v5559_v30 = vld [vmem:[%s8694_s1 + $0x74] sm:$0xf]  ;;  %540 = vmatpush.bf16.msra.mxu0 %v5811_v16  ;;  %s5859_s12 = scalar_lea.vmem %s8693_s0, %s5680_s25  ;;  %v4741_v31 = vor.u32 %v5560_v29, %v4740_v28  ;;  %v4742_v32 = vld [vmem:[%s8694_s1 + $0x78] sm:$0x30]  ;;  %vm4484_vm3 = vcmask 408576  }
  0x14   : > { %8808 = vst [vmem:[#allocation5_spill] sm:$0xff] %v5844_v27  ;;  %v4708_v33 = vld [vmem:[%s8694_s1 + $0x50] sm:$0xf]  ;;  %v5556_v34 = vld [vmem:[%s8694_s1 + $0x54] sm:$0x30]  ;;  %579 = vmatpush.bf16.msra.mxu1 %v5826_v21  ;;  %v335_v37 = vld [vmem:[%s5859_s12] sm:$0xff]  ;;  %v4745_v38 = vor.u32 %v5559_v30, %v4742_v32 }
  0x15   : > { %v4592_v35 = vld [vmem:[%s5859_s12 + $0x70] sm:$0xff]  ;;  %v4593_v36 = vld [vmem:[%s5859_s12 + $0x78] sm:$0xff]  ;;  %v4709_v39 = vor.u32 %v5556_v34, %v4708_v33  ;;  %690 = vmatpush.bf16.msra.mxu2 %v5836_v24  ;;  %729 = vmatpush.bf16.msra.mxu3 %v5844_v27  ;;  %v336_v42 = vld [vmem:[%s5859_s12 + $0x8] sm:$0xff]  ;;  %v349_v43 = vpack.c.bf16 %v335_v37, %v335_v37  ;;  %v5878_v44 = vsel %vm526_vm0, %v4741_v31, 0 }
  0x16   : > { %v378_v40 = vpack.c.bf16 %v4592_v35, %v4592_v35  ;;  %v379_v41 = vpack.c.bf16 %v4593_v36, %v4593_v36  ;;  %8809 = vst [vmem:[#allocation6_spill] sm:$0xff] %v5878_v44  ;;  %v5555_v45 = vld [vmem:[%s8694_s1 + $0x54] sm:$0xf]  ;;  %v4710_v46 = vld [vmem:[%s8694_s1 + $0x58] sm:$0x30]  ;;  %v350_v47 = vpack.c.bf16 %v336_v42, %v336_v42  ;;  %v5888_v48 = vsel %vm526_vm0, %v4745_v38, 0 }
  0x17   : > { %8810 = vst [vmem:[#allocation7_spill] sm:$0xff] %v5888_v48  ;;  %v5891_v49 = vsel %vm526_vm0, %v4709_v39, 0  ;;  %v4713_v50 = vor.u32 %v5555_v45, %v4710_v46  ;;  %v623_v53 = vunpack.c.l.b16 %v349_v43  ;;  %v4594_v58 = vld [vmem:[%s5859_s12 + $0x80] sm:$0xff]  ;;  %v4595_v59 = vld [vmem:[%s5859_s12 + $0x88] sm:$0xff]  ;;  %v337_v60 = vld [vmem:[%s5859_s12 + $0x10] sm:$0xff] }
  0x18   : > { %8811 = vst [vmem:[#allocation8_spill] sm:$0xff] %v5891_v49  ;;  %v471_v51 = vunpack.c.l.b16 %v378_v40  ;;  %v472_v52 = vunpack.c.l.b16 %v379_v41  ;;  %844 = vmatpush.bf16.msrb.mxu0 %v5891_v49  ;;  %v624_v54 = vunpack.c.l.b16 %v350_v47  ;;  %v338_v61 = vld [vmem:[%s5859_s12 + $0x18] sm:$0xff]  ;;  %v380_v62 = vpack.c.bf16 %v4594_v58, %v4594_v58  ;;  %v4596_v8 = vld [vmem:[%s5859_s12 + $0x90] sm:$0xff]  ;;  %v339_v11 = vld [vmem:[%s5859_s12 + $0x20] sm:$0xff] }
  0x19   : > { %1023 = vmatpush.bf16.msrb.mxu2 %v5878_v44  ;;  %1062 = vmatpush.bf16.msrb.mxu3 %v5888_v48  ;;  %v5896_v55 = vsel %vm526_vm0, %v4713_v50, 0  ;;  %v381_v63 = vpack.c.bf16 %v4595_v59, %v4595_v59  ;;  %v351_v0 = vpack.c.bf16 %v337_v60, %v337_v60  ;;  %v352_v1 = vpack.c.bf16 %v338_v61, %v338_v61  ;;  %v4597_v9 = vld [vmem:[%s5859_s12 + $0x98] sm:$0xff]  ;;  %v340_v12 = vld [vmem:[%s5859_s12 + $0x28] sm:$0xff]  ;;  %v4732_v13 = vld [vmem:[%s8694_s1 + $0x60] sm:$0xf] }
  0x1a   : > { %8812 = vst [vmem:[#allocation9_spill] sm:$0xff] %v5896_v55  ;;  %v5898_v56 = vpack.c.b16 %v472_v52, %v471_v51  ;;  %883 = vmatpush.bf16.msrb.mxu1 %v5896_v55  ;;  %v635_v57 = vpack.c.b16 %v624_v54, %v623_v53  ;;  %v473_v2 = vunpack.c.l.b16 %v380_v62  ;;  %v5558_v14 = vld [vmem:[%s8694_s1 + $0x64] sm:$0xf0]  ;;  %v5557_v17 = vld [vmem:[%s8694_s1 + $0x64] sm:$0xf]  ;;  %v382_v31 = vpack.c.bf16 %v4596_v8, %v4596_v8  ;;  %v341_v45 = vld [vmem:[%s5859_s12 + $0x30] sm:$0xff] }
  0x1b   : > { %v474_v3 = vunpack.c.l.b16 %v381_v63  ;;  %v625_v4 = vunpack.c.l.b16 %v351_v0  ;;  %v626_v5 = vunpack.c.l.b16 %v352_v1  ;;  %v5936_v18 = vor.u32 %v5558_v14, %v4732_v13  ;;  %v4734_v22 = vld [vmem:[%s8694_s1 + $0x68] sm:$0xf0]  ;;  %v4700_v23 = vld [vmem:[%s8694_s1 + $0x40] sm:$0xf]  ;;  %v5554_v25 = vld [vmem:[%s8694_s1 + $0x44] sm:$0xf0] }
  0x1c   : > { %4654 = vmatmul.msk.bf16.vlgmr.msra.gmra.mxu0 %vm507_vm1, %v5898_v56  ;;  %4660 = vmatmul.msk.bf16.vlgmr.msra.gmra.mxu1 %vm507_vm1, %v5898_v56  ;;  %v5947_v26 = vor.u32 %v5557_v17, %v4734_v22  ;;  %v5949_v28 = vor.u32 %v5554_v25, %v4700_v23  ;;  %v5553_v29 = vld [vmem:[%s8694_s1 + $0x44] sm:$0xf]  ;;  %v4702_v30 = vld [vmem:[%s8694_s1 + $0x48] sm:$0xf0]  ;;  %v383_v32 = vpack.c.bf16 %v4597_v9, %v4597_v9  ;;  %v475_v36 = vunpack.c.l.b16 %v382_v31  ;;  %v342_v46 = vld [vmem:[%s5859_s12 + $0x38] sm:$0xff] }
  0x1d   : > { %4682 = vmatmul.msk.bf16.vlgmr.msra.gmra.mxu2 %vm507_vm1, %v635_v57  ;;  %4688 = vmatmul.msk.bf16.vlgmr.msra.gmra.mxu3 %vm507_vm1, %v635_v57  ;;  %v5911_v6 = vpack.c.b16 %v474_v3, %v473_v2  ;;  %v5913_v7 = vpack.c.b16 %v626_v5, %v625_v4  ;;  %8815 = vst [vmem:[#allocation12_spill] sm:$0xff] %v5936_v18  ;;  %v4598_v42 = vld [vmem:[%s5859_s12 + $0xa0] sm:$0xff]  ;;  %v4599_v43 = vld [vmem:[%s5859_s12 + $0xa8] sm:$0xff]  ;;  %v4600_v61 = vld [vmem:[%s5859_s12 + $0xb0] sm:$0xff] }
  0x1e   : > { %8816 = vst [vmem:[#allocation13_spill] sm:$0xff] %v5947_v26  ;;  %1024 = vmatpush.bf16.msrb.mxu2 %v5936_v18  ;;  %v5958_v33 = vor.u32 %v5553_v29, %v4702_v30  ;;  %v353_v34 = vpack.c.bf16 %v339_v11, %v339_v11  ;;  %v354_v35 = vpack.c.bf16 %v340_v12, %v340_v12  ;;  %v476_v37 = vunpack.c.l.b16 %v383_v32  ;;  %v4601_v62 = vld [vmem:[%s5859_s12 + $0xb8] sm:$0xff]  ;;  %v343_v63 = vld [vmem:[%s5859_s12 + $0x40] sm:$0xff]  ;;  %v344_v0 = vld [vmem:[%s5859_s12 + $0x48] sm:$0xff] }
  0x1f   : > { %8813 = vst [vmem:[#allocation10_spill] sm:$0xff] %v5911_v6  ;;  %1063 = vmatpush.bf16.msrb.mxu3 %v5947_v26  ;;  %845 = vmatpush.bf16.msrb.mxu0 %v5949_v28  ;;  %v384_v47 = vpack.c.bf16 %v4598_v42, %v4598_v42  ;;  %v385_v50 = vpack.c.bf16 %v4599_v43, %v4599_v43  ;;  %v4602_v14 = vld [vmem:[%s5859_s12 + $0xc0] sm:$0xff]  ;;  %v4603_v17 = vld [vmem:[%s5859_s12 + $0xc8] sm:$0xff]  ;;  %v4772_v22 = vld [vmem:[%s8694_s1 + $0x90] sm:$0xf] }
  0x20   : > { %8814 = vst [vmem:[#allocation11_spill] sm:$0xff] %v5913_v7  ;;  %884 = vmatpush.bf16.msrb.mxu1 %v5958_v33  ;;  %v627_v38 = vunpack.c.l.b16 %v353_v34  ;;  %v628_v39 = vunpack.c.l.b16 %v354_v35  ;;  %v5967_v40 = vpack.c.b16 %v476_v37, %v475_v36  ;;  %v355_v51 = vpack.c.bf16 %v341_v45, %v341_v45  ;;  %v5564_v23 = vld [vmem:[%s8694_s1 + $0x94] sm:$0x30]  ;;  %v5563_v25 = vld [vmem:[%s8694_s1 + $0x94] sm:$0xf] }
  0x21   : > { %8817 = vst [vmem:[#allocation14_spill] sm:$0xff] %v5949_v28  ;;  %v356_v52 = vpack.c.bf16 %v342_v46, %v342_v46  ;;  %v477_v53 = vunpack.c.l.b16 %v384_v47  ;;  %v478_v54 = vunpack.c.l.b16 %v385_v50  ;;  %v386_v1 = vpack.c.bf16 %v4600_v61, %v4600_v61  ;;  %v345_v29 = vld [vmem:[%s5859_s12 + $0x50] sm:$0xff]  ;;  %v346_v30 = vld [vmem:[%s5859_s12 + $0x58] sm:$0xff] }
  0x22   : > { %8818 = vst [vmem:[#allocation15_spill] sm:$0xff] %v5958_v33  ;;  %1264 = vmatpush.bf16.msra.mxu2 %v5796_v10  ;;  %v5969_v41 = vpack.c.b16 %v628_v39, %v627_v38  ;;  %v629_v57 = vunpack.c.l.b16 %v355_v51  ;;  %v387_v2 = vpack.c.bf16 %v4601_v62, %v4601_v62  ;;  %v357_v3 = vpack.c.bf16 %v343_v63, %v343_v63  ;;  %v4774_v32 = vld [vmem:[%s8694_s1 + $0x98] sm:$0x30] }
  0x23   : > { %1303 = vmatpush.bf16.msra.mxu3 %v5809_v15  ;;  %8819 = vst [vmem:[#allocation16_spill] sm:$0xff] %v5967_v40  ;;  %v630_v58 = vunpack.c.l.b16 %v356_v52  ;;  %v5983_v59 = vpack.c.b16 %v478_v54, %v477_v53  ;;  %v358_v4 = vpack.c.bf16 %v344_v0, %v344_v0  ;;  %v479_v5 = vunpack.c.l.b16 %v386_v1  ;;  %v4606_v52 = vld [vmem:[%s5859_s12 + $0xe0] sm:$0xff]  ;;  %v4607_v53 = vld [vmem:[%s5859_s12 + $0xe8] sm:$0xff]  ;;  %v4620_v54 = vld [vmem:[%s5859_s12 + $0x150] sm:$0xff] }
  0x24   : > { %8820 = vst [vmem:[#allocation17_spill] sm:$0xff] %v5969_v41  ;;  %v480_v8 = vunpack.c.l.b16 %v387_v2  ;;  %v631_v9 = vunpack.c.l.b16 %v357_v3  ;;  %v4773_v31 = vor.u32 %v5564_v23, %v4772_v22  ;;  %v4777_v34 = vor.u32 %v5563_v25, %v4774_v32 }
  0x25   : > { %8821 = vst [vmem:[#allocation18_spill] sm:$0xff] %v5983_v59  ;;  %v5985_v60 = vpack.c.b16 %v630_v58, %v629_v57  ;;  %v632_v11 = vunpack.c.l.b16 %v358_v4  ;;  %v388_v35 = vpack.c.bf16 %v4602_v14, %v4602_v14  ;;  %v389_v36 = vpack.c.bf16 %v4603_v17, %v4603_v17  ;;  %v4621_v57 = vld [vmem:[%s5859_s12 + $0x158] sm:$0xff]  ;;  %v4623_v14 = vld [vmem:[%s5859_s12 + $0x168] sm:$0xff] }
  0x26   : > { %1265 = vmatpush.bf16.msra.mxu2 %v5811_v16  ;;  %v5999_v12 = vpack.c.b16 %v480_v8, %v479_v5  ;;  %v6028_v37 = vsel %vm526_vm0, %v4773_v31, 0  ;;  %v359_v38 = vpack.c.bf16 %v345_v29, %v345_v29  ;;  %v360_v39 = vpack.c.bf16 %v346_v30, %v346_v30  ;;  %v4608_v8 = vld [vmem:[%s5859_s12 + $0xf0] sm:$0xff] }
  0x27   : > { %1304 = vmatpush.bf16.msra.mxu3 %v5826_v21  ;;  %8822 = vst [vmem:[#allocation19_spill] sm:$0xff] %v5985_v60  ;;  %v6001_v13 = vpack.c.b16 %v632_v11, %v631_v9  ;;  %1162 = vmatpush.bf16.msra.mxu0 %v6028_v37  ;;  %v6032_v42 = vsel %vm526_vm0, %v4777_v34, 0  ;;  %v481_v43 = vunpack.c.l.b16 %v388_v35  ;;  %v482_v45 = vunpack.c.l.b16 %v389_v36  ;;  %v4609_v9 = vld [vmem:[%s5859_s12 + $0xf8] sm:$0xff]  ;;  %v4622_v11 = vld [vmem:[%s5859_s12 + $0x160] sm:$0xff] }
  0x28   : > { %8823 = vst [vmem:[#allocation20_spill] sm:$0xff] %v5999_v12  ;;  %1201 = vmatpush.bf16.msra.mxu1 %v6032_v42  ;;  %v633_v46 = vunpack.c.l.b16 %v359_v38  ;;  %v634_v47 = vunpack.c.l.b16 %v360_v39  ;;  %v407_v58 = vpack.c.bf16 %v4606_v52, %v4606_v52  ;;  %v408_v61 = vpack.c.bf16 %v4607_v53, %v4607_v53  ;;  %v4610_v36 = vld [vmem:[%s5859_s12 + $0x100] sm:$0xff]  ;;  %v4611_v38 = vld [vmem:[%s5859_s12 + $0x108] sm:$0xff]  ;;  %v4624_v39 = vld [vmem:[%s5859_s12 + $0x170] sm:$0xff] }
  0x29   : > { %8824 = vst [vmem:[#allocation21_spill] sm:$0xff] %v6001_v13  ;;  %v6035_v50 = vpack.c.b16 %v482_v45, %v481_v43  ;;  %v436_v62 = vpack.c.bf16 %v4620_v54, %v4620_v54  ;;  %v437_v63 = vpack.c.bf16 %v4621_v57, %v4621_v57  ;;  %v409_v17 = vpack.c.bf16 %v4608_v8, %v4608_v8  ;;  %v4625_v43 = vld [vmem:[%s5859_s12 + $0x178] sm:$0xff]  ;;  %v4764_v53 = vld [vmem:[%s8694_s1 + $0x80] sm:$0xf]  ;;  %v5562_v54 = vld [vmem:[%s8694_s1 + $0x84] sm:$0xf0] }
  0x2a   : > { %8825 = vst [vmem:[#allocation22_spill] sm:$0xff] %v6028_v37  ;;  %v6037_v51 = vpack.c.b16 %v634_v47, %v633_v46  ;;  %v778_v0 = vunpack.c.l.b16 %v407_v58  ;;  %v779_v1 = vunpack.c.l.b16 %v408_v61  ;;  %v410_v22 = vpack.c.bf16 %v4609_v9, %v4609_v9  ;;  %v5561_v57 = vld [vmem:[%s8694_s1 + $0x84] sm:$0xf]  ;;  %v4766_v61 = vld [vmem:[%s8694_s1 + $0x88] sm:$0xf0] }
  0x2b   : > { %8826 = vst [vmem:[#allocation23_spill] sm:$0xff] %v6032_v42  ;;  %v957_v2 = vunpack.c.l.b16 %v436_v62  ;;  %v958_v3 = vunpack.c.l.b16 %v437_v63  ;;  %v438_v23 = vpack.c.bf16 %v4622_v11, %v4622_v11  ;;  %v439_v25 = vpack.c.bf16 %v4623_v14, %v4623_v14  ;;  %v4612_v14 = vld [vmem:[%s5859_s12 + $0x110] sm:$0xff] }
  0x2c   : > { %4655 = vmatmul.msk.bf16.gmra.mxu0 %vm507_vm1, %v5911_v6  ;;  %4661 = vmatmul.msk.bf16.gmra.mxu1 %vm507_vm1, %v5911_v6  ;;  %8827 = vst [vmem:[#allocation24_spill] sm:$0xff] %v6035_v50  ;;  %v6051_v4 = vpack.c.b16 %v779_v1, %v778_v0  ;;  %v780_v29 = vunpack.c.l.b16 %v409_v17  ;;  %v781_v30 = vunpack.c.l.b16 %v410_v22  ;;  %v411_v45 = vpack.c.bf16 %v4610_v36, %v4610_v36  ;;  %v4613_v17 = vld [vmem:[%s5859_s12 + $0x118] sm:$0xff]  ;;  %v4626_v22 = vld [vmem:[%s5859_s12 + $0x180] sm:$0xff] }
  0x2d   : > { %4683 = vmatmul.msk.bf16.gmra.mxu2 %vm507_vm1, %v5913_v7  ;;  %4689 = vmatmul.msk.bf16.gmra.mxu3 %vm507_vm1, %v5913_v7  ;;  %8828 = vst [vmem:[#allocation25_spill] sm:$0xff] %v6037_v51  ;;  %v6053_v5 = vpack.c.b16 %v958_v3, %v957_v2  ;;  %v959_v31 = vunpack.c.l.b16 %v438_v23  ;;  %v960_v32 = vunpack.c.l.b16 %v439_v25  ;;  %v412_v46 = vpack.c.bf16 %v4611_v38, %v4611_v38  ;;  %v4627_v23 = vld [vmem:[%s5859_s12 + $0x188] sm:$0xff] }
  0x2e   : > { %8829 = vst [vmem:[#allocation26_spill] sm:$0xff] %v6051_v4  ;;  %v6071_v34 = vpack.c.b16 %v781_v30, %v780_v29  ;;  %v440_v47 = vpack.c.bf16 %v4624_v39, %v4624_v39  ;;  %v441_v52 = vpack.c.bf16 %v4625_v43, %v4625_v43  ;;  %v6096_v58 = vor.u32 %v5562_v54, %v4764_v53 }
  0x2f   : > { %v6073_v35 = vpack.c.b16 %v960_v32, %v959_v31  ;;  %v6101_v62 = vor.u32 %v5561_v57, %v4766_v61  ;;  %v782_v63 = vunpack.c.l.b16 %v411_v45  ;;  %v783_v0 = vunpack.c.l.b16 %v412_v46 }
  0x30   : > { %8830 = vst [vmem:[#allocation27_spill] sm:$0xff] %v6071_v34  ;;  %1163 = vmatpush.bf16.msra.mxu0 %v6096_v58  ;;  %v961_v1 = vunpack.c.l.b16 %v440_v47  ;;  %v962_v2 = vunpack.c.l.b16 %v441_v52  ;;  %v413_v30 = vpack.c.bf16 %v4612_v14, %v4612_v14  ;;  %v414_v31 = vpack.c.bf16 %v4613_v17, %v4613_v17  ;;  %v4615_v14 = vld [vmem:[%s5859_s12 + $0x128] sm:$0xff]  ;;  %v4628_v17 = vld [vmem:[%s5859_s12 + $0x190] sm:$0xff] }
  0x31   : > { %8831 = vst [vmem:[#allocation28_spill] sm:$0xff] %v6096_v58  ;;  %1202 = vmatpush.bf16.msra.mxu1 %v6101_v62  ;;  %v6107_v3 = vpack.c.b16 %v783_v0, %v782_v63  ;;  %v442_v43 = vpack.c.bf16 %v4626_v22, %v4626_v22  ;;  %v443_v45 = vpack.c.bf16 %v4627_v23, %v4627_v23  ;;  %v4629_v22 = vld [vmem:[%s5859_s12 + $0x198] sm:$0xff] }
  0x32   : > { %8832 = vst [vmem:[#allocation29_spill] sm:$0xff] %v6101_v62  ;;  %v6109_v11 = vpack.c.b16 %v962_v2, %v961_v1  ;;  %v784_v46 = vunpack.c.l.b16 %v413_v30  ;;  %v785_v47 = vunpack.c.l.b16 %v414_v31  ;;  %v416_v30 = vpack.c.bf16 %v4615_v14, %v4615_v14 }
  0x33   : > { %8833 = vst [vmem:[#allocation30_spill] sm:$0xff] %v6107_v3  ;;  %v963_v52 = vunpack.c.l.b16 %v442_v43  ;;  %v964_v53 = vunpack.c.l.b16 %v443_v45  ;;  %v444_v45 = vpack.c.bf16 %v4628_v17, %v4628_v17 }
  0x34   : > { %v6129_v61 = vpack.c.b16 %v785_v47, %v784_v46  ;;  %v445_v46 = vpack.c.bf16 %v4629_v22, %v4629_v22  ;;  %v4616_v22 = vld [vmem:[%s5859_s12 + $0x130] sm:$0xff] }
  0x36   : > { %8834 = vst [vmem:[#allocation31_spill] sm:$0xff] %v6129_v61 }
  0x3c   : > { %4656 = vmatmul.msk.bf16.gmra.mxu0 %vm507_vm1, %v5967_v40  ;;  %4662 = vmatmul.msk.bf16.gmra.mxu1 %vm507_vm1, %v5967_v40 }
  0x3d   : > { %4684 = vmatmul.msk.bf16.gmra.mxu2 %vm507_vm1, %v5969_v41  ;;  %4690 = vmatmul.msk.bf16.gmra.mxu3 %vm507_vm1, %v5969_v41 }
  0x4c   : > { %4657 = vmatmul.msk.bf16.gmra.mxu0 %vm507_vm1, %v5983_v59  ;;  %4663 = vmatmul.msk.bf16.gmra.mxu1 %vm507_vm1, %v5983_v59 }
  0x4d   : > { %4685 = vmatmul.msk.bf16.gmra.mxu2 %vm507_vm1, %v5985_v60  ;;  %4691 = vmatmul.msk.bf16.gmra.mxu3 %vm507_vm1, %v5985_v60 }
  0x5c   : > { %4658 = vmatmul.msk.bf16.gmra.mxu0 %vm507_vm1, %v5999_v12  ;;  %4664 = vmatmul.msk.bf16.gmra.mxu1 %vm507_vm1, %v5999_v12 }
  0x5d   : > { %4686 = vmatmul.msk.bf16.gmra.mxu2 %vm507_vm1, %v6001_v13  ;;  %4692 = vmatmul.msk.bf16.gmra.mxu3 %vm507_vm1, %v6001_v13 }
  0x6c   : > { %4659 = vmatmul.msk.bf16.gmra.mxu0 %vm507_vm1, %v6035_v50  ;;  %4665 = vmatmul.msk.bf16.gmra.mxu1 %vm507_vm1, %v6035_v50 }
  0x6d   : > { %4687 = vmatmul.msk.bf16.gmra.mxu2 %vm507_vm1, %v6037_v51  ;;  %4693 = vmatmul.msk.bf16.gmra.mxu3 %vm507_vm1, %v6037_v51 }
  0x7c   : > { %4714 = vmatmul.msk.bf16.vlgmr.msrb.gmra.mxu0 %vm507_vm1, %v6051_v4  ;;  %4720 = vmatmul.msk.bf16.vlgmr.msrb.gmra.mxu1 %vm507_vm1, %v6051_v4 }
  0x7d   : > { %4746 = vmatmul.msk.bf16.vlgmr.msrb.gmra.mxu2 %vm507_vm1, %v6053_v5  ;;  %4752 = vmatmul.msk.bf16.vlgmr.msrb.gmra.mxu3 %vm507_vm1, %v6053_v5 }
  0x7e   : > { %1420 = vmatpush.bf16.msrb.mxu2 %v5891_v49  ;;  %1459 = vmatpush.bf16.msrb.mxu3 %v5896_v55 }
  0x7f   : > { %1342 = vmatpush.bf16.msrb.mxu0 %v5821_v19  ;;  %1381 = vmatpush.bf16.msrb.mxu1 %v5824_v20 }
  0x82   : > { %1421 = vmatpush.bf16.msrb.mxu2 %v5949_v28  ;;  %1460 = vmatpush.bf16.msrb.mxu3 %v5958_v33 }
  0x83   : > { %1343 = vmatpush.bf16.msrb.mxu0 %v5836_v24  ;;  %1382 = vmatpush.bf16.msrb.mxu1 %v5844_v27 }
  0x8c   : > { %4715 = vmatmul.msk.bf16.gmra.mxu0 %vm507_vm1, %v6071_v34  ;;  %4721 = vmatmul.msk.bf16.gmra.mxu1 %vm507_vm1, %v6071_v34 }
  0x8d   : > { %4747 = vmatmul.msk.bf16.gmra.mxu2 %vm507_vm1, %v6073_v35  ;;  %4753 = vmatmul.msk.bf16.gmra.mxu3 %vm507_vm1, %v6073_v35 }
  0x99   : > { %v542_v8 = vpop.f32.mrf.mxu0  ;;  %v581_v9 = vpop.f32.mrf.mxu1 }
  0x9c   : > { %4716 = vmatmul.msk.bf16.gmra.mxu0 %vm507_vm1, %v6107_v3  ;;  %4722 = vmatmul.msk.bf16.gmra.mxu1 %vm507_vm1, %v6107_v3 }
  0x9d   : > { %4748 = vmatmul.msk.bf16.gmra.mxu2 %vm507_vm1, %v6109_v11  ;;  %4754 = vmatmul.msk.bf16.gmra.mxu3 %vm507_vm1, %v6109_v11 }
  0xa0   : > { %v692_v25 = vpop.f32.mrf.mxu2  ;;  %v731_v29 = vpop.f32.mrf.mxu3 }
  0xa1   : > { %v6125_v32 = vadd.f32 %v692_v25, %v542_v8  ;;  %v6127_v36 = vadd.f32 %v731_v29, %v581_v9  ;;  %v544_v38 = vpop.f32.mrf.mxu0  ;;  %v583_v39 = vpop.f32.mrf.mxu1  ;;  %v6135_v8 = vpack.c.b16 %v964_v53, %v963_v52  ;;  %v4614_v9 = vld [vmem:[%s5859_s12 + $0x120] sm:$0xff]  ;;  %v787_v52 = vunpack.c.l.b16 %v416_v30 }
  0xa2   : > { %v415_v29 = vpack.c.bf16 %v4614_v9, %v4614_v9  ;;  %v965_v53 = vunpack.c.l.b16 %v444_v45 }
  0xa3   : > { %8835 = vst [vmem:[#allocation32_spill] sm:$0xff] %v6135_v8 }
  0xa4   : > { %v786_v47 = vunpack.c.l.b16 %v415_v29  ;;  %v4631_v29 = vld [vmem:[%s5859_s12 + $0x1a8] sm:$0xff] }
  0xa6   : > { %v6153_v9 = vpack.c.b16 %v787_v52, %v786_v47 }
  0xa8   : > { %v694_v54 = vpop.f32.mrf.mxu2  ;;  %v733_v57 = vpop.f32.mrf.mxu3  ;;  %8836 = vst [vmem:[#allocation33_spill] sm:$0xff] %v6153_v9 }
  0xa9   : > { %v6131_v63 = vadd.f32 %v694_v54, %v544_v38  ;;  %v6133_v0 = vadd.f32 %v733_v57, %v583_v39  ;;  %v547_v1 = vpop.f32.mrf.mxu0  ;;  %v586_v2 = vpop.f32.mrf.mxu1  ;;  %v966_v54 = vunpack.c.l.b16 %v445_v46 }
  0xab   : > { %v6159_v17 = vpack.c.b16 %v966_v54, %v965_v53 }
  0xac   : > { %4717 = vmatmul.msk.bf16.gmra.mxu0 %vm507_vm1, %v6129_v61  ;;  %4723 = vmatmul.msk.bf16.gmra.mxu1 %vm507_vm1, %v6129_v61 }
  0xad   : > { %4749 = vmatmul.msk.bf16.gmra.mxu2 %vm507_vm1, %v6135_v8  ;;  %4755 = vmatmul.msk.bf16.gmra.mxu3 %vm507_vm1, %v6135_v8  ;;  %8837 = vst [vmem:[#allocation34_spill] sm:$0xff] %v6159_v17 }
  0xb0   : > { %v697_v23 = vpop.f32.mrf.mxu2  ;;  %v736_v25 = vpop.f32.mrf.mxu3 }
  0xb1   : > { %v6149_v31 = vadd.f32 %v697_v23, %v547_v1  ;;  %v6151_v38 = vadd.f32 %v736_v25, %v586_v2  ;;  %v549_v39 = vpop.f32.mrf.mxu0  ;;  %v588_v43 = vpop.f32.mrf.mxu1  ;;  %v4617_v25 = vld [vmem:[%s5859_s12 + $0x138] sm:$0xff] }
  0xb2   : > { %v418_v45 = vpack.c.bf16 %v4617_v25, %v4617_v25 }
  0xb4   : > { %v789_v55 = vunpack.c.l.b16 %v418_v45 }
  0xb8   : > { %v699_v57 = vpop.f32.mrf.mxu2  ;;  %v738_v33 = vpop.f32.mrf.mxu3 }
  0xb9   : > { %v6155_v1 = vadd.f32 %v699_v57, %v549_v39  ;;  %v6157_v2 = vadd.f32 %v738_v33, %v588_v43  ;;  %v552_v14 = vpop.f32.mrf.mxu0  ;;  %v591_v23 = vpop.f32.mrf.mxu1  ;;  %v4630_v33 = vld [vmem:[%s5859_s12 + $0x1a0] sm:$0xff]  ;;  %v417_v43 = vpack.c.bf16 %v4616_v22, %v4616_v22  ;;  %v447_v57 = vpack.c.bf16 %v4631_v29, %v4631_v29 }
  0xba   : > { %v446_v54 = vpack.c.bf16 %v4630_v33, %v4630_v33 }
  0xbb   : > { %v788_v28 = vunpack.c.l.b16 %v417_v43  ;;  %v968_v50 = vunpack.c.l.b16 %v447_v57 }
  0xbc   : > { %4718 = vmatmul.msk.bf16.gmra.mxu0 %vm507_vm1, %v6153_v9  ;;  %4724 = vmatmul.msk.bf16.gmra.mxu1 %vm507_vm1, %v6153_v9  ;;  %v967_v49 = vunpack.c.l.b16 %v446_v54 }
  0xbd   : > { %4750 = vmatmul.msk.bf16.gmra.mxu2 %vm507_vm1, %v6159_v17  ;;  %4756 = vmatmul.msk.bf16.gmra.mxu3 %vm507_vm1, %v6159_v17  ;;  %v6177_v8 = vpack.c.b16 %v789_v55, %v788_v28 }
  0xbf   : > { %8838 = vst [vmem:[#allocation35_spill] sm:$0xff] %v6177_v8 }
  0xc0   : > { %v702_v30 = vpop.f32.mrf.mxu2  ;;  %v741_v39 = vpop.f32.mrf.mxu3 }
  0xc1   : > { %v6173_v46 = vadd.f32 %v702_v30, %v552_v14  ;;  %v6175_v47 = vadd.f32 %v741_v39, %v591_v23  ;;  %v554_v52 = vpop.f32.mrf.mxu0  ;;  %v593_v53 = vpop.f32.mrf.mxu1  ;;  %v6183_v23 = vpack.c.b16 %v968_v50, %v967_v49 }
  0xc3   : > { %8839 = vst [vmem:[#allocation36_spill] sm:$0xff] %v6183_v23 }
  0xc8   : > { %v704_v17 = vpop.f32.mrf.mxu2  ;;  %v743_v12 = vpop.f32.mrf.mxu3 }
  0xc9   : > { %v6179_v59 = vadd.f32 %v704_v17, %v554_v52  ;;  %v6181_v22 = vadd.f32 %v743_v12, %v593_v53  ;;  %v557_v14 = vpop.f32.mrf.mxu0  ;;  %v596_v25 = vpop.f32.mrf.mxu1 }
  0xcc   : > { %4719 = vmatmul.msk.bf16.gmra.mxu0 %vm507_vm1, %v6177_v8  ;;  %4725 = vmatmul.msk.bf16.gmra.mxu1 %vm507_vm1, %v6177_v8 }
  0xcd   : > { %4751 = vmatmul.msk.bf16.gmra.mxu2 %vm507_vm1, %v6183_v23  ;;  %4757 = vmatmul.msk.bf16.gmra.mxu3 %vm507_vm1, %v6183_v23 }
  0xd0   : > { %v707_v55 = vpop.f32.mrf.mxu2  ;;  %v746_v28 = vpop.f32.mrf.mxu3 }
  0xd1   : > { %v6193_v12 = vadd.f32 %v707_v55, %v557_v14  ;;  %v6195_v17 = vadd.f32 %v746_v28, %v596_v25  ;;  %v559_v49 = vpop.f32.mrf.mxu0  ;;  %v598_v50 = vpop.f32.mrf.mxu1 }
  0xd8   : > { %v709_v33 = vpop.f32.mrf.mxu2  ;;  %v748_v29 = vpop.f32.mrf.mxu3 }
  0xd9   : > { %v6197_v30 = vadd.f32 %v709_v33, %v559_v49  ;;  %v6199_v39 = vadd.f32 %v748_v29, %v598_v50  ;;  %v562_v43 = vpop.f32.mrf.mxu0  ;;  %v601_v45 = vpop.f32.mrf.mxu1 }
  0xdc   : > { %4778 = vmatmul.msk.bf16.vlgmr.msra.gmra.mxu0 %vm507_vm1, %v5913_v7  ;;  %4784 = vmatmul.msk.bf16.vlgmr.msra.gmra.mxu1 %vm507_vm1, %v5913_v7 }
  0xdd   : > { %4790 = vmatmul.msk.bf16.vlgmr.msra.gmra.mxu2 %vm507_vm1, %v6051_v4  ;;  %4796 = vmatmul.msk.bf16.vlgmr.msra.gmra.mxu3 %vm507_vm1, %v6051_v4 }
  0xde   : > { %1632 = vmatpush.bf16.msra.mxu2 %v6028_v37  ;;  %1671 = vmatpush.bf16.msra.mxu3 %v6032_v42 }
  0xdf   : > { %1522 = vmatpush.bf16.msra.mxu0 %v5878_v44  ;;  %1561 = vmatpush.bf16.msra.mxu1 %v5888_v48 }
  0xe0   : > { %v712_v52 = vpop.f32.mrf.mxu2  ;;  %v751_v53 = vpop.f32.mrf.mxu3 }
  0xe1   : > { %v6213_v54 = vadd.f32 %v712_v52, %v562_v43  ;;  %v6215_v57 = vadd.f32 %v751_v53, %v601_v45  ;;  %v564_v14 = vpop.f32.mrf.mxu0  ;;  %v603_v25 = vpop.f32.mrf.mxu1 }
  0xe2   : > { %1633 = vmatpush.bf16.msra.mxu2 %v6096_v58  ;;  %1672 = vmatpush.bf16.msra.mxu3 %v6101_v62 }
  0xe3   : > { %1523 = vmatpush.bf16.msra.mxu0 %v5936_v18  ;;  %1562 = vmatpush.bf16.msra.mxu1 %v5947_v26 }
  0xe8   : > { %v714_v55 = vpop.f32.mrf.mxu2  ;;  %v753_v28 = vpop.f32.mrf.mxu3 }
  0xe9   : > { %v6221_v49 = vadd.f32 %v714_v55, %v564_v14  ;;  %v6223_v50 = vadd.f32 %v753_v28, %v603_v25  ;;  %v567_v33 = vpop.f32.mrf.mxu0  ;;  %v606_v29 = vpop.f32.mrf.mxu1 }
  0xec   : > { %4779 = vmatmul.msk.bf16.gmra.mxu0 %vm507_vm1, %v5969_v41  ;;  %4785 = vmatmul.msk.bf16.gmra.mxu1 %vm507_vm1, %v5969_v41 }
  0xed   : > { %4791 = vmatmul.msk.bf16.gmra.mxu2 %vm507_vm1, %v6071_v34  ;;  %4797 = vmatmul.msk.bf16.gmra.mxu3 %vm507_vm1, %v6071_v34 }
  0xf0   : > { %v717_v43 = vpop.f32.mrf.mxu2  ;;  %v756_v45 = vpop.f32.mrf.mxu3 }
  0xf1   : > { %v6233_v52 = vadd.f32 %v717_v43, %v567_v33  ;;  %v6235_v53 = vadd.f32 %v756_v45, %v606_v29  ;;  %v569_v14 = vpop.f32.mrf.mxu0  ;;  %v608_v25 = vpop.f32.mrf.mxu1 }
  0xf8   : > { %v719_v55 = vpop.f32.mrf.mxu2  ;;  %v758_v28 = vpop.f32.mrf.mxu3 }
  0xf9   : > { %v6237_v62 = vadd.f32 %v719_v55, %v569_v14  ;;  %v6239_v58 = vadd.f32 %v758_v28, %v608_v25  ;;  %v847_v42 = vpop.f32.mrf.mxu0  ;;  %v886_v37 = vpop.f32.mrf.mxu1 }
  0xfa   : > { %v916_v4 = vadd.f32 %v847_v42, %v6125_v32  ;;  %v917_v34 = vadd.f32 %v886_v37, %v6127_v36 }
  0xfc   : > { %4780 = vmatmul.msk.bf16.gmra.mxu0 %vm507_vm1, %v5985_v60  ;;  %4786 = vmatmul.msk.bf16.gmra.mxu1 %vm507_vm1, %v5985_v60 }
  0xfd   : > { %4792 = vmatmul.msk.bf16.gmra.mxu2 %vm507_vm1, %v6107_v3  ;;  %4798 = vmatmul.msk.bf16.gmra.mxu3 %vm507_vm1, %v6107_v3 }
 0x100   : > { %v1026_v33 = vpop.f32.mrf.mxu2  ;;  %v1065_v29 = vpop.f32.mrf.mxu3 }
 0x101   : > { %v6251_v43 = vadd.f32 %v1026_v33, %v916_v4  ;;  %v6253_v45 = vadd.f32 %v1065_v29, %v917_v34  ;;  %v849_v42 = vpop.f32.mrf.mxu0  ;;  %v888_v37 = vpop.f32.mrf.mxu1 }
 0x102   : > { %v918_v32 = vadd.f32 %v849_v42, %v6131_v63  ;;  %v919_v36 = vadd.f32 %v888_v37, %v6133_v0 }
 0x108   : > { %v1028_v14 = vpop.f32.mrf.mxu2  ;;  %v1067_v25 = vpop.f32.mrf.mxu3 }
 0x109   : > { %v6257_v55 = vadd.f32 %v1028_v14, %v918_v32  ;;  %v6259_v28 = vadd.f32 %v1067_v25, %v919_v36  ;;  %v852_v60 = vpop.f32.mrf.mxu0  ;;  %v891_v3 = vpop.f32.mrf.mxu1 }
 0x10a   : > { %v920_v41 = vadd.f32 %v852_v60, %v6149_v31  ;;  %v921_v4 = vadd.f32 %v891_v3, %v6151_v38 }
 0x10c   : > { %4781 = vmatmul.msk.bf16.gmra.mxu0 %vm507_vm1, %v6001_v13  ;;  %4787 = vmatmul.msk.bf16.gmra.mxu1 %vm507_vm1, %v6001_v13 }
 0x10d   : > { %4793 = vmatmul.msk.bf16.gmra.mxu2 %vm507_vm1, %v6129_v61  ;;  %4799 = vmatmul.msk.bf16.gmra.mxu3 %vm507_vm1, %v6129_v61 }
 0x110   : > { %v1031_v34 = vpop.f32.mrf.mxu2  ;;  %v1070_v63 = vpop.f32.mrf.mxu3 }
 0x111   : > { %v6271_v0 = vadd.f32 %v1031_v34, %v920_v41  ;;  %v6273_v33 = vadd.f32 %v1070_v63, %v921_v4  ;;  %v854_v60 = vpop.f32.mrf.mxu0  ;;  %v893_v3 = vpop.f32.mrf.mxu1 }
 0x112   : > { %v922_v31 = vadd.f32 %v854_v60, %v6155_v1  ;;  %v923_v38 = vadd.f32 %v893_v3, %v6157_v2  ;;  %v347_v1 = vld [vmem:[%s5859_s12 + $0x60] sm:$0xff]  ;;  %v348_v2 = vld [vmem:[%s5859_s12 + $0x68] sm:$0xff] }
 0x113   : > { %v361_v63 = vpack.c.bf16 %v347_v1, %v347_v1 }
 0x118   : > { %v1033_v29 = vpop.f32.mrf.mxu2  ;;  %v1072_v42 = vpop.f32.mrf.mxu3 }
 0x119   : > { %v6277_v37 = vadd.f32 %v1033_v29, %v922_v31  ;;  %v6279_v32 = vadd.f32 %v1072_v42, %v923_v38  ;;  %v857_v36 = vpop.f32.mrf.mxu0  ;;  %v896_v14 = vpop.f32.mrf.mxu1  ;;  %v1126_v42 = vunpack.c.l.b16 %v361_v63 }
 0x11a   : > { %v924_v41 = vadd.f32 %v857_v36, %v6173_v46  ;;  %v925_v25 = vadd.f32 %v896_v14, %v6175_v47  ;;  %v362_v46 = vpack.c.bf16 %v348_v2, %v348_v2 }
 0x11c   : > { %4782 = vmatmul.msk.bf16.gmra.mxu0 %vm507_vm1, %v6037_v51  ;;  %4788 = vmatmul.msk.bf16.gmra.mxu1 %vm507_vm1, %v6037_v51  ;;  %v1127_v36 = vunpack.c.l.b16 %v362_v46 }
 0x11d   : > { %4794 = vmatmul.msk.bf16.gmra.mxu2 %vm507_vm1, %v6153_v9  ;;  %4800 = vmatmul.msk.bf16.gmra.mxu3 %vm507_vm1, %v6153_v9 }
 0x11e   : > { %v6299_v61 = vpack.c.b16 %v1127_v36, %v1126_v42 }
 0x120   : > { %v1036_v4 = vpop.f32.mrf.mxu2  ;;  %v1075_v34 = vpop.f32.mrf.mxu3 }
 0x121   : > { %v6293_v60 = vadd.f32 %v1036_v4, %v924_v41  ;;  %v6295_v47 = vadd.f32 %v1075_v34, %v925_v25  ;;  %v859_v3 = vpop.f32.mrf.mxu0  ;;  %v898_v31 = vpop.f32.mrf.mxu1 }
 0x122   : > { %v926_v38 = vadd.f32 %v859_v3, %v6179_v59  ;;  %v927_v29 = vadd.f32 %v898_v31, %v6181_v22 }
 0x128   : > { %v1038_v14 = vpop.f32.mrf.mxu2  ;;  %v1077_v9 = vpop.f32.mrf.mxu3 }
 0x129   : > { %v6301_v51 = vadd.f32 %v1038_v14, %v926_v38  ;;  %v6303_v1 = vadd.f32 %v1077_v9, %v927_v29  ;;  %v862_v41 = vpop.f32.mrf.mxu0  ;;  %v901_v2 = vpop.f32.mrf.mxu1 }
 0x12a   : > { %v928_v25 = vadd.f32 %v862_v41, %v6193_v12  ;;  %v929_v4 = vadd.f32 %v901_v2, %v6195_v17 }
 0x12c   : > { %4783 = vmatmul.msk.bf16.gmra.mxu0 %vm507_vm1, %v6299_v61  ;;  %4789 = vmatmul.msk.bf16.gmra.mxu1 %vm507_vm1, %v6299_v61 }
 0x12d   : > { %4795 = vmatmul.msk.bf16.gmra.mxu2 %vm507_vm1, %v6177_v8  ;;  %4801 = vmatmul.msk.bf16.gmra.mxu3 %vm507_vm1, %v6177_v8 }
 0x130   : > { %v1041_v59 = vpop.f32.mrf.mxu2  ;;  %v1080_v9 = vpop.f32.mrf.mxu3 }
 0x131   : > { %v6315_v22 = vadd.f32 %v1041_v59, %v928_v25  ;;  %v6317_v34 = vadd.f32 %v1080_v9, %v929_v4  ;;  %v864_v12 = vpop.f32.mrf.mxu0  ;;  %v903_v17 = vpop.f32.mrf.mxu1 }
 0x132   : > { %v930_v63 = vadd.f32 %v864_v12, %v6197_v30  ;;  %v931_v46 = vadd.f32 %v903_v17, %v6199_v39 }
 0x138   : > { %v1043_v3 = vpop.f32.mrf.mxu2  ;;  %v1082_v31 = vpop.f32.mrf.mxu3 }
 0x139   : > { %v6321_v38 = vadd.f32 %v1043_v3, %v930_v63  ;;  %v6323_v29 = vadd.f32 %v1082_v31, %v931_v46  ;;  %v867_v42 = vpop.f32.mrf.mxu0  ;;  %v906_v36 = vpop.f32.mrf.mxu1 }
 0x13a   : > { %v932_v14 = vadd.f32 %v867_v42, %v6213_v54  ;;  %v933_v41 = vadd.f32 %v906_v36, %v6215_v57 }
 0x13c   : > { %4802 = vmatmul.msk.bf16.vlgmr.msrb.gmra.mxu0 %vm507_vm1, %v5898_v56  ;;  %4808 = vmatmul.msk.bf16.vlgmr.msrb.gmra.mxu1 %vm507_vm1, %v5898_v56 }
 0x13d   : > { %4814 = vmatmul.msk.bf16.vlgmr.msrb.gmra.mxu2 %vm507_vm1, %v6053_v5  ;;  %4820 = vmatmul.msk.bf16.vlgmr.msrb.gmra.mxu3 %vm507_vm1, %v6053_v5 }
 0x13e   : > { %1888 = vmatpush.bf16.msrb.mxu2 %v5821_v19  ;;  %1927 = vmatpush.bf16.msrb.mxu3 %v5824_v20 }
 0x13f   : > { %1810 = vmatpush.bf16.msrb.mxu0 %v5796_v10  ;;  %1849 = vmatpush.bf16.msrb.mxu1 %v5809_v15 }
 0x140   : > { %v1046_v30 = vpop.f32.mrf.mxu2  ;;  %v1085_v39 = vpop.f32.mrf.mxu3 }
 0x141   : > { %v6339_v54 = vadd.f32 %v1046_v30, %v932_v14  ;;  %v6341_v57 = vadd.f32 %v1085_v39, %v933_v41  ;;  %v869_v56 = vpop.f32.mrf.mxu0  ;;  %v908_v2 = vpop.f32.mrf.mxu1 }
 0x142   : > { %v934_v25 = vadd.f32 %v869_v56, %v6221_v49  ;;  %v935_v4 = vadd.f32 %v908_v2, %v6223_v50  ;;  %1889 = vmatpush.bf16.msrb.mxu2 %v5836_v24  ;;  %1928 = vmatpush.bf16.msrb.mxu3 %v5844_v27  ;;  %v8844_v27 = vld [vmem:[#allocation20_spill] sm:$0xff] }
 0x143   : > { %1811 = vmatpush.bf16.msrb.mxu0 %v5811_v16  ;;  %1850 = vmatpush.bf16.msrb.mxu1 %v5826_v21 }
 0x148   : > { %v1048_v59 = vpop.f32.mrf.mxu2  ;;  %v1087_v9 = vpop.f32.mrf.mxu3 }
 0x149   : > { %v6349_v12 = vadd.f32 %v1048_v59, %v934_v25  ;;  %v6351_v17 = vadd.f32 %v1087_v9, %v935_v4  ;;  %v872_v63 = vpop.f32.mrf.mxu0  ;;  %v911_v46 = vpop.f32.mrf.mxu1 }
 0x14a   : > { %v936_v49 = vadd.f32 %v872_v63, %v6233_v52  ;;  %v937_v50 = vadd.f32 %v911_v46, %v6235_v53 }
 0x14c   : > { %4803 = vmatmul.msk.bf16.gmra.mxu0 %vm507_vm1, %v5911_v6  ;;  %4809 = vmatmul.msk.bf16.gmra.mxu1 %vm507_vm1, %v5911_v6 }
 0x14d   : > { %4815 = vmatmul.msk.bf16.gmra.mxu2 %vm507_vm1, %v6073_v35  ;;  %4821 = vmatmul.msk.bf16.gmra.mxu3 %vm507_vm1, %v6073_v35 }
 0x150   : > { %v1051_v3 = vpop.f32.mrf.mxu2  ;;  %v1090_v31 = vpop.f32.mrf.mxu3 }
 0x151   : > { %v6363_v42 = vadd.f32 %v1051_v3, %v936_v49  ;;  %v6365_v36 = vadd.f32 %v1090_v31, %v937_v50  ;;  %v874_v52 = vpop.f32.mrf.mxu0  ;;  %v913_v53 = vpop.f32.mrf.mxu1 }
 0x152   : > { %v938_v14 = vadd.f32 %v874_v52, %v6237_v62  ;;  %v939_v41 = vadd.f32 %v913_v53, %v6239_v58 }
 0x158   : > { %v1053_v30 = vpop.f32.mrf.mxu2  ;;  %v1092_v39 = vpop.f32.mrf.mxu3 }
 0x159   : > { %v6369_v56 = vadd.f32 %v1053_v30, %v938_v14  ;;  %v6371_v2 = vadd.f32 %v1092_v39, %v939_v41  ;;  %v1165_v25 = vpop.f32.mrf.mxu0  ;;  %v1204_v4 = vpop.f32.mrf.mxu1  ;;  %v8840_v14 = vld [vmem:[#allocation18_spill] sm:$0xff] }
 0x15a   : > { %v6374_v59 = vadd.f32 %v1165_v25, %v6251_v43  ;;  %v6377_v9 = vadd.f32 %v1204_v4, %v6253_v45 }
 0x15c   : > { %4804 = vmatmul.msk.bf16.gmra.mxu0 %vm507_vm1, %v5967_v40  ;;  %4810 = vmatmul.msk.bf16.gmra.mxu1 %vm507_vm1, %v5967_v40 }
 0x15d   : > { %4816 = vmatmul.msk.bf16.gmra.mxu2 %vm507_vm1, %v6109_v11  ;;  %4822 = vmatmul.msk.bf16.gmra.mxu3 %vm507_vm1, %v6109_v11 }
 0x160   : > { %v6387_v58 = vpop.f32.mrf.mxu2  ;;  %v6389_v62 = vpop.f32.mrf.mxu3 }
 0x161   : > { %v1167_v43 = vpop.f32.mrf.mxu0  ;;  %v1206_v63 = vpop.f32.mrf.mxu1 }
 0x162   : > { %v6392_v45 = vadd.f32 %v1167_v43, %v6257_v55  ;;  %v6395_v46 = vadd.f32 %v1206_v63, %v6259_v28  ;;  %v8841_v55 = vld [vmem:[#allocation32_spill] sm:$0xff] }
 0x168   : > { %v6397_v49 = vpop.f32.mrf.mxu2  ;;  %v6399_v50 = vpop.f32.mrf.mxu3 }
 0x169   : > { %v1170_v3 = vpop.f32.mrf.mxu0  ;;  %v1209_v31 = vpop.f32.mrf.mxu1 }
 0x16a   : > { %v6402_v52 = vadd.f32 %v1170_v3, %v6271_v0  ;;  %v6405_v53 = vadd.f32 %v1209_v31, %v6273_v33 }
 0x16c   : > { %4805 = vmatmul.msk.bf16.gmra.mxu0 %vm507_vm1, %v8840_v14  ;;  %4811 = vmatmul.msk.bf16.gmra.mxu1 %vm507_vm1, %v8840_v14 }
 0x16d   : > { %4817 = vmatmul.msk.bf16.gmra.mxu2 %vm507_vm1, %v8841_v55  ;;  %4823 = vmatmul.msk.bf16.gmra.mxu3 %vm507_vm1, %v8841_v55 }
 0x170   : > { %v6415_v28 = vpop.f32.mrf.mxu2  ;;  %v6417_v41 = vpop.f32.mrf.mxu3 }
 0x171   : > { %v1172_v0 = vpop.f32.mrf.mxu0  ;;  %v1211_v30 = vpop.f32.mrf.mxu1 }
 0x172   : > { %v6420_v33 = vadd.f32 %v1172_v0, %v6277_v37  ;;  %v6423_v39 = vadd.f32 %v1211_v30, %v6279_v32  ;;  %v8845_v37 = vld [vmem:[#allocation34_spill] sm:$0xff] }
 0x178   : > { %v6425_v25 = vpop.f32.mrf.mxu2  ;;  %v6427_v4 = vpop.f32.mrf.mxu3 }
 0x179   : > { %v1175_v43 = vpop.f32.mrf.mxu0  ;;  %v1214_v63 = vpop.f32.mrf.mxu1 }
 0x17a   : > { %v6430_v3 = vadd.f32 %v1175_v43, %v6293_v60  ;;  %v6433_v31 = vadd.f32 %v1214_v63, %v6295_v47 }
 0x17c   : > { %8842 = vst [vmem:[#allocation32_spill] sm:$0xff] %v6430_v3  ;;  %4806 = vmatmul.msk.bf16.gmra.mxu0 %vm507_vm1, %v8844_v27  ;;  %4812 = vmatmul.msk.bf16.gmra.mxu1 %vm507_vm1, %v8844_v27  ;;  %v8849_v3 = vld [vmem:[#allocation24_spill] sm:$0xff] }
 0x17d   : > { %8843 = vst [vmem:[#allocation37_spill] sm:$0xff] %v6433_v31  ;;  %4818 = vmatmul.msk.bf16.gmra.mxu2 %vm507_vm1, %v8845_v37  ;;  %4824 = vmatmul.msk.bf16.gmra.mxu3 %vm507_vm1, %v8845_v37 }
 0x180   : > { %v6443_v32 = vpop.f32.mrf.mxu2  ;;  %v6445_v0 = vpop.f32.mrf.mxu3 }
 0x181   : > { %v1177_v60 = vpop.f32.mrf.mxu0  ;;  %v1216_v30 = vpop.f32.mrf.mxu1 }
 0x182   : > { %v6448_v47 = vadd.f32 %v1177_v60, %v6301_v51  ;;  %v6451_v43 = vadd.f32 %v1216_v30, %v6303_v1 }
 0x184   : > { %8846 = vst [vmem:[#allocation34_spill] sm:$0xff] %v6451_v43 }
 0x188   : > { %v6453_v63 = vpop.f32.mrf.mxu2  ;;  %v6455_v24 = vpop.f32.mrf.mxu3 }
 0x189   : > { %v1180_v20 = vpop.f32.mrf.mxu0  ;;  %v1219_v19 = vpop.f32.mrf.mxu1 }
 0x18a   : > { %v6458_v8 = vadd.f32 %v1180_v20, %v6315_v22  ;;  %v6461_v31 = vadd.f32 %v1219_v19, %v6317_v34 }
 0x18c   : > { %8847 = vst [vmem:[#allocation38_spill] sm:$0xff] %v6458_v8  ;;  %4807 = vmatmul.msk.bf16.gmra.mxu0 %vm507_vm1, %v8849_v3  ;;  %4813 = vmatmul.msk.bf16.gmra.mxu1 %vm507_vm1, %v8849_v3 }
 0x18d   : > { %8848 = vst [vmem:[#allocation39_spill] sm:$0xff] %v6461_v31  ;;  %4819 = vmatmul.msk.bf16.gmra.mxu2 %vm507_vm1, %v6183_v23  ;;  %4825 = vmatmul.msk.bf16.gmra.mxu3 %vm507_vm1, %v6183_v23 }
 0x190   : > { %v6471_v51 = vpop.f32.mrf.mxu2  ;;  %v6473_v1 = vpop.f32.mrf.mxu3 }
 0x191   : > { %v1182_v20 = vpop.f32.mrf.mxu0  ;;  %v1221_v22 = vpop.f32.mrf.mxu1 }
 0x192   : > { %v6476_v19 = vadd.f32 %v1182_v20, %v6321_v38  ;;  %v6479_v34 = vadd.f32 %v1221_v22, %v6323_v29  ;;  %v8852_v38 = vld [vmem:[#allocation8_spill] sm:$0xff] }
 0x198   : > { %v6481_v60 = vpop.f32.mrf.mxu2  ;;  %v6483_v30 = vpop.f32.mrf.mxu3 }
 0x199   : > { %v1185_v31 = vpop.f32.mrf.mxu0  ;;  %v1224_v8 = vpop.f32.mrf.mxu1 }
 0x19a   : > { %v6486_v23 = vadd.f32 %v1185_v31, %v6339_v54  ;;  %v6489_v43 = vadd.f32 %v1224_v8, %v6341_v57  ;;  %v8853_v8 = vld [vmem:[#allocation9_spill] sm:$0xff] }
 0x19c   : > { %8850 = vst [vmem:[#allocation40_spill] sm:$0xff] %v6486_v23  ;;  %4826 = vmatmul.msk.bf16.vlgmr.msra.gmra.mxu0 %vm507_vm1, %v5913_v7  ;;  %4832 = vmatmul.msk.bf16.vlgmr.msra.gmra.mxu1 %vm507_vm1, %v5913_v7 }
 0x19d   : > { %8851 = vst [vmem:[#allocation41_spill] sm:$0xff] %v6489_v43  ;;  %4838 = vmatmul.msk.bf16.vlgmr.msra.gmra.mxu2 %vm507_vm1, %v5911_v6  ;;  %4844 = vmatmul.msk.bf16.vlgmr.msra.gmra.mxu3 %vm507_vm1, %v5911_v6 }
 0x19e   : > { %2068 = vmatpush.bf16.msra.mxu2 %v5878_v44  ;;  %2107 = vmatpush.bf16.msra.mxu3 %v5888_v48  ;;  %v8856_v48 = vld [vmem:[#allocation14_spill] sm:$0xff]  ;;  %v8857_v44 = vld [vmem:[#allocation15_spill] sm:$0xff] }
 0x19f   : > { %1966 = vmatpush.bf16.msra.mxu0 %v8852_v38  ;;  %2005 = vmatpush.bf16.msra.mxu1 %v8853_v8 }
 0x1a0   : > { %v6503_v29 = vpop.f32.mrf.mxu2  ;;  %v6505_v54 = vpop.f32.mrf.mxu3 }
 0x1a1   : > { %v1187_v57 = vpop.f32.mrf.mxu0  ;;  %v1226_v31 = vpop.f32.mrf.mxu1 }
 0x1a2   : > { %v6508_v20 = vadd.f32 %v1187_v57, %v6349_v12  ;;  %v6511_v22 = vadd.f32 %v1226_v31, %v6351_v17  ;;  %2069 = vmatpush.bf16.msra.mxu2 %v5936_v18  ;;  %2108 = vmatpush.bf16.msra.mxu3 %v5947_v26  ;;  %v8860_v57 = vld [vmem:[#allocation17_spill] sm:$0xff] }
 0x1a3   : > { %1967 = vmatpush.bf16.msra.mxu0 %v8856_v48  ;;  %2006 = vmatpush.bf16.msra.mxu1 %v8857_v44 }
 0x1a4   : > { %8854 = vst [vmem:[#allocation42_spill] sm:$0xff] %v6508_v20 }
 0x1a5   : > { %8855 = vst [vmem:[#allocation43_spill] sm:$0xff] %v6511_v22  ;;  %v8863_v22 = vld [vmem:[#allocation19_spill] sm:$0xff] }
 0x1a8   : > { %v6517_v43 = vpop.f32.mrf.mxu2  ;;  %v6519_v23 = vpop.f32.mrf.mxu3 }
 0x1a9   : > { %v1190_v8 = vpop.f32.mrf.mxu0  ;;  %v1229_v38 = vpop.f32.mrf.mxu1 }
 0x1aa   : > { %v6522_v12 = vadd.f32 %v1190_v8, %v6363_v42  ;;  %v6525_v17 = vadd.f32 %v1229_v38, %v6365_v36 }
 0x1ac   : > { %8858 = vst [vmem:[#allocation44_spill] sm:$0xff] %v6522_v12  ;;  %4827 = vmatmul.msk.bf16.gmra.mxu0 %vm507_vm1, %v8860_v57  ;;  %4833 = vmatmul.msk.bf16.gmra.mxu1 %vm507_vm1, %v8860_v57 }
 0x1ad   : > { %8859 = vst [vmem:[#allocation45_spill] sm:$0xff] %v6525_v17  ;;  %4839 = vmatmul.msk.bf16.gmra.mxu2 %vm507_vm1, %v5967_v40  ;;  %4845 = vmatmul.msk.bf16.gmra.mxu3 %vm507_vm1, %v5967_v40 }
 0x1b0   : > { %v6535_v31 = vpop.f32.mrf.mxu2  ;;  %v6537_v26 = vpop.f32.mrf.mxu3 }
 0x1b1   : > { %v1192_v42 = vpop.f32.mrf.mxu0  ;;  %v1231_v8 = vpop.f32.mrf.mxu1 }
 0x1b2   : > { %v6540_v36 = vadd.f32 %v1192_v42, %v6369_v56  ;;  %v6543_v38 = vadd.f32 %v1231_v8, %v6371_v2 }
 0x1b4   : > { %8861 = vst [vmem:[#allocation46_spill] sm:$0xff] %v6540_v36 }
 0x1b5   : > { %8862 = vst [vmem:[#allocation47_spill] sm:$0xff] %v6543_v38 }
 0x1b8   : > { %v6545_v18 = vpop.f32.mrf.mxu2  ;;  %v6547_v17 = vpop.f32.mrf.mxu3 }
 0x1b9   : > { %v1345_v12 = vpop.f32.mrf.mxu0  ;;  %v1384_v57 = vpop.f32.mrf.mxu1 }
 0x1ba   : > { %v1346_v56 = vadd.f32 %v1345_v12, %v6387_v58  ;;  %v1385_v2 = vadd.f32 %v1384_v57, %v6389_v62 }
 0x1bc   : > { %4828 = vmatmul.msk.bf16.gmra.mxu0 %vm507_vm1, %v8863_v22  ;;  %4834 = vmatmul.msk.bf16.gmra.mxu1 %vm507_vm1, %v8863_v22 }
 0x1bd   : > { %4840 = vmatmul.msk.bf16.gmra.mxu2 %vm507_vm1, %v8840_v14  ;;  %4846 = vmatmul.msk.bf16.gmra.mxu3 %vm507_vm1, %v8840_v14 }
 0x1c0   : > { %v1423_v42 = vpop.f32.mrf.mxu2  ;;  %v1462_v8 = vpop.f32.mrf.mxu3 }
 0x1c1   : > { %v6559_v38 = vadd.f32 %v1423_v42, %v1346_v56  ;;  %v6561_v36 = vadd.f32 %v1462_v8, %v1385_v2  ;;  %v1347_v40 = vpop.f32.mrf.mxu0  ;;  %v1386_v20 = vpop.f32.mrf.mxu1 }
 0x1c2   : > { %v1348_v22 = vadd.f32 %v1347_v40, %v6397_v49  ;;  %v1387_v44 = vadd.f32 %v1386_v20, %v6399_v50 }
 0x1c8   : > { %v1425_v48 = vpop.f32.mrf.mxu2  ;;  %v1464_v6 = vpop.f32.mrf.mxu3 }
 0x1c9   : > { %v6565_v7 = vadd.f32 %v1425_v48, %v1348_v22  ;;  %v6567_v14 = vadd.f32 %v1464_v6, %v1387_v44  ;;  %v1350_v58 = vpop.f32.mrf.mxu0  ;;  %v1389_v62 = vpop.f32.mrf.mxu1 }
 0x1ca   : > { %v1351_v40 = vadd.f32 %v1350_v58, %v6415_v28  ;;  %v1390_v48 = vadd.f32 %v1389_v62, %v6417_v41  ;;  %v8864_v58 = vld [vmem:[#allocation25_spill] sm:$0xff] }
 0x1cc   : > { %4829 = vmatmul.msk.bf16.gmra.mxu0 %vm507_vm1, %v6001_v13  ;;  %4835 = vmatmul.msk.bf16.gmra.mxu1 %vm507_vm1, %v6001_v13 }
 0x1cd   : > { %4841 = vmatmul.msk.bf16.gmra.mxu2 %vm507_vm1, %v8844_v27  ;;  %4847 = vmatmul.msk.bf16.gmra.mxu3 %vm507_vm1, %v8844_v27 }
 0x1d0   : > { %v1428_v44 = vpop.f32.mrf.mxu2  ;;  %v1467_v6 = vpop.f32.mrf.mxu3 }
 0x1d1   : > { %v6579_v49 = vadd.f32 %v1428_v44, %v1351_v40  ;;  %v6581_v50 = vadd.f32 %v1467_v6, %v1390_v48  ;;  %v1352_v20 = vpop.f32.mrf.mxu0  ;;  %v1391_v22 = vpop.f32.mrf.mxu1 }
 0x1d2   : > { %v1353_v12 = vadd.f32 %v1352_v20, %v6425_v25  ;;  %v1392_v57 = vadd.f32 %v1391_v22, %v6427_v4  ;;  %v4604_v25 = vld [vmem:[%s5859_s12 + $0xd0] sm:$0xff]  ;;  %v4605_v4 = vld [vmem:[%s5859_s12 + $0xd8] sm:$0xff] }
 0x1d8   : > { %v1430_v56 = vpop.f32.mrf.mxu2  ;;  %v1469_v2 = vpop.f32.mrf.mxu3 }
 0x1d9   : > { %v6585_v42 = vadd.f32 %v1430_v56, %v1353_v12  ;;  %v6587_v28 = vadd.f32 %v1469_v2, %v1392_v57  ;;  %v1355_v41 = vpop.f32.mrf.mxu0  ;;  %v1394_v8 = vpop.f32.mrf.mxu1  ;;  %v390_v57 = vpack.c.bf16 %v4604_v25, %v4604_v25  ;;  %v391_v56 = vpack.c.bf16 %v4605_v4, %v4605_v4 }
 0x1da   : > { %v1356_v62 = vadd.f32 %v1355_v41, %v6443_v32  ;;  %v1395_v40 = vadd.f32 %v1394_v8, %v6445_v0 }
 0x1db   : > { %v1620_v2 = vunpack.c.l.b16 %v390_v57 }
 0x1dc   : > { %4830 = vmatmul.msk.bf16.gmra.mxu0 %vm507_vm1, %v8864_v58  ;;  %4836 = vmatmul.msk.bf16.gmra.mxu1 %vm507_vm1, %v8864_v58  ;;  %v1621_v58 = vunpack.c.l.b16 %v391_v56 }
 0x1dd   : > { %4842 = vmatmul.msk.bf16.gmra.mxu2 %vm507_vm1, %v8849_v3  ;;  %4848 = vmatmul.msk.bf16.gmra.mxu3 %vm507_vm1, %v8849_v3 }
 0x1e0   : > { %v1433_v48 = vpop.f32.mrf.mxu2  ;;  %v1472_v44 = vpop.f32.mrf.mxu3 }
 0x1e1   : > { %v6601_v6 = vadd.f32 %v1433_v48, %v1356_v62  ;;  %v6603_v20 = vadd.f32 %v1472_v44, %v1395_v40  ;;  %v1357_v22 = vpop.f32.mrf.mxu0  ;;  %v1396_v12 = vpop.f32.mrf.mxu1  ;;  %v6611_v40 = vpack.c.b16 %v1621_v58, %v1620_v2  ;;  %v8865_v2 = vld [vmem:[#allocation26_spill] sm:$0xff] }
 0x1e2   : > { %v1358_v3 = vadd.f32 %v1357_v22, %v6453_v63  ;;  %v1397_v27 = vadd.f32 %v1396_v12, %v6455_v24 }
 0x1e8   : > { %v1435_v13 = vpop.f32.mrf.mxu2  ;;  %v1474_v32 = vpop.f32.mrf.mxu3 }
 0x1e9   : > { %v6607_v41 = vadd.f32 %v1435_v13, %v1358_v3  ;;  %v6609_v0 = vadd.f32 %v1474_v32, %v1397_v27  ;;  %v1360_v8 = vpop.f32.mrf.mxu0  ;;  %v1399_v62 = vpop.f32.mrf.mxu1  ;;  %v8866_v32 = vld [vmem:[#allocation22_spill] sm:$0xff] }
 0x1ea   : > { %v1361_v24 = vadd.f32 %v1360_v8, %v6471_v51  ;;  %v1400_v27 = vadd.f32 %v1399_v62, %v6473_v1  ;;  %v8867_v8 = vld [vmem:[#allocation23_spill] sm:$0xff] }
 0x1ec   : > { %4831 = vmatmul.msk.bf16.gmra.mxu0 %vm507_vm1, %v6299_v61  ;;  %4837 = vmatmul.msk.bf16.gmra.mxu1 %vm507_vm1, %v6299_v61 }
 0x1ed   : > { %4843 = vmatmul.msk.bf16.gmra.mxu2 %vm507_vm1, %v6611_v40  ;;  %4849 = vmatmul.msk.bf16.gmra.mxu3 %vm507_vm1, %v6611_v40 }
 0x1f0   : > { %v1438_v13 = vpop.f32.mrf.mxu2  ;;  %v1477_v3 = vpop.f32.mrf.mxu3 }
 0x1f1   : > { %v6623_v63 = vadd.f32 %v1438_v13, %v1361_v24  ;;  %v6625_v58 = vadd.f32 %v1477_v3, %v1400_v27  ;;  %v1362_v25 = vpop.f32.mrf.mxu0  ;;  %v1401_v4 = vpop.f32.mrf.mxu1 }
 0x1f2   : > { %v1363_v48 = vadd.f32 %v1362_v25, %v6481_v60  ;;  %v1402_v44 = vadd.f32 %v1401_v4, %v6483_v30 }
 0x1f8   : > { %v1440_v22 = vpop.f32.mrf.mxu2  ;;  %v1479_v12 = vpop.f32.mrf.mxu3 }
 0x1f9   : > { %v6629_v57 = vadd.f32 %v1440_v22, %v1363_v48  ;;  %v6631_v56 = vadd.f32 %v1479_v12, %v1402_v44  ;;  %v1365_v51 = vpop.f32.mrf.mxu0  ;;  %v1404_v1 = vpop.f32.mrf.mxu1 }
 0x1fa   : > { %v1366_v60 = vadd.f32 %v1365_v51, %v6503_v29  ;;  %v1405_v30 = vadd.f32 %v1404_v1, %v6505_v54 }
 0x1fc   : > { %4850 = vmatmul.msk.bf16.vlgmr.msrb.gmra.mxu0 %vm507_vm1, %v6053_v5  ;;  %4856 = vmatmul.msk.bf16.vlgmr.msrb.gmra.mxu1 %vm507_vm1, %v6053_v5 }
 0x1fd   : > { %4862 = vmatmul.msk.bf16.vlgmr.msrb.gmra.mxu2 %vm507_vm1, %v8865_v2  ;;  %4868 = vmatmul.msk.bf16.vlgmr.msrb.gmra.mxu3 %vm507_vm1, %v8865_v2 }
 0x1fe   : > { %2280 = vmatpush.bf16.msrb.mxu2 %v5796_v10  ;;  %2319 = vmatpush.bf16.msrb.mxu3 %v5809_v15  ;;  %v8868_v10 = vld [vmem:[#allocation28_spill] sm:$0xff]  ;;  %v8869_v15 = vld [vmem:[#allocation29_spill] sm:$0xff] }
 0x1ff   : > { %2178 = vmatpush.bf16.msrb.mxu0 %v8866_v32  ;;  %2217 = vmatpush.bf16.msrb.mxu1 %v8867_v8 }
 0x200   : > { %v1443_v62 = vpop.f32.mrf.mxu2  ;;  %v1482_v24 = vpop.f32.mrf.mxu3 }
 0x201   : > { %v6647_v27 = vadd.f32 %v1443_v62, %v1366_v60  ;;  %v6649_v13 = vadd.f32 %v1482_v24, %v1405_v30  ;;  %v1367_v3 = vpop.f32.mrf.mxu0  ;;  %v1406_v25 = vpop.f32.mrf.mxu1 }
 0x202   : > { %2281 = vmatpush.bf16.msrb.mxu2 %v5811_v16  ;;  %2320 = vmatpush.bf16.msrb.mxu3 %v5826_v21  ;;  %v1368_v29 = vadd.f32 %v1367_v3, %v6517_v43  ;;  %v1407_v54 = vadd.f32 %v1406_v25, %v6519_v23  ;;  %v8870_v16 = vld [vmem:[#allocation27_spill] sm:$0xff] }
 0x203   : > { %2179 = vmatpush.bf16.msrb.mxu0 %v8868_v10  ;;  %2218 = vmatpush.bf16.msrb.mxu1 %v8869_v15 }
 0x208   : > { %v1445_v4 = vpop.f32.mrf.mxu2  ;;  %v1484_v48 = vpop.f32.mrf.mxu3 }
 0x209   : > { %v6657_v44 = vadd.f32 %v1445_v4, %v1368_v29  ;;  %v6659_v22 = vadd.f32 %v1484_v48, %v1407_v54  ;;  %v1370_v12 = vpop.f32.mrf.mxu0  ;;  %v1409_v51 = vpop.f32.mrf.mxu1 }
 0x20a   : > { %v1371_v21 = vadd.f32 %v1370_v12, %v6535_v31  ;;  %v1410_v23 = vadd.f32 %v1409_v51, %v6537_v26 }
 0x20c   : > { %4851 = vmatmul.msk.bf16.gmra.mxu0 %vm507_vm1, %v6073_v35  ;;  %4857 = vmatmul.msk.bf16.gmra.mxu1 %vm507_vm1, %v6073_v35 }
 0x20d   : > { %4863 = vmatmul.msk.bf16.gmra.mxu2 %vm507_vm1, %v8870_v16  ;;  %4869 = vmatmul.msk.bf16.gmra.mxu3 %vm507_vm1, %v8870_v16 }
 0x210   : > { %v1448_v43 = vpop.f32.mrf.mxu2  ;;  %v1487_v1 = vpop.f32.mrf.mxu3 }
 0x211   : > { %v6671_v2 = vadd.f32 %v1448_v43, %v1371_v21  ;;  %v6673_v60 = vadd.f32 %v1487_v1, %v1410_v23  ;;  %v1372_v30 = vpop.f32.mrf.mxu0  ;;  %v1411_v62 = vpop.f32.mrf.mxu1 }
 0x212   : > { %v1373_v24 = vadd.f32 %v1372_v30, %v6545_v18  ;;  %v1412_v3 = vadd.f32 %v1411_v62, %v6547_v17  ;;  %v8871_v18 = vld [vmem:[#allocation30_spill] sm:$0xff] }
 0x218   : > { %v1450_v25 = vpop.f32.mrf.mxu2  ;;  %v1489_v29 = vpop.f32.mrf.mxu3 }
 0x219   : > { %v6677_v54 = vadd.f32 %v1450_v25, %v1373_v24  ;;  %v6679_v4 = vadd.f32 %v1489_v29, %v1412_v3  ;;  %v1525_v31 = vpop.f32.mrf.mxu0  ;;  %v1564_v26 = vpop.f32.mrf.mxu1  ;;  %v6698_v3 = vld [vmem:[%s8695_s2] ss:$0 sm:$0xff] }
 0x21a   : > { %v1594_v48 = vadd.f32 %v1525_v31, %v6559_v38  ;;  %v1595_v12 = vadd.f32 %v1564_v26, %v6561_v36 }
 0x21c   : > { %4852 = vmatmul.msk.bf16.gmra.mxu0 %vm507_vm1, %v6109_v11  ;;  %4858 = vmatmul.msk.bf16.gmra.mxu1 %vm507_vm1, %v6109_v11 }
 0x21d   : > { %4864 = vmatmul.msk.bf16.gmra.mxu2 %vm507_vm1, %v8871_v18  ;;  %4870 = vmatmul.msk.bf16.gmra.mxu3 %vm507_vm1, %v8871_v18 }
 0x220   : > { %v1635_v17 = vpop.f32.mrf.mxu2  ;;  %v1674_v51 = vpop.f32.mrf.mxu3 }
 0x221   : > { %v1704_v21 = vadd.f32 %v1635_v17, %v1594_v48  ;;  %v1705_v23 = vadd.f32 %v1674_v51, %v1595_v12  ;;  %v1527_v43 = vpop.f32.mrf.mxu0  ;;  %v1566_v38 = vpop.f32.mrf.mxu1 }
 0x222   : > { %v1596_v36 = vadd.f32 %v1527_v43, %v6565_v7  ;;  %v1597_v1 = vadd.f32 %v1566_v38, %v6567_v14 }
 0x223   : > { %v1729_v30 = vmax.f32 %v6374_v59, %v1704_v21  ;;  %v1730_v62 = vmax.f32 %v6377_v9, %v1705_v23  ;;  %v8872_v23 = vld [vmem:[#allocation31_spill] sm:$0xff] }
 0x225   : > { %v1753_v24 = vmax.f32 %v1729_v30, %v1730_v62 }
 0x227   : > { %v1768_v31 = vadd.f32 %v6698_v3, %v1753_v24 }
 0x228   : > { %v1637_v25 = vpop.f32.mrf.mxu2  ;;  %v1676_v29 = vpop.f32.mrf.mxu3 }
 0x229   : > { %v1706_v26 = vadd.f32 %v1637_v25, %v1596_v36  ;;  %v1707_v48 = vadd.f32 %v1676_v29, %v1597_v1  ;;  %v1530_v12 = vpop.f32.mrf.mxu0  ;;  %v1569_v7 = vpop.f32.mrf.mxu1  ;;  %v1780_v51 = vmax.f32 %v1768_v31, 0.0 }
 0x22a   : > { %v1598_v14 = vadd.f32 %v1530_v12, %v6579_v49  ;;  %v1599_v59 = vadd.f32 %v1569_v7, %v6581_v50 }
 0x22b   : > { %v1731_v9 = vmax.f32 %v6392_v45, %v1706_v26  ;;  %v1732_v17 = vmax.f32 %v6395_v46, %v1707_v48  ;;  %v1792_v43 = vpack.c.bf16 %v1780_v51, %v1780_v51 }
 0x22c   : > { %4853 = vmatmul.msk.bf16.gmra.mxu0 %vm507_vm1, %v8841_v55  ;;  %4859 = vmatmul.msk.bf16.gmra.mxu1 %vm507_vm1, %v8841_v55 }
 0x22d   : > { %v1754_v21 = vmax.f32 %v1731_v9, %v1732_v17  ;;  %4865 = vmatmul.msk.bf16.gmra.mxu2 %vm507_vm1, %v8872_v23  ;;  %4871 = vmatmul.msk.bf16.gmra.mxu3 %vm507_vm1, %v8872_v23  ;;  %v3019_v26 = vunpack.c.l.b16 %v1792_v43  ;;  %v8873_v43 = vld [vmem:[#allocation33_spill] sm:$0xff] }
 0x22f   : > { %v1769_v49 = vadd.f32 %v6698_v3, %v1754_v21 }
 0x230   : > { %v1640_v50 = vpop.f32.mrf.mxu2  ;;  %v1679_v45 = vpop.f32.mrf.mxu3 }
 0x231   : > { %v1781_v46 = vmax.f32 %v1769_v49, 0.0  ;;  %v1708_v38 = vadd.f32 %v1640_v50, %v1598_v14  ;;  %v1709_v36 = vadd.f32 %v1679_v45, %v1599_v59  ;;  %v1532_v1 = vpop.f32.mrf.mxu0  ;;  %v1571_v30 = vpop.f32.mrf.mxu1 }
 0x232   : > { %v1600_v62 = vadd.f32 %v1532_v1, %v6585_v42  ;;  %v1601_v24 = vadd.f32 %v1571_v30, %v6587_v28 }
 0x233   : > { %v1793_v25 = vpack.c.bf16 %v1781_v46, %v1781_v46  ;;  %v1733_v29 = vmax.f32 %v6402_v52, %v1708_v38  ;;  %v1734_v31 = vmax.f32 %v6405_v53, %v1709_v36 }
 0x235   : > { %v3020_v48 = vunpack.c.l.b16 %v1793_v25  ;;  %v1755_v12 = vmax.f32 %v1733_v29, %v1734_v31  ;;  %v8874_v29 = vld [vmem:[#allocation32_spill] sm:$0xff] }
 0x237   : > { %v6718_v7 = vpack.c.b16 %v3020_v48, %v3019_v26  ;;  %v1770_v14 = vadd.f32 %v6698_v3, %v1755_v12  ;;  %v8875_v26 = vld [vmem:[#allocation37_spill] sm:$0xff] }
 0x238   : > { %v1642_v9 = vpop.f32.mrf.mxu2  ;;  %v1681_v17 = vpop.f32.mrf.mxu3 }
 0x239   : > { %v1710_v59 = vadd.f32 %v1642_v9, %v1600_v62  ;;  %v1711_v51 = vadd.f32 %v1681_v17, %v1601_v24  ;;  %v1535_v21 = vpop.f32.mrf.mxu0  ;;  %v1574_v42 = vpop.f32.mrf.mxu1  ;;  %v1782_v50 = vmax.f32 %v1770_v14, 0.0 }
 0x23a   : > { %v1602_v28 = vadd.f32 %v1535_v21, %v6601_v6  ;;  %v1603_v49 = vadd.f32 %v1574_v42, %v6603_v20 }
 0x23b   : > { %v1735_v52 = vmax.f32 %v6420_v33, %v1710_v59  ;;  %v1736_v53 = vmax.f32 %v6423_v39, %v1711_v51  ;;  %v1794_v46 = vpack.c.bf16 %v1782_v50, %v1782_v50  ;;  %v8877_v50 = vld [vmem:[#allocation34_spill] sm:$0xff] }
 0x23c   : > { %4854 = vmatmul.msk.bf16.gmra.mxu0 %vm507_vm1, %v8845_v37  ;;  %4860 = vmatmul.msk.bf16.gmra.mxu1 %vm507_vm1, %v8845_v37 }
 0x23d   : > { %v1756_v45 = vmax.f32 %v1735_v52, %v1736_v53  ;;  %4866 = vmatmul.msk.bf16.gmra.mxu2 %vm507_vm1, %v8873_v43  ;;  %4872 = vmatmul.msk.bf16.gmra.mxu3 %vm507_vm1, %v8873_v43  ;;  %v3021_v12 = vunpack.c.l.b16 %v1794_v46  ;;  %v8879_v46 = vld [vmem:[#allocation35_spill] sm:$0xff] }
 0x23f   : > { %v1771_v6 = vadd.f32 %v6698_v3, %v1756_v45 }
 0x240   : > { %v1645_v20 = vpop.f32.mrf.mxu2  ;;  %v1684_v33 = vpop.f32.mrf.mxu3 }
 0x241   : > { %v1783_v39 = vmax.f32 %v1771_v6, 0.0  ;;  %v1712_v38 = vadd.f32 %v1645_v20, %v1602_v28  ;;  %v1713_v36 = vadd.f32 %v1684_v33, %v1603_v49  ;;  %v1537_v1 = vpop.f32.mrf.mxu0  ;;  %v1576_v30 = vpop.f32.mrf.mxu1  ;;  %v8878_v6 = vld [vmem:[#allocation36_spill] sm:$0xff] }
 0x242   : > { %v1604_v62 = vadd.f32 %v1537_v1, %v6607_v41  ;;  %v1605_v24 = vadd.f32 %v1576_v30, %v6609_v0 }
 0x243   : > { %v1795_v25 = vpack.c.bf16 %v1783_v39, %v1783_v39  ;;  %v1737_v31 = vmax.f32 %v8874_v29, %v1712_v38  ;;  %v1738_v48 = vmax.f32 %v8875_v26, %v1713_v36 }
 0x245   : > { %v3022_v9 = vunpack.c.l.b16 %v1795_v25  ;;  %v1757_v17 = vmax.f32 %v1737_v31, %v1738_v48  ;;  %v8880_v31 = vld [vmem:[#allocation38_spill] sm:$0xff]  ;;  %v8881_v48 = vld [vmem:[#allocation39_spill] sm:$0xff] }
 0x247   : > { %v6738_v14 = vpack.c.b16 %v3022_v9, %v3021_v12  ;;  %v1772_v21 = vadd.f32 %v6698_v3, %v1757_v17 }
 0x248   : > { %v1647_v59 = vpop.f32.mrf.mxu2  ;;  %v1686_v51 = vpop.f32.mrf.mxu3 }
 0x249   : > { %8876 = vst [vmem:[#allocation26_spill] sm:$0xff] %v6738_v14  ;;  %v1714_v42 = vadd.f32 %v1647_v59, %v1604_v62  ;;  %v1715_v28 = vadd.f32 %v1686_v51, %v1605_v24  ;;  %v1540_v49 = vpop.f32.mrf.mxu0  ;;  %v1579_v41 = vpop.f32.mrf.mxu1  ;;  %v1784_v20 = vmax.f32 %v1772_v21, 0.0 }
 0x24a   : > { %v1606_v0 = vadd.f32 %v1540_v49, %v6623_v63  ;;  %v1607_v52 = vadd.f32 %v1579_v41, %v6625_v58 }
 0x24b   : > { %v1739_v53 = vmax.f32 %v6448_v47, %v1714_v42  ;;  %v1740_v45 = vmax.f32 %v8877_v50, %v1715_v28  ;;  %v1796_v39 = vpack.c.bf16 %v1784_v20, %v1784_v20 }
 0x24c   : > { %4855 = vmatmul.msk.bf16.gmra.mxu0 %vm507_vm1, %v8878_v6  ;;  %4861 = vmatmul.msk.bf16.gmra.mxu1 %vm507_vm1, %v8878_v6 }
 0x24d   : > { %v1758_v33 = vmax.f32 %v1739_v53, %v1740_v45  ;;  %4867 = vmatmul.msk.bf16.gmra.mxu2 %vm507_vm1, %v8879_v46  ;;  %4873 = vmatmul.msk.bf16.gmra.mxu3 %vm507_vm1, %v8879_v46  ;;  %v3023_v9 = vunpack.c.l.b16 %v1796_v39  ;;  %v8883_v45 = vld [vmem:[#allocation11_spill] sm:$0xff] }
 0x24f   : > { %v1773_v63 = vadd.f32 %v6698_v3, %v1758_v33 }
 0x250   : > { %v1650_v58 = vpop.f32.mrf.mxu2  ;;  %v1689_v47 = vpop.f32.mrf.mxu3 }
 0x251   : > { %v1785_v38 = vmax.f32 %v1773_v63, 0.0  ;;  %v1716_v36 = vadd.f32 %v1650_v58, %v1606_v0  ;;  %v1717_v1 = vadd.f32 %v1689_v47, %v1607_v52  ;;  %v1542_v30 = vpop.f32.mrf.mxu0  ;;  %v1581_v62 = vpop.f32.mrf.mxu1  ;;  %v8884_v63 = vld [vmem:[#allocation10_spill] sm:$0xff]  ;;  %v8888_v58 = vld [vmem:[#allocation3_spill] sm:$0xff] }
 0x252   : > { %v1608_v24 = vadd.f32 %v1542_v30, %v6629_v57  ;;  %v1609_v25 = vadd.f32 %v1581_v62, %v6631_v56 }
 0x253   : > { %v1797_v29 = vpack.c.bf16 %v1785_v38, %v1785_v38  ;;  %v1741_v26 = vmax.f32 %v8880_v31, %v1716_v36  ;;  %v1742_v12 = vmax.f32 %v8881_v48, %v1717_v1  ;;  %v8889_v31 = vld [vmem:[#allocation14_spill] sm:$0xff] }
 0x255   : > { %v3024_v17 = vunpack.c.l.b16 %v1797_v29  ;;  %v1759_v59 = vmax.f32 %v1741_v26, %v1742_v12  ;;  %v8890_v26 = vld [vmem:[#allocation15_spill] sm:$0xff]  ;;  %v8891_v12 = vld [vmem:[#allocation40_spill] sm:$0xff] }
 0x257   : > { %v6758_v51 = vpack.c.b16 %v3024_v17, %v3023_v9  ;;  %v1774_v28 = vadd.f32 %v6698_v3, %v1759_v59  ;;  %v8892_v17 = vld [vmem:[#allocation41_spill] sm:$0xff] }
 0x258   : > { %v1652_v21 = vpop.f32.mrf.mxu2  ;;  %v1691_v42 = vpop.f32.mrf.mxu3 }
 0x259   : > { %8882 = vst [vmem:[#allocation22_spill] sm:$0xff] %v6758_v51  ;;  %v1718_v49 = vadd.f32 %v1652_v21, %v1608_v24  ;;  %v1719_v41 = vadd.f32 %v1691_v42, %v1609_v25  ;;  %v1545_v0 = vpop.f32.mrf.mxu0  ;;  %v1584_v57 = vpop.f32.mrf.mxu1  ;;  %v1786_v20 = vmax.f32 %v1774_v28, 0.0  ;;  %v8893_v21 = vld [vmem:[#allocation4_spill] sm:$0xff]  ;;  %v8894_v42 = vld [vmem:[#allocation5_spill] sm:$0xff] }
 0x25a   : > { %v1610_v56 = vadd.f32 %v1545_v0, %v6647_v27  ;;  %v1611_v52 = vadd.f32 %v1584_v57, %v6649_v13  ;;  %v8885_v27 = vld [vmem:[#allocation8_spill] sm:$0xff]  ;;  %v8886_v13 = vld [vmem:[#allocation9_spill] sm:$0xff] }
 0x25b   : > { %v1743_v53 = vmax.f32 %v6476_v19, %v1718_v49  ;;  %v1744_v50 = vmax.f32 %v6479_v34, %v1719_v41  ;;  %v8887_v34 = vld [vmem:[#allocation2_spill] sm:$0xff]  ;;  %v1798_v38 = vpack.c.bf16 %v1786_v20, %v1786_v20 }
 0x25c   : > { %4874 = vmatmul.msk.bf16.vlgmr.msra.gmra.mxu0 %vm507_vm1, %v8883_v45  ;;  %4880 = vmatmul.msk.bf16.vlgmr.msra.gmra.mxu1 %vm507_vm1, %v8883_v45 }
 0x25d   : > { %v1760_v33 = vmax.f32 %v1743_v53, %v1744_v50  ;;  %4886 = vmatmul.msk.bf16.vlgmr.msra.gmra.mxu2 %vm507_vm1, %v8884_v63  ;;  %4892 = vmatmul.msk.bf16.vlgmr.msra.gmra.mxu3 %vm507_vm1, %v8884_v63  ;;  %v3025_v28 = vunpack.c.l.b16 %v1798_v38  ;;  %v8898_v38 = vld [vmem:[#allocation16_spill] sm:$0xff] }
 0x25e   : > { %2436 = vmatpush.bf16.msra.mxu2 %v8885_v27  ;;  %2475 = vmatpush.bf16.msra.mxu3 %v8886_v13  ;;  %v8895_v27 = vld [vmem:[#allocation42_spill] sm:$0xff] }
 0x25f   : > { %v1775_v19 = vadd.f32 %v6698_v3, %v1760_v33  ;;  %2358 = vmatpush.bf16.msra.mxu0 %v8887_v34  ;;  %2397 = vmatpush.bf16.msra.mxu1 %v8888_v58  ;;  %v8897_v58 = vld [vmem:[#allocation17_spill] sm:$0xff] }
 0x260   : > { %v1655_v47 = vpop.f32.mrf.mxu2  ;;  %v1694_v39 = vpop.f32.mrf.mxu3 }
 0x261   : > { %v1787_v36 = vmax.f32 %v1775_v19, 0.0  ;;  %v1720_v1 = vadd.f32 %v1655_v47, %v1610_v56  ;;  %v1721_v30 = vadd.f32 %v1694_v39, %v1611_v52  ;;  %v1547_v62 = vpop.f32.mrf.mxu0  ;;  %v1586_v24 = vpop.f32.mrf.mxu1  ;;  %v8896_v19 = vld [vmem:[#allocation43_spill] sm:$0xff] }
 0x262   : > { %v1612_v25 = vadd.f32 %v1547_v62, %v6657_v44  ;;  %v1613_v29 = vadd.f32 %v1586_v24, %v6659_v22  ;;  %2437 = vmatpush.bf16.msra.mxu2 %v8889_v31  ;;  %2476 = vmatpush.bf16.msra.mxu3 %v8890_v26 }
 0x263   : > { %v1799_v48 = vpack.c.bf16 %v1787_v36, %v1787_v36  ;;  %v1745_v9 = vmax.f32 %v8891_v12, %v1720_v1  ;;  %v1746_v59 = vmax.f32 %v8892_v17, %v1721_v30  ;;  %2359 = vmatpush.bf16.msra.mxu0 %v8893_v21  ;;  %2398 = vmatpush.bf16.msra.mxu1 %v8894_v42  ;;  %v8899_v12 = vld [vmem:[#allocation44_spill] sm:$0xff]  ;;  %v8900_v17 = vld [vmem:[#allocation45_spill] sm:$0xff] }
 0x265   : > { %v3026_v49 = vunpack.c.l.b16 %v1799_v48  ;;  %v1761_v41 = vmax.f32 %v1745_v9, %v1746_v59 }
 0x267   : > { %v6786_v0 = vpack.c.b16 %v3026_v49, %v3025_v28  ;;  %v1776_v57 = vadd.f32 %v6698_v3, %v1761_v41 }
 0x268   : > { %v1657_v44 = vpop.f32.mrf.mxu2  ;;  %v1696_v22 = vpop.f32.mrf.mxu3 }
 0x269   : > { %v1722_v56 = vadd.f32 %v1657_v44, %v1612_v25  ;;  %v1723_v52 = vadd.f32 %v1696_v22, %v1613_v29  ;;  %v1550_v53 = vpop.f32.mrf.mxu0  ;;  %v1589_v50 = vpop.f32.mrf.mxu1  ;;  %v1788_v47 = vmax.f32 %v1776_v57, 0.0 }
 0x26a   : > { %v1614_v20 = vadd.f32 %v1550_v53, %v6671_v2  ;;  %v1615_v33 = vadd.f32 %v1589_v50, %v6673_v60  ;;  %v8902_v53 = vld [vmem:[#allocation46_spill] sm:$0xff]  ;;  %v8903_v50 = vld [vmem:[#allocation47_spill] sm:$0xff] }
 0x26b   : > { %v1747_v13 = vmax.f32 %v8895_v27, %v1722_v56  ;;  %v1748_v34 = vmax.f32 %v8896_v19, %v1723_v52  ;;  %v1800_v1 = vpack.c.bf16 %v1788_v47, %v1788_v47  ;;  %v8905_v19 = vld [vmem:[#allocation18_spill] sm:$0xff] }
 0x26c   : > { %4875 = vmatmul.msk.bf16.gmra.mxu0 %vm507_vm1, %v8897_v58  ;;  %4881 = vmatmul.msk.bf16.gmra.mxu1 %vm507_vm1, %v8897_v58 }
 0x26d   : > { %v1762_v39 = vmax.f32 %v1747_v13, %v1748_v34  ;;  %4887 = vmatmul.msk.bf16.gmra.mxu2 %vm507_vm1, %v8898_v38  ;;  %4893 = vmatmul.msk.bf16.gmra.mxu3 %vm507_vm1, %v8898_v38  ;;  %v3192_v21 = vunpack.c.l.b16 %v1800_v1 }
 0x26f   : > { %v1777_v2 = vadd.f32 %v6698_v3, %v1762_v39 }
 0x270   : > { %v1660_v60 = vpop.f32.mrf.mxu2  ;;  %v1699_v36 = vpop.f32.mrf.mxu3 }
 0x271   : > { %v1789_v30 = vmax.f32 %v1777_v2, 0.0  ;;  %v1724_v62 = vadd.f32 %v1660_v60, %v1614_v20  ;;  %v1725_v24 = vadd.f32 %v1699_v36, %v1615_v33  ;;  %v1552_v25 = vpop.f32.mrf.mxu0  ;;  %v1591_v29 = vpop.f32.mrf.mxu1  ;;  %v8904_v33 = vld [vmem:[#allocation19_spill] sm:$0xff] }
 0x272   : > { %v1616_v31 = vadd.f32 %v1552_v25, %v6677_v54  ;;  %v1617_v26 = vadd.f32 %v1591_v29, %v6679_v4 }
 0x273   : > { %v1801_v48 = vpack.c.bf16 %v1789_v30, %v1789_v30  ;;  %v1749_v9 = vmax.f32 %v8899_v12, %v1724_v62  ;;  %v1750_v59 = vmax.f32 %v8900_v17, %v1725_v24 }
 0x275   : > { %v3193_v42 = vunpack.c.l.b16 %v1801_v48  ;;  %v1763_v28 = vmax.f32 %v1749_v9, %v1750_v59  ;;  %v8907_v59 = vld [vmem:[#allocation21_spill] sm:$0xff] }
 0x277   : > { %v6806_v49 = vpack.c.b16 %v3193_v42, %v3192_v21  ;;  %v1778_v22 = vadd.f32 %v6698_v3, %v1763_v28  ;;  %v8908_v21 = vld [vmem:[#allocation20_spill] sm:$0xff] }
 0x278   : > { %v1662_v41 = vpop.f32.mrf.mxu2  ;;  %v1701_v44 = vpop.f32.mrf.mxu3 }
 0x279   : > { %8901 = vst [vmem:[#allocation23_spill] sm:$0xff] %v6806_v49  ;;  %v1726_v57 = vadd.f32 %v1662_v41, %v1616_v31  ;;  %v1727_v56 = vadd.f32 %v1701_v44, %v1617_v26  ;;  %v1813_v52 = vpop.f32.mrf.mxu0  ;;  %v1852_v54 = vpop.f32.mrf.mxu1  ;;  %v1790_v27 = vmax.f32 %v1778_v22, 0.0 }
 0x27b   : > { %v1751_v4 = vmax.f32 %v8902_v53, %v1726_v57  ;;  %v1752_v20 = vmax.f32 %v8903_v50, %v1727_v56  ;;  %v1802_v2 = vpack.c.bf16 %v1790_v27, %v1790_v27  ;;  %v8910_v27 = vld [vmem:[#allocation24_spill] sm:$0xff] }
 0x27c   : > { %4876 = vmatmul.msk.bf16.gmra.mxu0 %vm507_vm1, %v8904_v33  ;;  %4882 = vmatmul.msk.bf16.gmra.mxu1 %vm507_vm1, %v8904_v33 }
 0x27d   : > { %v1764_v13 = vmax.f32 %v1751_v4, %v1752_v20  ;;  %4888 = vmatmul.msk.bf16.gmra.mxu2 %vm507_vm1, %v8905_v19  ;;  %4894 = vmatmul.msk.bf16.gmra.mxu3 %vm507_vm1, %v8905_v19  ;;  %v3546_v25 = vunpack.c.l.b16 %v1802_v2  ;;  %v8909_v20 = vld [vmem:[#allocation25_spill] sm:$0xff] }
 0x27f   : > { %v1779_v34 = vadd.f32 %v6698_v3, %v1764_v13 }
 0x280   : > { %v1891_v47 = vpop.f32.mrf.mxu2  ;;  %v1930_v39 = vpop.f32.mrf.mxu3 }
 0x281   : > { %v1791_v60 = vmax.f32 %v1779_v34, 0.0  ;;  %v6820_v36 = vadd.f32 %v1891_v47, %v1813_v52  ;;  %v6822_v1 = vadd.f32 %v1930_v39, %v1852_v54  ;;  %v1815_v30 = vpop.f32.mrf.mxu0  ;;  %v1854_v62 = vpop.f32.mrf.mxu1 }
 0x283   : > { %v1803_v24 = vpack.c.bf16 %v1791_v60, %v1791_v60 }
 0x285   : > { %v3547_v29 = vunpack.c.l.b16 %v1803_v24 }
 0x287   : > { %v6824_v31 = vpack.c.b16 %v3547_v29, %v3546_v25 }
 0x288   : > { %v1893_v26 = vpop.f32.mrf.mxu2  ;;  %v1932_v48 = vpop.f32.mrf.mxu3 }
 0x289   : > { %8906 = vst [vmem:[#allocation28_spill] sm:$0xff] %v6824_v31  ;;  %v6826_v12 = vadd.f32 %v1893_v26, %v1815_v30  ;;  %v6828_v3 = vadd.f32 %v1932_v48, %v1854_v62  ;;  %v1818_v9 = vpop.f32.mrf.mxu0  ;;  %v1857_v17 = vpop.f32.mrf.mxu1 }
 0x28c   : > { %4877 = vmatmul.msk.bf16.gmra.mxu0 %vm507_vm1, %v8907_v59  ;;  %4883 = vmatmul.msk.bf16.gmra.mxu1 %vm507_vm1, %v8907_v59 }
 0x28d   : > { %4889 = vmatmul.msk.bf16.gmra.mxu2 %vm507_vm1, %v8908_v21  ;;  %4895 = vmatmul.msk.bf16.gmra.mxu3 %vm507_vm1, %v8908_v21 }
 0x290   : > { %v1896_v42 = vpop.f32.mrf.mxu2  ;;  %v1935_v28 = vpop.f32.mrf.mxu3 }
 0x291   : > { %v6838_v41 = vadd.f32 %v1896_v42, %v1818_v9  ;;  %v6840_v44 = vadd.f32 %v1935_v28, %v1857_v17  ;;  %v1820_v22 = vpop.f32.mrf.mxu0  ;;  %v1859_v57 = vpop.f32.mrf.mxu1 }
 0x298   : > { %v1898_v56 = vpop.f32.mrf.mxu2  ;;  %v1937_v52 = vpop.f32.mrf.mxu3 }
 0x299   : > { %v6842_v54 = vadd.f32 %v1898_v56, %v1820_v22  ;;  %v6844_v53 = vadd.f32 %v1937_v52, %v1859_v57  ;;  %v1823_v4 = vpop.f32.mrf.mxu0  ;;  %v1862_v50 = vpop.f32.mrf.mxu1 }
 0x29c   : > { %4878 = vmatmul.msk.bf16.gmra.mxu0 %vm507_vm1, %v8909_v20  ;;  %4884 = vmatmul.msk.bf16.gmra.mxu1 %vm507_vm1, %v8909_v20 }
 0x29d   : > { %4890 = vmatmul.msk.bf16.gmra.mxu2 %vm507_vm1, %v8910_v27  ;;  %4896 = vmatmul.msk.bf16.gmra.mxu3 %vm507_vm1, %v8910_v27 }
 0x2a0   : > { %v1901_v13 = vpop.f32.mrf.mxu2  ;;  %v1940_v34 = vpop.f32.mrf.mxu3 }
 0x2a1   : > { %v6854_v47 = vadd.f32 %v1901_v13, %v1823_v4  ;;  %v6856_v39 = vadd.f32 %v1940_v34, %v1862_v50  ;;  %v1825_v2 = vpop.f32.mrf.mxu0  ;;  %v1864_v60 = vpop.f32.mrf.mxu1  ;;  %v8911_v34 = vld [vmem:[#allocation6_spill] sm:$0xff] }
 0x2a8   : > { %v1903_v30 = vpop.f32.mrf.mxu2  ;;  %v1942_v62 = vpop.f32.mrf.mxu3 }
 0x2a9   : > { %v6858_v24 = vadd.f32 %v1903_v30, %v1825_v2  ;;  %v6860_v25 = vadd.f32 %v1942_v62, %v1864_v60  ;;  %v1828_v29 = vpop.f32.mrf.mxu0  ;;  %v1867_v26 = vpop.f32.mrf.mxu1  ;;  %v8912_v2 = vld [vmem:[#allocation7_spill] sm:$0xff] }
 0x2ac   : > { %4879 = vmatmul.msk.bf16.gmra.mxu0 %vm507_vm1, %v6299_v61  ;;  %4885 = vmatmul.msk.bf16.gmra.mxu1 %vm507_vm1, %v6299_v61 }
 0x2ad   : > { %4891 = vmatmul.msk.bf16.gmra.mxu2 %vm507_vm1, %v6611_v40  ;;  %4897 = vmatmul.msk.bf16.gmra.mxu3 %vm507_vm1, %v6611_v40 }
 0x2b0   : > { %v1906_v48 = vpop.f32.mrf.mxu2  ;;  %v1945_v9 = vpop.f32.mrf.mxu3 }
 0x2b1   : > { %v6870_v17 = vadd.f32 %v1906_v48, %v1828_v29  ;;  %v6872_v42 = vadd.f32 %v1945_v9, %v1867_v26  ;;  %v1830_v28 = vpop.f32.mrf.mxu0  ;;  %v1869_v22 = vpop.f32.mrf.mxu1 }
 0x2b8   : > { %v1908_v57 = vpop.f32.mrf.mxu2  ;;  %v1947_v56 = vpop.f32.mrf.mxu3 }
 0x2b9   : > { %v6874_v52 = vadd.f32 %v1908_v57, %v1830_v28  ;;  %v6876_v4 = vadd.f32 %v1947_v56, %v1869_v22  ;;  %v1833_v50 = vpop.f32.mrf.mxu0  ;;  %v1872_v13 = vpop.f32.mrf.mxu1 }
 0x2bc   : > { %4898 = vmatmul.msk.bf16.vlgmr.msrb.gmra.mxu0 %vm507_vm1, %v8870_v16  ;;  %4904 = vmatmul.msk.bf16.vlgmr.msrb.gmra.mxu1 %vm507_vm1, %v8870_v16 }
 0x2bd   : > { %4910 = vmatmul.msk.bf16.vlgmr.msrb.gmra.mxu2 %vm507_vm1, %v8883_v45  ;;  %4916 = vmatmul.msk.bf16.vlgmr.msrb.gmra.mxu3 %vm507_vm1, %v8883_v45  ;;  %v8913_v45 = vld [vmem:[#allocation12_spill] sm:$0xff] }
 0x2be   : > { %2648 = vmatpush.bf16.msrb.mxu2 %v8866_v32  ;;  %2687 = vmatpush.bf16.msrb.mxu3 %v8867_v8  ;;  %v8914_v32 = vld [vmem:[#allocation13_spill] sm:$0xff] }
 0x2bf   : > { %2538 = vmatpush.bf16.msrb.mxu0 %v8911_v34  ;;  %2577 = vmatpush.bf16.msrb.mxu1 %v8912_v2 }
 0x2c0   : > { %v1911_v60 = vpop.f32.mrf.mxu2  ;;  %v1950_v30 = vpop.f32.mrf.mxu3 }
 0x2c1   : > { %v6890_v62 = vadd.f32 %v1911_v60, %v1833_v50  ;;  %v6892_v29 = vadd.f32 %v1950_v30, %v1872_v13  ;;  %v1835_v26 = vpop.f32.mrf.mxu0  ;;  %v1874_v48 = vpop.f32.mrf.mxu1 }
 0x2c2   : > { %2649 = vmatpush.bf16.msrb.mxu2 %v8868_v10  ;;  %2688 = vmatpush.bf16.msrb.mxu3 %v8869_v15 }
 0x2c3   : > { %2539 = vmatpush.bf16.msrb.mxu0 %v8913_v45  ;;  %2578 = vmatpush.bf16.msrb.mxu1 %v8914_v32 }
 0x2c8   : > { %v1913_v8 = vpop.f32.mrf.mxu2  ;;  %v1952_v9 = vpop.f32.mrf.mxu3 }
 0x2c9   : > { %v6898_v28 = vadd.f32 %v1913_v8, %v1835_v26  ;;  %v6900_v22 = vadd.f32 %v1952_v9, %v1874_v48  ;;  %v1838_v57 = vpop.f32.mrf.mxu0  ;;  %v1877_v56 = vpop.f32.mrf.mxu1 }
 0x2cc   : > { %4899 = vmatmul.msk.bf16.gmra.mxu0 %vm507_vm1, %v8871_v18  ;;  %4905 = vmatmul.msk.bf16.gmra.mxu1 %vm507_vm1, %v8871_v18 }
 0x2cd   : > { %4911 = vmatmul.msk.bf16.gmra.mxu2 %vm507_vm1, %v8897_v58  ;;  %4917 = vmatmul.msk.bf16.gmra.mxu3 %vm507_vm1, %v8897_v58 }
 0x2d0   : > { %v1916_v10 = vpop.f32.mrf.mxu2  ;;  %v1955_v15 = vpop.f32.mrf.mxu3 }
 0x2d1   : > { %v6910_v50 = vadd.f32 %v1916_v10, %v1838_v57  ;;  %v6912_v13 = vadd.f32 %v1955_v15, %v1877_v56  ;;  %v1840_v34 = vpop.f32.mrf.mxu0  ;;  %v1879_v2 = vpop.f32.mrf.mxu1 }
 0x2d8   : > { %v1918_v60 = vpop.f32.mrf.mxu2  ;;  %v1957_v30 = vpop.f32.mrf.mxu3 }
 0x2d9   : > { %v6914_v26 = vadd.f32 %v1918_v60, %v1840_v34  ;;  %v6916_v48 = vadd.f32 %v1957_v30, %v1879_v2  ;;  %v1969_v45 = vpop.f32.mrf.mxu0  ;;  %v2008_v32 = vpop.f32.mrf.mxu1 }
 0x2da   : > { %v2038_v8 = vadd.f32 %v1969_v45, %v6820_v36  ;;  %v2039_v58 = vadd.f32 %v2008_v32, %v6822_v1 }
 0x2dc   : > { %4900 = vmatmul.msk.bf16.gmra.mxu0 %vm507_vm1, %v8872_v23  ;;  %4906 = vmatmul.msk.bf16.gmra.mxu1 %vm507_vm1, %v8872_v23 }
 0x2dd   : > { %4912 = vmatmul.msk.bf16.gmra.mxu2 %vm507_vm1, %v8904_v33  ;;  %4918 = vmatmul.msk.bf16.gmra.mxu3 %vm507_vm1, %v8904_v33 }
 0x2e0   : > { %v2071_v9 = vpop.f32.mrf.mxu2  ;;  %v2110_v57 = vpop.f32.mrf.mxu3 }
 0x2e1   : > { %v6928_v56 = vadd.f32 %v2071_v9, %v2038_v8  ;;  %v6930_v10 = vadd.f32 %v2110_v57, %v2039_v58  ;;  %v1971_v36 = vpop.f32.mrf.mxu0  ;;  %v2010_v1 = vpop.f32.mrf.mxu1 }
 0x2e2   : > { %v2040_v15 = vadd.f32 %v1971_v36, %v6826_v12  ;;  %v2041_v34 = vadd.f32 %v2010_v1, %v6828_v3 }
 0x2e8   : > { %v2073_v2 = vpop.f32.mrf.mxu2  ;;  %v2112_v60 = vpop.f32.mrf.mxu3 }
 0x2e9   : > { %v6934_v30 = vadd.f32 %v2073_v2, %v2040_v15  ;;  %v6936_v45 = vadd.f32 %v2112_v60, %v2041_v34  ;;  %v1974_v32 = vpop.f32.mrf.mxu0  ;;  %v2013_v33 = vpop.f32.mrf.mxu1 }
 0x2ea   : > { %v2042_v31 = vadd.f32 %v1974_v32, %v6838_v41  ;;  %v2043_v8 = vadd.f32 %v2013_v33, %v6840_v44 }
 0x2ec   : > { %4901 = vmatmul.msk.bf16.gmra.mxu0 %vm507_vm1, %v8873_v43  ;;  %4907 = vmatmul.msk.bf16.gmra.mxu1 %vm507_vm1, %v8873_v43 }
 0x2ed   : > { %4913 = vmatmul.msk.bf16.gmra.mxu2 %vm507_vm1, %v8907_v59  ;;  %4919 = vmatmul.msk.bf16.gmra.mxu3 %vm507_vm1, %v8907_v59 }
 0x2f0   : > { %v2076_v12 = vpop.f32.mrf.mxu2  ;;  %v2115_v3 = vpop.f32.mrf.mxu3 }
 0x2f1   : > { %v6948_v58 = vadd.f32 %v2076_v12, %v2042_v31  ;;  %v6950_v9 = vadd.f32 %v2115_v3, %v2043_v8  ;;  %v1976_v41 = vpop.f32.mrf.mxu0  ;;  %v2015_v44 = vpop.f32.mrf.mxu1 }
 0x2f2   : > { %v2044_v57 = vadd.f32 %v1976_v41, %v6842_v54  ;;  %v2045_v36 = vadd.f32 %v2015_v44, %v6844_v53  ;;  %v4618_v54 = vld [vmem:[%s5859_s12 + $0x140] sm:$0xff]  ;;  %v4619_v53 = vld [vmem:[%s5859_s12 + $0x148] sm:$0xff] }
 0x2f3   : > { %v419_v12 = vpack.c.bf16 %v4618_v54, %v4618_v54 }
 0x2f8   : > { %v2078_v1 = vpop.f32.mrf.mxu2  ;;  %v2117_v15 = vpop.f32.mrf.mxu3 }
 0x2f9   : > { %v6954_v34 = vadd.f32 %v2078_v1, %v2044_v57  ;;  %v6956_v2 = vadd.f32 %v2117_v15, %v2045_v36  ;;  %v1979_v59 = vpop.f32.mrf.mxu0  ;;  %v2018_v60 = vpop.f32.mrf.mxu1  ;;  %v2166_v1 = vunpack.c.l.b16 %v419_v12 }
 0x2fa   : > { %v2046_v31 = vadd.f32 %v1979_v59, %v6854_v47  ;;  %v2047_v32 = vadd.f32 %v2018_v60, %v6856_v39  ;;  %v420_v47 = vpack.c.bf16 %v4619_v53, %v4619_v53 }
 0x2fc   : > { %4902 = vmatmul.msk.bf16.gmra.mxu0 %vm507_vm1, %v8879_v46  ;;  %4908 = vmatmul.msk.bf16.gmra.mxu1 %vm507_vm1, %v8879_v46  ;;  %v2167_v15 = vunpack.c.l.b16 %v420_v47 }
 0x2fd   : > { %4914 = vmatmul.msk.bf16.gmra.mxu2 %vm507_vm1, %v8909_v20  ;;  %4920 = vmatmul.msk.bf16.gmra.mxu3 %vm507_vm1, %v8909_v20 }
 0x2fe   : > { %v6976_v60 = vpack.c.b16 %v2167_v15, %v2166_v1 }
 0x300   : > { %v2081_v33 = vpop.f32.mrf.mxu2  ;;  %v2120_v8 = vpop.f32.mrf.mxu3 }
 0x301   : > { %v6970_v3 = vadd.f32 %v2081_v33, %v2046_v31  ;;  %v6972_v39 = vadd.f32 %v2120_v8, %v2047_v32  ;;  %v1981_v41 = vpop.f32.mrf.mxu0  ;;  %v2020_v44 = vpop.f32.mrf.mxu1 }
 0x302   : > { %v2048_v57 = vadd.f32 %v1981_v41, %v6858_v24  ;;  %v2049_v36 = vadd.f32 %v2020_v44, %v6860_v25 }
 0x308   : > { %v2083_v59 = vpop.f32.mrf.mxu2  ;;  %v2122_v20 = vpop.f32.mrf.mxu3 }
 0x309   : > { %v6978_v49 = vadd.f32 %v2083_v59, %v2048_v57  ;;  %v6980_v54 = vadd.f32 %v2122_v20, %v2049_v36  ;;  %v1984_v31 = vpop.f32.mrf.mxu0  ;;  %v2023_v53 = vpop.f32.mrf.mxu1 }
 0x30a   : > { %v2050_v32 = vadd.f32 %v1984_v31, %v6870_v17  ;;  %v2051_v33 = vadd.f32 %v2023_v53, %v6872_v42 }
 0x30c   : > { %4903 = vmatmul.msk.bf16.gmra.mxu0 %vm507_vm1, %v6976_v60  ;;  %4909 = vmatmul.msk.bf16.gmra.mxu1 %vm507_vm1, %v6976_v60 }
 0x30d   : > { %4915 = vmatmul.msk.bf16.gmra.mxu2 %vm507_vm1, %v6299_v61  ;;  %4921 = vmatmul.msk.bf16.gmra.mxu3 %vm507_vm1, %v6299_v61 }
 0x310   : > { %v2086_v24 = vpop.f32.mrf.mxu2  ;;  %v2125_v25 = vpop.f32.mrf.mxu3 }
 0x311   : > { %v6992_v8 = vadd.f32 %v2086_v24, %v2050_v32  ;;  %v6994_v12 = vadd.f32 %v2125_v25, %v2051_v33  ;;  %v1986_v17 = vpop.f32.mrf.mxu0  ;;  %v2025_v42 = vpop.f32.mrf.mxu1 }
 0x312   : > { %v2052_v47 = vadd.f32 %v1986_v17, %v6874_v52  ;;  %v2053_v41 = vadd.f32 %v2025_v42, %v6876_v4 }
 0x318   : > { %v2088_v44 = vpop.f32.mrf.mxu2  ;;  %v2127_v57 = vpop.f32.mrf.mxu3 }
 0x319   : > { %v6998_v36 = vadd.f32 %v2088_v44, %v2052_v47  ;;  %v7000_v1 = vadd.f32 %v2127_v57, %v2053_v41  ;;  %v1989_v15 = vpop.f32.mrf.mxu0  ;;  %v2028_v61 = vpop.f32.mrf.mxu1 }
 0x31a   : > { %v2054_v59 = vadd.f32 %v1989_v15, %v6890_v62  ;;  %v2055_v20 = vadd.f32 %v2028_v61, %v6892_v29 }
 0x31c   : > { %4922 = vmatmul.msk.bf16.vlgmr.msra.gmra.mxu0 %vm507_vm1, %v6053_v5  ;;  %4928 = vmatmul.msk.bf16.vlgmr.msra.gmra.mxu1 %vm507_vm1, %v6053_v5 }
 0x31d   : > { %4934 = vmatmul.msk.bf16.vlgmr.msra.gmra.mxu2 %vm507_vm1, %v8884_v63  ;;  %4940 = vmatmul.msk.bf16.vlgmr.msra.gmra.mxu3 %vm507_vm1, %v8884_v63 }
 0x320   : > { %v2091_v52 = vpop.f32.mrf.mxu2  ;;  %v2130_v4 = vpop.f32.mrf.mxu3 }
 0x321   : > { %v7012_v31 = vadd.f32 %v2091_v52, %v2054_v59  ;;  %v7014_v53 = vadd.f32 %v2130_v4, %v2055_v20  ;;  %v1991_v62 = vpop.f32.mrf.mxu0  ;;  %v2030_v29 = vpop.f32.mrf.mxu1 }
 0x322   : > { %v2056_v32 = vadd.f32 %v1991_v62, %v6898_v28  ;;  %v2057_v33 = vadd.f32 %v2030_v29, %v6900_v22 }
 0x328   : > { %v2093_v24 = vpop.f32.mrf.mxu2  ;;  %v2132_v5 = vpop.f32.mrf.mxu3 }
 0x329   : > { %v7018_v25 = vadd.f32 %v2093_v24, %v2056_v32  ;;  %v7020_v17 = vadd.f32 %v2132_v5, %v2057_v33  ;;  %v1994_v42 = vpop.f32.mrf.mxu0  ;;  %v2033_v63 = vpop.f32.mrf.mxu1 }
 0x32a   : > { %v2058_v47 = vadd.f32 %v1994_v42, %v6910_v50  ;;  %v2059_v41 = vadd.f32 %v2033_v63, %v6912_v13 }
 0x32c   : > { %4923 = vmatmul.msk.bf16.gmra.mxu0 %vm507_vm1, %v6073_v35  ;;  %4929 = vmatmul.msk.bf16.gmra.mxu1 %vm507_vm1, %v6073_v35 }
 0x32d   : > { %4935 = vmatmul.msk.bf16.gmra.mxu2 %vm507_vm1, %v8898_v38  ;;  %4941 = vmatmul.msk.bf16.gmra.mxu3 %vm507_vm1, %v8898_v38 }
 0x330   : > { %v2096_v28 = vpop.f32.mrf.mxu2  ;;  %v2135_v22 = vpop.f32.mrf.mxu3 }
 0x331   : > { %v7032_v44 = vadd.f32 %v2096_v28, %v2058_v47  ;;  %v7034_v57 = vadd.f32 %v2135_v22, %v2059_v41  ;;  %v1996_v50 = vpop.f32.mrf.mxu0  ;;  %v2035_v13 = vpop.f32.mrf.mxu1 }
 0x332   : > { %v2060_v15 = vadd.f32 %v1996_v50, %v6914_v26  ;;  %v2061_v61 = vadd.f32 %v2035_v13, %v6916_v48 }
 0x338   : > { %v2098_v59 = vpop.f32.mrf.mxu2  ;;  %v2137_v20 = vpop.f32.mrf.mxu3 }
 0x339   : > { %v7038_v52 = vadd.f32 %v2098_v59, %v2060_v15  ;;  %v7040_v4 = vadd.f32 %v2137_v20, %v2061_v61  ;;  %v2181_v62 = vpop.f32.mrf.mxu0  ;;  %v2220_v38 = vpop.f32.mrf.mxu1 }
 0x33a   : > { %v7043_v29 = vadd.f32 %v2181_v62, %v6928_v56  ;;  %v7046_v32 = vadd.f32 %v2220_v38, %v6930_v10 }
 0x33c   : > { %4924 = vmatmul.msk.bf16.gmra.mxu0 %vm507_vm1, %v6109_v11  ;;  %4930 = vmatmul.msk.bf16.gmra.mxu1 %vm507_vm1, %v6109_v11 }
 0x33d   : > { %4936 = vmatmul.msk.bf16.gmra.mxu2 %vm507_vm1, %v8905_v19  ;;  %4942 = vmatmul.msk.bf16.gmra.mxu3 %vm507_vm1, %v8905_v19 }
 0x340   : > { %v7056_v26 = vpop.f32.mrf.mxu2  ;;  %v7058_v48 = vpop.f32.mrf.mxu3 }
 0x341   : > { %v2183_v56 = vpop.f32.mrf.mxu0  ;;  %v2222_v33 = vpop.f32.mrf.mxu1 }
 0x342   : > { %v7061_v10 = vadd.f32 %v2183_v56, %v6934_v30  ;;  %v7064_v24 = vadd.f32 %v2222_v33, %v6936_v45 }
 0x348   : > { %v7066_v5 = vpop.f32.mrf.mxu2  ;;  %v7068_v42 = vpop.f32.mrf.mxu3 }
 0x349   : > { %v2186_v63 = vpop.f32.mrf.mxu0  ;;  %v2225_v47 = vpop.f32.mrf.mxu1 }
 0x34a   : > { %v7071_v19 = vadd.f32 %v2186_v63, %v6948_v58  ;;  %v7074_v41 = vadd.f32 %v2225_v47, %v6950_v9 }
 0x34c   : > { %4925 = vmatmul.msk.bf16.gmra.mxu0 %vm507_vm1, %v8841_v55  ;;  %4931 = vmatmul.msk.bf16.gmra.mxu1 %vm507_vm1, %v8841_v55 }
 0x34d   : > { %4937 = vmatmul.msk.bf16.gmra.mxu2 %vm507_vm1, %v8908_v21  ;;  %4943 = vmatmul.msk.bf16.gmra.mxu3 %vm507_vm1, %v8908_v21 }
 0x350   : > { %v7084_v30 = vpop.f32.mrf.mxu2  ;;  %v7086_v45 = vpop.f32.mrf.mxu3 }
 0x351   : > { %v2188_v58 = vpop.f32.mrf.mxu0  ;;  %v2227_v28 = vpop.f32.mrf.mxu1 }
 0x352   : > { %v7089_v9 = vadd.f32 %v2188_v58, %v6954_v34  ;;  %v7092_v22 = vadd.f32 %v2227_v28, %v6956_v2 }
 0x358   : > { %v7094_v50 = vpop.f32.mrf.mxu2  ;;  %v7096_v13 = vpop.f32.mrf.mxu3 }
 0x359   : > { %v2191_v15 = vpop.f32.mrf.mxu0  ;;  %v2230_v61 = vpop.f32.mrf.mxu1 }
 0x35a   : > { %v7099_v21 = vadd.f32 %v2191_v15, %v6970_v3  ;;  %v7102_v59 = vadd.f32 %v2230_v61, %v6972_v39 }
 0x35c   : > { %8915 = vst [vmem:[#allocation29_spill] sm:$0xff] %v7099_v21  ;;  %4926 = vmatmul.msk.bf16.gmra.mxu0 %vm507_vm1, %v8845_v37  ;;  %4932 = vmatmul.msk.bf16.gmra.mxu1 %vm507_vm1, %v8845_v37 }
 0x35d   : > { %8916 = vst [vmem:[#allocation27_spill] sm:$0xff] %v7102_v59  ;;  %4938 = vmatmul.msk.bf16.gmra.mxu2 %vm507_vm1, %v8910_v27  ;;  %4944 = vmatmul.msk.bf16.gmra.mxu3 %vm507_vm1, %v8910_v27 }
 0x360   : > { %v7112_v34 = vpop.f32.mrf.mxu2  ;;  %v7114_v2 = vpop.f32.mrf.mxu3 }
 0x361   : > { %v2193_v3 = vpop.f32.mrf.mxu0  ;;  %v2232_v20 = vpop.f32.mrf.mxu1 }
 0x362   : > { %v7117_v39 = vadd.f32 %v2193_v3, %v6978_v49  ;;  %v7120_v62 = vadd.f32 %v2232_v20, %v6980_v54 }
 0x364   : > { %8917 = vst [vmem:[#allocation30_spill] sm:$0xff] %v7117_v39 }
 0x365   : > { %8918 = vst [vmem:[#allocation31_spill] sm:$0xff] %v7120_v62 }
 0x368   : > { %v7122_v38 = vpop.f32.mrf.mxu2  ;;  %v7124_v56 = vpop.f32.mrf.mxu3 }
 0x369   : > { %8919 = vst [vmem:[#allocation33_spill] sm:$0xff] %v7124_v56  ;;  %v2196_v33 = vpop.f32.mrf.mxu0  ;;  %v2235_v63 = vpop.f32.mrf.mxu1 }
 0x36a   : > { %v7127_v27 = vadd.f32 %v2196_v33, %v6992_v8  ;;  %v7130_v47 = vadd.f32 %v2235_v63, %v6994_v12 }
 0x36c   : > { %8920 = vst [vmem:[#allocation32_spill] sm:$0xff] %v7127_v27  ;;  %4927 = vmatmul.msk.bf16.gmra.mxu0 %vm507_vm1, %v8878_v6  ;;  %4933 = vmatmul.msk.bf16.gmra.mxu1 %vm507_vm1, %v8878_v6 }
 0x36d   : > { %8921 = vst [vmem:[#allocation37_spill] sm:$0xff] %v7130_v47  ;;  %4939 = vmatmul.msk.bf16.gmra.mxu2 %vm507_vm1, %v6611_v40  ;;  %4945 = vmatmul.msk.bf16.gmra.mxu3 %vm507_vm1, %v6611_v40 }
 0x370   : > { %v7140_v49 = vpop.f32.mrf.mxu2  ;;  %v7142_v54 = vpop.f32.mrf.mxu3 }
 0x371   : > { %v2198_v8 = vpop.f32.mrf.mxu0  ;;  %v2237_v58 = vpop.f32.mrf.mxu1 }
 0x372   : > { %v7145_v12 = vadd.f32 %v2198_v8, %v6998_v36  ;;  %v7148_v28 = vadd.f32 %v2237_v58, %v7000_v1 }
 0x374   : > { %8922 = vst [vmem:[#allocation34_spill] sm:$0xff] %v7145_v12  ;;  %v5020_v12 = vld [vmem:[%s8696_s3 + $0xc0] sm:$0xf] }
 0x375   : > { %8923 = vst [vmem:[#allocation36_spill] sm:$0xff] %v7148_v28 }
 0x378   : > { %v7150_v15 = vpop.f32.mrf.mxu2  ;;  %v7152_v61 = vpop.f32.mrf.mxu3 }
 0x379   : > { %8924 = vst [vmem:[#allocation35_spill] sm:$0xff] %v7150_v15  ;;  %v2201_v3 = vpop.f32.mrf.mxu0  ;;  %v2240_v20 = vpop.f32.mrf.mxu1 }
 0x37a   : > { %8925 = vst [vmem:[#allocation38_spill] sm:$0xff] %v7152_v61  ;;  %v7155_v40 = vadd.f32 %v2201_v3, %v7012_v31  ;;  %v7158_v33 = vadd.f32 %v2240_v20, %v7014_v53 }
 0x37c   : > { %8926 = vst [vmem:[#allocation39_spill] sm:$0xff] %v7155_v40  ;;  %4946 = vmatmul.msk.bf16.vlgmr.msrb.gmra.mxu0 %vm507_vm1, %v8870_v16  ;;  %4952 = vmatmul.msk.bf16.vlgmr.msrb.gmra.mxu1 %vm507_vm1, %v8870_v16  ;;  %v5076_v40 = vld [vmem:[%s8696_s3 + $0x30] sm:$0xf] }
 0x37d   : > { %8927 = vst [vmem:[#allocation11_spill] sm:$0xff] %v7158_v33  ;;  %4958 = vmatmul.msk.bf16.vlgmr.msrb.gmra.mxu2 %vm507_vm1, %v6073_v35  ;;  %4964 = vmatmul.msk.bf16.vlgmr.msrb.gmra.mxu3 %vm507_vm1, %v6073_v35 }
 0x380   : > { %v7168_v36 = vpop.f32.mrf.mxu2  ;;  %v7170_v1 = vpop.f32.mrf.mxu3 }
 0x381   : > { %v2203_v31 = vpop.f32.mrf.mxu0  ;;  %v2242_v63 = vpop.f32.mrf.mxu1 }
 0x382   : > { %v7173_v53 = vadd.f32 %v2203_v31, %v7018_v25  ;;  %v7176_v8 = vadd.f32 %v2242_v63, %v7020_v17 }
 0x384   : > { %8928 = vst [vmem:[#allocation10_spill] sm:$0xff] %v7173_v53 }
 0x385   : > { %8929 = vst [vmem:[#allocation8_spill] sm:$0xff] %v7176_v8 }
 0x388   : > { %v7178_v58 = vpop.f32.mrf.mxu2  ;;  %v7180_v16 = vpop.f32.mrf.mxu3 }
 0x389   : > { %8930 = vst [vmem:[#allocation9_spill] sm:$0xff] %v7178_v58  ;;  %v2206_v3 = vpop.f32.mrf.mxu0  ;;  %v2245_v20 = vpop.f32.mrf.mxu1  ;;  %v5568_v58 = vld [vmem:[%s8696_s3 + $0x14] sm:$0xf0] }
 0x38a   : > { %8931 = vst [vmem:[#allocation2_spill] sm:$0xff] %v7180_v16  ;;  %v7183_v35 = vadd.f32 %v2206_v3, %v7032_v44  ;;  %v7186_v33 = vadd.f32 %v2245_v20, %v7034_v57  ;;  %v5579_v3 = vld [vmem:[%s8696_s3 + $0x74] sm:$0xf]  ;;  %v5028_v16 = vld [vmem:[%s8696_s3 + $0xd0] sm:$0xf] }
 0x38c   : > { %8932 = vst [vmem:[#allocation3_spill] sm:$0xff] %v7183_v35  ;;  %4947 = vmatmul.msk.bf16.gmra.mxu0 %vm507_vm1, %v8871_v18  ;;  %4953 = vmatmul.msk.bf16.gmra.mxu1 %vm507_vm1, %v8871_v18  ;;  %v5108_v18 = vld [vmem:[%s8696_s3 + $0x70] sm:$0xf] }
 0x38d   : > { %8933 = vst [vmem:[#allocation14_spill] sm:$0xff] %v7186_v33  ;;  %4959 = vmatmul.msk.bf16.gmra.mxu2 %vm507_vm1, %v6109_v11  ;;  %4965 = vmatmul.msk.bf16.gmra.mxu3 %vm507_vm1, %v6109_v11  ;;  %v5580_v11 = vld [vmem:[%s8696_s3 + $0x74] sm:$0xf0] }
 0x38e   : > { %v7215_v20 = vor.u32 %v5580_v11, %v5108_v18  ;;  %v5044_v18 = vld [vmem:[%s8696_s3 + $0xf0] sm:$0xf]  ;;  %v5596_v11 = vld [vmem:[%s8696_s3 + $0xf4] sm:$0xf0] }
 0x390   : > { %v7196_v25 = vpop.f32.mrf.mxu2  ;;  %v7198_v17 = vpop.f32.mrf.mxu3  ;;  %8936 = vst [vmem:[#allocation41_spill] sm:$0xff] %v7215_v20  ;;  %3115 = vmatpush.bf16.msra.mxu2 %v7215_v20 }
 0x391   : > { %v2208_v44 = vpop.f32.mrf.mxu0  ;;  %v2247_v31 = vpop.f32.mrf.mxu1 }
 0x392   : > { %v7201_v57 = vadd.f32 %v2208_v44, %v7038_v52  ;;  %v7204_v63 = vadd.f32 %v2247_v31, %v7040_v4  ;;  %v5110_v52 = vld [vmem:[%s8696_s3 + $0x78] sm:$0xf0] }
 0x393   : > { %v7220_v4 = vor.u32 %v5579_v3, %v5110_v52  ;;  %v5595_v3 = vld [vmem:[%s8696_s3 + $0xf4] sm:$0xf]  ;;  %v7237_v52 = vor.u32 %v5596_v11, %v5044_v18  ;;  %v5100_v11 = vld [vmem:[%s8696_s3 + $0x60] sm:$0xf] }
 0x394   : > { %8934 = vst [vmem:[#allocation15_spill] sm:$0xff] %v7201_v57 }
 0x395   : > { %8935 = vst [vmem:[#allocation40_spill] sm:$0xff] %v7204_v63  ;;  %3144 = vmatpush.bf16.msra.mxu3 %v7220_v4  ;;  %2953 = vmatpush.bf16.msra.mxu0 %v7237_v52 }
 0x396   : > { %8937 = vst [vmem:[#allocation4_spill] sm:$0xff] %v7220_v4  ;;  %v5046_v4 = vld [vmem:[%s8696_s3 + $0xf8] sm:$0xf0] }
 0x397   : > { %v7242_v20 = vor.u32 %v5595_v3, %v5046_v4 }
 0x398   : > { %v7224_v44 = vpop.f32.mrf.mxu2  ;;  %v7226_v31 = vpop.f32.mrf.mxu3 }
 0x399   : > { %8938 = vst [vmem:[#allocation5_spill] sm:$0xff] %v7224_v44  ;;  %v2361_v63 = vpop.f32.mrf.mxu0  ;;  %v2400_v57 = vpop.f32.mrf.mxu1  ;;  %2982 = vmatpush.bf16.msra.mxu1 %v7242_v20 }
 0x39a   : > { %8939 = vst [vmem:[#allocation42_spill] sm:$0xff] %v7226_v31  ;;  %v2362_v18 = vadd.f32 %v2361_v63, %v7056_v26  ;;  %v2401_v4 = vadd.f32 %v2400_v57, %v7058_v48  ;;  %v5102_v26 = vld [vmem:[%s8696_s3 + $0x68] sm:$0xf0] }
 0x39c   : > { %4948 = vmatmul.msk.bf16.gmra.mxu0 %vm507_vm1, %v8872_v23  ;;  %4954 = vmatmul.msk.bf16.gmra.mxu1 %vm507_vm1, %v8872_v23  ;;  %v5578_v23 = vld [vmem:[%s8696_s3 + $0x64] sm:$0xf0] }
 0x39d   : > { %4960 = vmatmul.msk.bf16.gmra.mxu2 %vm507_vm1, %v8841_v55  ;;  %4966 = vmatmul.msk.bf16.gmra.mxu3 %vm507_vm1, %v8841_v55  ;;  %v5577_v55 = vld [vmem:[%s8696_s3 + $0x64] sm:$0xf]  ;;  %v7265_v35 = vor.u32 %v5578_v23, %v5100_v11  ;;  %v5036_v11 = vld [vmem:[%s8696_s3 + $0xe0] sm:$0xf]  ;;  %v5594_v23 = vld [vmem:[%s8696_s3 + $0xe4] sm:$0xf0] }
 0x39e   : > { %v7278_v44 = vor.u32 %v5577_v55, %v5102_v26  ;;  %v5092_v55 = vld [vmem:[%s8696_s3 + $0x50] sm:$0xf] }
 0x39f   : > { %8940 = vst [vmem:[#allocation43_spill] sm:$0xff] %v7265_v35  ;;  %3116 = vmatpush.bf16.msra.mxu2 %v7265_v35 }
 0x3a0   : > { %v2439_v3 = vpop.f32.mrf.mxu2  ;;  %v2478_v33 = vpop.f32.mrf.mxu3  ;;  %8941 = vst [vmem:[#allocation17_spill] sm:$0xff] %v7278_v44  ;;  %3145 = vmatpush.bf16.msra.mxu3 %v7278_v44 }
 0x3a1   : > { %v7270_v48 = vadd.f32 %v2439_v3, %v2362_v18  ;;  %v7272_v57 = vadd.f32 %v2478_v33, %v2401_v4  ;;  %v7274_v63 = vpop.f32.mrf.mxu0  ;;  %v7276_v31 = vpop.f32.mrf.mxu1  ;;  %v5593_v33 = vld [vmem:[%s8696_s3 + $0xe4] sm:$0xf]  ;;  %v7291_v18 = vor.u32 %v5594_v23, %v5036_v11  ;;  %v5038_v4 = vld [vmem:[%s8696_s3 + $0xe8] sm:$0xf0]  ;;  %v5576_v3 = vld [vmem:[%s8696_s3 + $0x54] sm:$0xf0] }
 0x3a2   : > { %v7302_v26 = vor.u32 %v5593_v33, %v5038_v4  ;;  %v7304_v35 = vor.u32 %v5576_v3, %v5092_v55  ;;  %v5575_v11 = vld [vmem:[%s8696_s3 + $0x54] sm:$0xf]  ;;  %v5094_v23 = vld [vmem:[%s8696_s3 + $0x58] sm:$0xf0]  ;;  %v5084_v33 = vld [vmem:[%s8696_s3 + $0x40] sm:$0xf] }
 0x3a3   : > { %2954 = vmatpush.bf16.msra.mxu0 %v7291_v18  ;;  %v7313_v44 = vor.u32 %v5575_v11, %v5094_v23  ;;  %v5574_v4 = vld [vmem:[%s8696_s3 + $0x44] sm:$0xf0]  ;;  %v5573_v55 = vld [vmem:[%s8696_s3 + $0x44] sm:$0xf] }
 0x3a4   : > { %8942 = vst [vmem:[#allocation16_spill] sm:$0xff] %v7304_v35  ;;  %2983 = vmatpush.bf16.msra.mxu1 %v7302_v26  ;;  %3117 = vmatpush.bf16.msra.mxu2 %v7304_v35  ;;  %v7331_v23 = vor.u32 %v5574_v4, %v5084_v33  ;;  %v5572_v33 = vld [vmem:[%s8696_s3 + $0x34] sm:$0xf0]  ;;  %v5571_v4 = vld [vmem:[%s8696_s3 + $0x34] sm:$0xf] }
 0x3a5   : > { %8943 = vst [vmem:[#allocation44_spill] sm:$0xff] %v7313_v44  ;;  %3146 = vmatpush.bf16.msra.mxu3 %v7313_v44  ;;  %v5086_v44 = vld [vmem:[%s8696_s3 + $0x48] sm:$0xf0] }
 0x3a6   : > { %8944 = vst [vmem:[#allocation45_spill] sm:$0xff] %v7331_v23  ;;  %v7336_v53 = vor.u32 %v5573_v55, %v5086_v44  ;;  %v7353_v44 = vor.u32 %v5572_v33, %v5076_v40  ;;  %v5078_v55 = vld [vmem:[%s8696_s3 + $0x38] sm:$0xf0]  ;;  %v5068_v40 = vld [vmem:[%s8696_s3 + $0x20] sm:$0xf] }
 0x3a7   : > { %v5570_v33 = vld [vmem:[%s8696_s3 + $0x24] sm:$0xf0] }
 0x3a8   : > { %v7327_v3 = vpop.f32.mrf.mxu2  ;;  %v7329_v11 = vpop.f32.mrf.mxu3  ;;  %8945 = vst [vmem:[#allocation46_spill] sm:$0xff] %v7336_v53  ;;  %3118 = vmatpush.bf16.msra.mxu2 %v7331_v23 }
 0x3a9   : > { %v2366_v35 = vpop.f32.mrf.mxu0  ;;  %v2405_v8 = vpop.f32.mrf.mxu1  ;;  %3147 = vmatpush.bf16.msra.mxu3 %v7336_v53  ;;  %8946 = vst [vmem:[#allocation47_spill] sm:$0xff] %v7353_v44  ;;  %v7362_v53 = vor.u32 %v5571_v4, %v5078_v55 }
 0x3aa   : > { %v2367_v23 = vadd.f32 %v2366_v35, %v7084_v30  ;;  %v5070_v30 = vld [vmem:[%s8696_s3 + $0x28] sm:$0xf0] }
 0x3ab   : > { %8947 = vst [vmem:[#allocation19_spill] sm:$0xff] %v7362_v53 }
 0x3ac   : > { %4949 = vmatmul.msk.bf16.gmra.mxu0 %vm507_vm1, %v8873_v43  ;;  %4955 = vmatmul.msk.bf16.gmra.mxu1 %vm507_vm1, %v8873_v43  ;;  %v2406_v43 = vadd.f32 %v2405_v8, %v7086_v45 }
 0x3ad   : > { %4961 = vmatmul.msk.bf16.gmra.mxu2 %vm507_vm1, %v8845_v37  ;;  %4967 = vmatmul.msk.bf16.gmra.mxu3 %vm507_vm1, %v8845_v37  ;;  %v5569_v37 = vld [vmem:[%s8696_s3 + $0x24] sm:$0xf] }
 0x3ae   : > { %3119 = vmatpush.bf16.msra.mxu2 %v7353_v44  ;;  %3148 = vmatpush.bf16.msra.mxu3 %v7362_v53  ;;  %v7377_v44 = vor.u32 %v5570_v33, %v5068_v40  ;;  %v5592_v40 = vld [vmem:[%s8696_s3 + $0xd4] sm:$0xf0]  ;;  %v5591_v33 = vld [vmem:[%s8696_s3 + $0xd4] sm:$0xf] }
 0x3b0   : > { %v2444_v4 = vpop.f32.mrf.mxu2  ;;  %v2483_v55 = vpop.f32.mrf.mxu3  ;;  %8948 = vst [vmem:[#allocation18_spill] sm:$0xff] %v7377_v44 }
 0x3b1   : > { %v7382_v45 = vadd.f32 %v2444_v4, %v2367_v23  ;;  %v7384_v8 = vadd.f32 %v2483_v55, %v2406_v43  ;;  %v7386_v35 = vpop.f32.mrf.mxu0  ;;  %v7388_v53 = vpop.f32.mrf.mxu1  ;;  %v7399_v23 = vor.u32 %v5569_v37, %v5070_v30  ;;  %v7401_v43 = vor.u32 %v5592_v40, %v5028_v16  ;;  %v5030_v4 = vld [vmem:[%s8696_s3 + $0xd8] sm:$0xf0]  ;;  %v5060_v55 = vld [vmem:[%s8696_s3 + $0x10] sm:$0xf]  ;;  %v5567_v37 = vld [vmem:[%s8696_s3 + $0x14] sm:$0xf] }
 0x3b2   : > { %3120 = vmatpush.bf16.msra.mxu2 %v7377_v44  ;;  %v7413_v28 = vor.u32 %v5591_v33, %v5030_v4  ;;  %v7416_v16 = vor.u32 %v5568_v58, %v5060_v55  ;;  %v5062_v30 = vld [vmem:[%s8696_s3 + $0x18] sm:$0xf0]  ;;  %v5052_v58 = vld [vmem:[%s8696_s3] sm:$0xf]  ;;  %v5566_v33 = vld [vmem:[%s8696_s3 + $0x4] sm:$0xf0] }
 0x3b3   : > { %8949 = vst [vmem:[#allocation21_spill] sm:$0xff] %v7399_v23  ;;  %3149 = vmatpush.bf16.msra.mxu3 %v7399_v23  ;;  %2955 = vmatpush.bf16.msra.mxu0 %v7401_v43  ;;  %v7425_v40 = vor.u32 %v5567_v37, %v5062_v30  ;;  %v5565_v4 = vld [vmem:[%s8696_s3 + $0x4] sm:$0xf]  ;;  %v7443_v30 = vor.u32 %v5566_v33, %v5052_v58  ;;  %v5590_v58 = vld [vmem:[%s8696_s3 + $0xc4] sm:$0xf0] }
 0x3b4   : > { %8950 = vst [vmem:[#allocation20_spill] sm:$0xff] %v7416_v16  ;;  %2984 = vmatpush.bf16.msra.mxu1 %v7413_v28  ;;  %v5589_v33 = vld [vmem:[%s8696_s3 + $0xc4] sm:$0xf]  ;;  %v7461_v47 = vor.u32 %v5590_v58, %v5020_v12  ;;  %v4632_v12 = vld [vmem:[%s5859_s12 + $0x1b0] sm:$0xff]  ;;  %v4633_v58 = vld [vmem:[%s5859_s12 + $0x1b8] sm:$0xff]  ;;  %s4590_s12 = sshll.u32 %s5766_s10, 1 }
 0x3b5   : > { %8951 = vst [vmem:[#allocation25_spill] sm:$0xff] %v7425_v40  ;;  %v449_v62 = vpack.c.bf16 %v4633_v58, %v4633_v58  ;;  %p329_p4 = scmp.lt.s32.totalorder %s4590_s12, 3 }
 0x3b6   : > { %3121 = vmatpush.bf16.msra.mxu2 %v7416_v16  ;;  %8952 = vst [vmem:[#allocation24_spill] sm:$0xff] %v7443_v30 }
 0x3b7   : > { %3150 = vmatpush.bf16.msra.mxu3 %v7425_v40  ;;  %v5054_v40 = vld [vmem:[%s8696_s3 + $0x8] sm:$0xf0]  ;;  %2956 = vmatpush.bf16.msra.mxu0 %v7461_v47  ;;  %v2637_v59 = vunpack.c.l.b16 %v449_v62  ;;  %s9062_s12 = smov (!%p329_p4, %s4590_s12), 3 }
 0x3b8   : > { %v7439_v55 = vpop.f32.mrf.mxu2  ;;  %v7441_v37 = vpop.f32.mrf.mxu3  ;;  %v7448_v44 = vor.u32 %v5565_v4, %v5054_v40  ;;  %v5022_v40 = vld [vmem:[%s8696_s3 + $0xc8] sm:$0xf0]  ;;  %s4591_s11 = sshll.u32 %s9062_s12, 3 }
 0x3b9   : > { %v2371_v16 = vpop.f32.mrf.mxu0  ;;  %v2410_v23 = vpop.f32.mrf.mxu1  ;;  %v7470_v4 = vor.u32 %v5589_v33, %v5022_v40  ;;  %s332_s15 = scalar_lea.vmem %s8702_s9, %s4591_s11 }
 0x3ba   : > { %8953 = vst [vmem:[#allocation6_spill] sm:$0xff] %v7448_v44  ;;  %3122 = vmatpush.bf16.msra.mxu2 %v7443_v30  ;;  %v2411_v30 = vadd.f32 %v2410_v23, %v7114_v2 }
 0x3bb   : > { %3151 = vmatpush.bf16.msra.mxu3 %v7448_v44  ;;  %2985 = vmatpush.bf16.msra.mxu1 %v7470_v4  ;;  %v2372_v44 = vadd.f32 %v2371_v16, %v7112_v34  ;;  %v5587_v16 = vld [vmem:[%s8696_s3 + $0xb4] sm:$0xf] }
 0x3bc   : > { %4950 = vmatmul.msk.bf16.gmra.mxu0 %vm507_vm1, %v8879_v46  ;;  %4956 = vmatmul.msk.bf16.gmra.mxu1 %vm507_vm1, %v8879_v46 }
 0x3bd   : > { %4962 = vmatmul.msk.bf16.gmra.mxu2 %vm507_vm1, %v8878_v6  ;;  %4968 = vmatmul.msk.bf16.gmra.mxu3 %vm507_vm1, %v8878_v6  ;;  %v448_v6 = vpack.c.bf16 %v4632_v12, %v4632_v12 }
 0x3bf   : > { %v2636_v39 = vunpack.c.l.b16 %v448_v6 }
 0x3c0   : > { %v2449_v27 = vpop.f32.mrf.mxu2  ;;  %v2488_v46 = vpop.f32.mrf.mxu3 }
 0x3c1   : > { %v7482_v33 = vadd.f32 %v2449_v27, %v2372_v44  ;;  %v7484_v40 = vadd.f32 %v2488_v46, %v2411_v30  ;;  %v7486_v61 = vpop.f32.mrf.mxu0  ;;  %v7488_v15 = vpop.f32.mrf.mxu1  ;;  %v2638_v23 = vpack.c.b16 %v2637_v59, %v2636_v39  ;;  %v5012_v27 = vld [vmem:[%s8696_s3 + $0xb0] sm:$0xf]  ;;  %v5588_v44 = vld [vmem:[%s8696_s3 + $0xb4] sm:$0xf0]  ;;  %v5014_v30 = vld [vmem:[%s8696_s3 + $0xb8] sm:$0xf0] }
 0x3c2   : > { %v7503_v62 = vor.u32 %v5588_v44, %v5012_v27  ;;  %v7508_v12 = vor.u32 %v5587_v16, %v5014_v30 }
 0x3c4   : > { %2957 = vmatpush.bf16.msra.mxu0 %v7503_v62  ;;  %2986 = vmatpush.bf16.msra.mxu1 %v7508_v12 }
 0x3c8   : > { %v7490_v21 = vpop.f32.mrf.mxu2  ;;  %v7492_v56 = vpop.f32.mrf.mxu3 }
 0x3c9   : > { %v2376_v34 = vpop.f32.mrf.mxu0  ;;  %v2415_v2 = vpop.f32.mrf.mxu1 }
 0x3ca   : > { %v2377_v59 = vadd.f32 %v2376_v34, %v7140_v49  ;;  %v2416_v39 = vadd.f32 %v2415_v2, %v7142_v54  ;;  %v5586_v49 = vld [vmem:[%s8696_s3 + $0xa4] sm:$0xf0]  ;;  %v5585_v54 = vld [vmem:[%s8696_s3 + $0xa4] sm:$0xf]  ;;  %v5006_v2 = vld [vmem:[%s8696_s3 + $0xa8] sm:$0xf0] }
 0x3cb   : > { %v7542_v16 = vor.u32 %v5585_v54, %v5006_v2 }
 0x3cc   : > { %4951 = vmatmul.msk.bf16.gmra.mxu0 %vm507_vm1, %v6976_v60  ;;  %4957 = vmatmul.msk.bf16.gmra.mxu1 %vm507_vm1, %v6976_v60 }
 0x3cd   : > { %4963 = vmatmul.msk.bf16.gmra.mxu2 %vm507_vm1, %v2638_v23  ;;  %4969 = vmatmul.msk.bf16.gmra.mxu3 %vm507_vm1, %v2638_v23  ;;  %v5004_v23 = vld [vmem:[%s8696_s3 + $0xa0] sm:$0xf] }
 0x3ce   : > { %v7537_v34 = vor.u32 %v5586_v49, %v5004_v23  ;;  %2987 = vmatpush.bf16.msra.mxu1 %v7542_v16 }
 0x3d0   : > { %v2454_v58 = vpop.f32.mrf.mxu2  ;;  %v2493_v46 = vpop.f32.mrf.mxu3  ;;  %2958 = vmatpush.bf16.msra.mxu0 %v7537_v34 }
 0x3d1   : > { %v7520_v6 = vadd.f32 %v2454_v58, %v2377_v59  ;;  %v7522_v27 = vadd.f32 %v2493_v46, %v2416_v39  ;;  %v7524_v44 = vpop.f32.mrf.mxu0  ;;  %v7526_v60 = vpop.f32.mrf.mxu1 }
 0x3d2   : > { %8955 = vst [vmem:[#allocation12_spill] sm:$0xff] %v7524_v44 }
 0x3d3   : > { %8954 = vst [vmem:[#allocation7_spill] sm:$0xff] %v7522_v27  ;;  %v2403_v27 = vadd.f32 %v7276_v31, %v7068_v42 }
 0x3d4   : > { %8956 = vst [vmem:[#allocation13_spill] sm:$0xff] %v7526_v60 }
 0x3d5   : > { %v2511_v31 = vadd.f32 %v7329_v11, %v2403_v27 }
 0x3d8   : > { %v7546_v30 = vpop.f32.mrf.mxu2  ;;  %v7548_v59 = vpop.f32.mrf.mxu3 }
 0x3d9   : > { %8957 = vst [vmem:[#allocation48_spill] sm:$0xff] %v7546_v30  ;;  %v2381_v39 = vpop.f32.mrf.mxu0  ;;  %v2420_v58 = vpop.f32.mrf.mxu1 }
 0x3da   : > { %8958 = vst [vmem:[#allocation49_spill] sm:$0xff] %v7548_v59  ;;  %v2382_v46 = vadd.f32 %v2381_v39, %v7168_v36  ;;  %v2421_v23 = vadd.f32 %v2420_v58, %v7170_v1  ;;  %v5268_v59 = vld [vmem:[%s8696_s3 + $0x1f0] sm:$0xf]  ;;  %v5627_v36 = vld [vmem:[%s8696_s3 + $0x1f4] sm:$0xf] }
 0x3dd   : > { %3123 = vmatmul.bf16.vlgmr.msra.gmra.mxu2 %v6718_v7  ;;  %3152 = vmatmul.bf16.vlgmr.msra.gmra.mxu3 %v6718_v7  ;;  %v5628_v7 = vld [vmem:[%s8696_s3 + $0x1f4] sm:$0xf0] }
 0x3de   : > { %v7575_v58 = vor.u32 %v5628_v7, %v5268_v59  ;;  %v5626_v59 = vld [vmem:[%s8696_s3 + $0x1e4] sm:$0xf0]  ;;  %v5625_v7 = vld [vmem:[%s8696_s3 + $0x1e4] sm:$0xf] }
 0x3e0   : > { %v2459_v49 = vpop.f32.mrf.mxu2  ;;  %v2498_v54 = vpop.f32.mrf.mxu3  ;;  %8965 = vst [vmem:[#allocation56_spill] sm:$0xff] %v7575_v58  ;;  %3453 = vmatpush.bf16.msrb.mxu2 %v7575_v58 }
 0x3e1   : > { %v7554_v2 = vadd.f32 %v2459_v49, %v2382_v46  ;;  %v7556_v60 = vadd.f32 %v2498_v54, %v2421_v23  ;;  %v7558_v44 = vpop.f32.mrf.mxu0  ;;  %v7560_v30 = vpop.f32.mrf.mxu1  ;;  %v5270_v46 = vld [vmem:[%s8696_s3 + $0x1f8] sm:$0xf0] }
 0x3e2   : > { %8961 = vst [vmem:[#allocation52_spill] sm:$0xff] %v7558_v44  ;;  %v7580_v54 = vor.u32 %v5627_v36, %v5270_v46  ;;  %v5262_v36 = vld [vmem:[%s8696_s3 + $0x1e8] sm:$0xf0]  ;;  %v4996_v46 = vld [vmem:[%s8696_s3 + $0x90] sm:$0xf] }
 0x3e3   : > { %8959 = vst [vmem:[#allocation50_spill] sm:$0xff] %v7554_v2  ;;  %v2364_v2 = vadd.f32 %v7274_v63, %v7066_v5  ;;  %v5613_v5 = vld [vmem:[%s8696_s3 + $0x184] sm:$0xf] }
 0x3e4   : > { %8960 = vst [vmem:[#allocation51_spill] sm:$0xff] %v7556_v60  ;;  %3482 = vmatpush.bf16.msrb.mxu3 %v7580_v54 }
 0x3e5   : > { %8962 = vst [vmem:[#allocation53_spill] sm:$0xff] %v7560_v30 }
 0x3e6   : > { %8966 = vst [vmem:[#allocation57_spill] sm:$0xff] %v7580_v54  ;;  %v5584_v54 = vld [vmem:[%s8696_s3 + $0x94] sm:$0xf0] }
 0x3e7   : > { %v7611_v58 = vor.u32 %v5584_v54, %v4996_v46  ;;  %v5624_v54 = vld [vmem:[%s8696_s3 + $0x1d4] sm:$0xf0] }
 0x3e8   : > { %v7571_v1 = vpop.f32.mrf.mxu2  ;;  %v7573_v39 = vpop.f32.mrf.mxu3 }
 0x3e9   : > { %8963 = vst [vmem:[#allocation54_spill] sm:$0xff] %v7571_v1  ;;  %v2386_v23 = vpop.f32.mrf.mxu0  ;;  %v2425_v49 = vpop.f32.mrf.mxu1  ;;  %v5260_v1 = vld [vmem:[%s8696_s3 + $0x1e0] sm:$0xf]  ;;  %2959 = vmatpush.bf16.msra.mxu0 %v7611_v58 }
 0x3ea   : > { %8964 = vst [vmem:[#allocation55_spill] sm:$0xff] %v7573_v39  ;;  %v7593_v39 = vor.u32 %v5626_v59, %v5260_v1  ;;  %v5583_v1 = vld [vmem:[%s8696_s3 + $0x94] sm:$0xf]  ;;  %v7609_v59 = vor.u32 %v5625_v7, %v5262_v36  ;;  %v2387_v30 = vadd.f32 %v2386_v23, %v7196_v25  ;;  %v2426_v44 = vadd.f32 %v2425_v49, %v7198_v17  ;;  %v5252_v7 = vld [vmem:[%s8696_s3 + $0x1d0] sm:$0xf] }
 0x3eb   : > { %v5623_v36 = vld [vmem:[%s8696_s3 + $0x1d4] sm:$0xf]  ;;  %v5254_v17 = vld [vmem:[%s8696_s3 + $0x1d8] sm:$0xf0] }
 0x3ec   : > { %8967 = vst [vmem:[#allocation58_spill] sm:$0xff] %v7593_v39  ;;  %3454 = vmatpush.bf16.msrb.mxu2 %v7593_v39  ;;  %3483 = vmatpush.bf16.msrb.mxu3 %v7609_v59  ;;  %v7646_v39 = vor.u32 %v5623_v36, %v5254_v17  ;;  %v4990_v36 = vld [vmem:[%s8696_s3 + $0x88] sm:$0xf0] }
 0x3ed   : > { %3128 = vmatmul.bf16.gmra.mxu2 %v6738_v14  ;;  %3157 = vmatmul.bf16.gmra.mxu3 %v6738_v14  ;;  %8968 = vst [vmem:[#allocation59_spill] sm:$0xff] %v7609_v59  ;;  %v4998_v14 = vld [vmem:[%s8696_s3 + $0x98] sm:$0xf0] }
 0x3ee   : > { %v7619_v60 = vor.u32 %v5583_v1, %v4998_v14  ;;  %v7632_v14 = vor.u32 %v5624_v54, %v5252_v7  ;;  %8974 = vst [vmem:[#allocation65_spill] sm:$0xff] %v7646_v39  ;;  %v4988_v7 = vld [vmem:[%s8696_s3 + $0x80] sm:$0xf] }
 0x3f0   : > { %v2464_v46 = vpop.f32.mrf.mxu2  ;;  %v2503_v25 = vpop.f32.mrf.mxu3  ;;  %8969 = vst [vmem:[#allocation60_spill] sm:$0xff] %v7632_v14  ;;  %2988 = vmatpush.bf16.msra.mxu1 %v7619_v60  ;;  %3455 = vmatpush.bf16.msrb.mxu2 %v7632_v14 }
 0x3f1   : > { %v7637_v23 = vadd.f32 %v2464_v46, %v2387_v30  ;;  %v7639_v49 = vadd.f32 %v2503_v25, %v2426_v44  ;;  %v7641_v1 = vpop.f32.mrf.mxu0  ;;  %v7643_v59 = vpop.f32.mrf.mxu1  ;;  %v5582_v30 = vld [vmem:[%s8696_s3 + $0x84] sm:$0xf0]  ;;  %v5581_v44 = vld [vmem:[%s8696_s3 + $0x84] sm:$0xf]  ;;  %3484 = vmatpush.bf16.msrb.mxu3 %v7646_v39  ;;  %v5244_v46 = vld [vmem:[%s8696_s3 + $0x1c0] sm:$0xf] }
 0x3f2   : > { %8972 = vst [vmem:[#allocation63_spill] sm:$0xff] %v7641_v1  ;;  %v7659_v54 = vor.u32 %v5582_v30, %v4988_v7  ;;  %v5622_v25 = vld [vmem:[%s8696_s3 + $0x1c4] sm:$0xf0]  ;;  %v7670_v17 = vor.u32 %v5581_v44, %v4990_v36  ;;  %v5621_v7 = vld [vmem:[%s8696_s3 + $0x1c4] sm:$0xf] }
 0x3f3   : > { %8970 = vst [vmem:[#allocation61_spill] sm:$0xff] %v7637_v23  ;;  %v7672_v14 = vor.u32 %v5622_v25, %v5244_v46  ;;  %v5246_v30 = vld [vmem:[%s8696_s3 + $0x1c8] sm:$0xf0]  ;;  %v5236_v44 = vld [vmem:[%s8696_s3 + $0x1b0] sm:$0xf] }
 0x3f4   : > { %8971 = vst [vmem:[#allocation62_spill] sm:$0xff] %v7639_v49  ;;  %2960 = vmatpush.bf16.msra.mxu0 %v7659_v54  ;;  %v7681_v39 = vor.u32 %v5621_v7, %v5246_v30  ;;  %2989 = vmatpush.bf16.msra.mxu1 %v7670_v17  ;;  %v5620_v36 = vld [vmem:[%s8696_s3 + $0x1b4] sm:$0xf0]  ;;  %v5619_v46 = vld [vmem:[%s8696_s3 + $0x1b4] sm:$0xf] }
 0x3f5   : > { %8973 = vst [vmem:[#allocation64_spill] sm:$0xff] %v7643_v59  ;;  %3456 = vmatpush.bf16.msrb.mxu2 %v7672_v14  ;;  %v7699_v30 = vor.u32 %v5620_v36, %v5236_v44  ;;  %v5617_v44 = vld [vmem:[%s8696_s3 + $0x1a4] sm:$0xf] }
 0x3f6   : > { %8975 = vst [vmem:[#allocation66_spill] sm:$0xff] %v7672_v14  ;;  %3485 = vmatpush.bf16.msrb.mxu3 %v7681_v39  ;;  %v5238_v14 = vld [vmem:[%s8696_s3 + $0x1b8] sm:$0xf0] }
 0x3f7   : > { %8976 = vst [vmem:[#allocation67_spill] sm:$0xff] %v7681_v39  ;;  %v7704_v49 = vor.u32 %v5619_v46, %v5238_v14  ;;  %v5618_v39 = vld [vmem:[%s8696_s3 + $0x1a4] sm:$0xf0]  ;;  %v5230_v14 = vld [vmem:[%s8696_s3 + $0x1a8] sm:$0xf0] }
 0x3f8   : > { %v7694_v25 = vpop.f32.mrf.mxu2  ;;  %v7696_v7 = vpop.f32.mrf.mxu3  ;;  %8979 = vst [vmem:[#allocation70_spill] sm:$0xff] %v7699_v30  ;;  %v7724_v46 = vor.u32 %v5617_v44, %v5230_v14 }
 0x3f9   : > { %8977 = vst [vmem:[#allocation68_spill] sm:$0xff] %v7694_v25  ;;  %v2541_v59 = vpop.f32.mrf.mxu0  ;;  %v2580_v1 = vpop.f32.mrf.mxu1  ;;  %3457 = vmatpush.bf16.msrb.mxu2 %v7699_v30  ;;  %v5228_v25 = vld [vmem:[%s8696_s3 + $0x1a0] sm:$0xf] }
 0x3fa   : > { %8978 = vst [vmem:[#allocation69_spill] sm:$0xff] %v7696_v7  ;;  %3486 = vmatpush.bf16.msrb.mxu3 %v7704_v49  ;;  %v7717_v36 = vor.u32 %v5618_v39, %v5228_v25  ;;  %v2610_v30 = vadd.f32 %v2541_v59, %v7270_v48  ;;  %v2611_v7 = vadd.f32 %v2580_v1, %v7272_v57  ;;  %v5220_v39 = vld [vmem:[%s8696_s3 + $0x190] sm:$0xf]  ;;  %v5616_v25 = vld [vmem:[%s8696_s3 + $0x194] sm:$0xf0] }
 0x3fb   : > { %8980 = vst [vmem:[#allocation71_spill] sm:$0xff] %v7704_v49  ;;  %v5615_v49 = vld [vmem:[%s8696_s3 + $0x194] sm:$0xf]  ;;  %v7739_v48 = vor.u32 %v5616_v25, %v5220_v39  ;;  %v5222_v57 = vld [vmem:[%s8696_s3 + $0x198] sm:$0xf0] }
 0x3fc   : > { %8981 = vst [vmem:[#allocation72_spill] sm:$0xff] %v7717_v36  ;;  %v7744_v23 = vor.u32 %v5615_v49, %v5222_v57  ;;  %v5614_v49 = vld [vmem:[%s8696_s3 + $0x184] sm:$0xf0]  ;;  %v5612_v57 = vld [vmem:[%s8696_s3 + $0x174] sm:$0xf0] }
 0x3fd   : > { %3133 = vmatmul.bf16.gmra.mxu2 %v6758_v51  ;;  %3162 = vmatmul.bf16.gmra.mxu3 %v6758_v51  ;;  %8982 = vst [vmem:[#allocation73_spill] sm:$0xff] %v7724_v46 }
 0x3fe   : > { %3458 = vmatpush.bf16.msrb.mxu2 %v7717_v36  ;;  %3487 = vmatpush.bf16.msrb.mxu3 %v7724_v46 }
 0x400   : > { %v2651_v44 = vpop.f32.mrf.mxu2  ;;  %v2690_v14 = vpop.f32.mrf.mxu3 }
 0x401   : > { %v2720_v59 = vadd.f32 %v2651_v44, %v2610_v30  ;;  %v2721_v1 = vadd.f32 %v2690_v14, %v2611_v7  ;;  %v2543_v36 = vpop.f32.mrf.mxu0  ;;  %v2582_v51 = vpop.f32.mrf.mxu1  ;;  %v5212_v7 = vld [vmem:[%s8696_s3 + $0x180] sm:$0xf]  ;;  %v5188_v14 = vld [vmem:[%s8696_s3 + $0x170] sm:$0xf] }
 0x402   : > { %3459 = vmatpush.bf16.msrb.mxu2 %v7739_v48  ;;  %3488 = vmatpush.bf16.msrb.mxu3 %v7744_v23  ;;  %v7763_v42 = vor.u32 %v5614_v49, %v5212_v7  ;;  %v2613_v44 = vadd.f32 %v2582_v51, %v2511_v31 }
 0x403   : > { %v2744_v46 = vmax.f32 %v7043_v29, %v2720_v59  ;;  %v2745_v39 = vmax.f32 %v7046_v32, %v2721_v1  ;;  %v5214_v29 = vld [vmem:[%s8696_s3 + $0x188] sm:$0xf0]  ;;  %v2510_v32 = vadd.f32 %v7327_v3, %v2364_v2  ;;  %v5611_v59 = vld [vmem:[%s8696_s3 + $0x174] sm:$0xf]  ;;  %v7785_v3 = vld [vmem:[%s8695_s2] ss:$0 sm:$0xff]  ;;  %v7788_v2 = vor.u32 %v5612_v57, %v5188_v14 }
 0x404   : > { %v7770_v30 = vor.u32 %v5613_v5, %v5214_v29 }
 0x405   : > { %v2768_v63 = vmax.f32 %v2744_v46, %v2745_v39  ;;  %v2612_v25 = vadd.f32 %v2543_v36, %v2510_v32  ;;  %v5190_v36 = vld [vmem:[%s8696_s3 + $0x178] sm:$0xf0]  ;;  %3276 = vmatpush.bf16.msrb.mxu0 %v7788_v2 }
 0x406   : > { %3460 = vmatpush.bf16.msrb.mxu2 %v7763_v42  ;;  %3489 = vmatpush.bf16.msrb.mxu3 %v7770_v30  ;;  %v7795_v49 = vor.u32 %v5611_v59, %v5190_v36 }
 0x407   : > { %v2780_v51 = vadd.f32 %v7785_v3, %v2768_v63 }
 0x408   : > { %v2653_v11 = vpop.f32.mrf.mxu2  ;;  %v2692_v27 = vpop.f32.mrf.mxu3  ;;  %3305 = vmatpush.bf16.msrb.mxu1 %v7795_v49 }
 0x409   : > { %v2722_v46 = vadd.f32 %v2653_v11, %v2612_v25  ;;  %v2723_v1 = vadd.f32 %v2692_v27, %v2613_v44  ;;  %v2546_v39 = vpop.f32.mrf.mxu0  ;;  %v2585_v7 = vpop.f32.mrf.mxu1  ;;  %v2792_v32 = vmax.f32 %v2780_v51, 0.0 }
 0x40a   : > { %3704 = vmatpush.bf16.msra.mxu2 %v7237_v52  ;;  %3733 = vmatpush.bf16.msra.mxu3 %v7242_v20  ;;  %v5180_v20 = vld [vmem:[%s8696_s3 + $0x160] sm:$0xf]  ;;  %v2614_v25 = vadd.f32 %v2546_v39, %v7382_v45  ;;  %v2615_v44 = vadd.f32 %v2585_v7, %v7384_v8  ;;  %v2369_v45 = vadd.f32 %v7386_v35, %v7094_v50 }
 0x40b   : > { %v2746_v5 = vmax.f32 %v7061_v10, %v2722_v46  ;;  %v2747_v29 = vmax.f32 %v7064_v24, %v2723_v1  ;;  %v5610_v10 = vld [vmem:[%s8696_s3 + $0x164] sm:$0xf0]  ;;  %v5609_v24 = vld [vmem:[%s8696_s3 + $0x164] sm:$0xf]  ;;  %v2804_v51 = vpack.c.bf16 %v2792_v32, %v2792_v32  ;;  %v2408_v8 = vadd.f32 %v7388_v53, %v7096_v13 }
 0x40c   : > { %v7814_v31 = vor.u32 %v5610_v10, %v5180_v20  ;;  %v2514_v7 = vadd.f32 %v7439_v55, %v2369_v45 }
 0x40d   : > { %v2769_v52 = vmax.f32 %v2746_v5, %v2747_v29  ;;  %3138 = vmatmul.bf16.gmra.mxu2 %v6786_v0  ;;  %3167 = vmatmul.bf16.gmra.mxu3 %v6786_v0  ;;  %v2515_v5 = vadd.f32 %v7441_v37, %v2408_v8  ;;  %v2857_v29 = vunpack.c.l.b16 %v2804_v51  ;;  %v5606_v51 = vld [vmem:[%s8696_s3 + $0x144] sm:$0xf0] }
 0x40e   : > { %3705 = vmatpush.bf16.msra.mxu2 %v7291_v18  ;;  %v5182_v18 = vld [vmem:[%s8696_s3 + $0x168] sm:$0xf0]  ;;  %3734 = vmatpush.bf16.msra.mxu3 %v7302_v26 }
 0x40f   : > { %v2781_v63 = vadd.f32 %v7785_v3, %v2769_v52  ;;  %v7823_v14 = vor.u32 %v5609_v24, %v5182_v18  ;;  %3277 = vmatpush.bf16.msrb.mxu0 %v7814_v31 }
 0x410   : > { %v2656_v57 = vpop.f32.mrf.mxu2  ;;  %v2695_v59 = vpop.f32.mrf.mxu3 }
 0x411   : > { %v2793_v11 = vmax.f32 %v2781_v63, 0.0  ;;  %v2724_v27 = vadd.f32 %v2656_v57, %v2614_v25  ;;  %v2725_v36 = vadd.f32 %v2695_v59, %v2615_v44  ;;  %v2548_v46 = vpop.f32.mrf.mxu0  ;;  %v2587_v26 = vpop.f32.mrf.mxu1  ;;  %3306 = vmatpush.bf16.msrb.mxu1 %v7823_v14  ;;  %v5164_v59 = vld [vmem:[%s8696_s3 + $0x140] sm:$0xf] }
 0x412   : > { %3706 = vmatpush.bf16.msra.mxu2 %v7401_v43  ;;  %3735 = vmatpush.bf16.msra.mxu3 %v7413_v28  ;;  %v2616_v28 = vadd.f32 %v2548_v46, %v2514_v7  ;;  %v2617_v13 = vadd.f32 %v2587_v26, %v2515_v5 }
 0x413   : > { %v2805_v1 = vpack.c.bf16 %v2793_v11, %v2793_v11  ;;  %v2748_v39 = vmax.f32 %v7071_v19, %v2724_v27  ;;  %v2749_v43 = vmax.f32 %v7074_v41, %v2725_v36  ;;  %v5172_v19 = vld [vmem:[%s8696_s3 + $0x150] sm:$0xf]  ;;  %v5608_v41 = vld [vmem:[%s8696_s3 + $0x154] sm:$0xf0] }
 0x414   : > { %v7851_v37 = vor.u32 %v5608_v41, %v5172_v19 }
 0x415   : > { %v2858_v32 = vunpack.c.l.b16 %v2805_v1  ;;  %v2770_v52 = vmax.f32 %v2748_v39, %v2749_v43 }
 0x416   : > { %3707 = vmatpush.bf16.msra.mxu2 %v7461_v47  ;;  %3736 = vmatpush.bf16.msra.mxu3 %v7470_v4  ;;  %v5607_v47 = vld [vmem:[%s8696_s3 + $0x154] sm:$0xf]  ;;  %v5174_v4 = vld [vmem:[%s8696_s3 + $0x158] sm:$0xf0] }
 0x417   : > { %v7839_v50 = vpack.c.b16 %v2858_v32, %v2857_v29  ;;  %v2782_v53 = vadd.f32 %v7785_v3, %v2770_v52  ;;  %v7859_v63 = vor.u32 %v5607_v47, %v5174_v4  ;;  %3278 = vmatpush.bf16.msrb.mxu0 %v7851_v37  ;;  %v8984_v29 = vld [vmem:[#allocation29_spill] sm:$0xff] }
 0x418   : > { %v2658_v35 = vpop.f32.mrf.mxu2  ;;  %v2697_v55 = vpop.f32.mrf.mxu3 }
 0x419   : > { %v2726_v20 = vadd.f32 %v2658_v35, %v2616_v28  ;;  %v2727_v10 = vadd.f32 %v2697_v55, %v2617_v13  ;;  %2961 = vmatmul.bf16.vlgmr.msra.gmra.mxu0 %v7839_v50  ;;  %2990 = vmatmul.bf16.vlgmr.msra.gmra.mxu1 %v7839_v50  ;;  %v2551_v24 = vpop.f32.mrf.mxu0  ;;  %v2590_v18 = vpop.f32.mrf.mxu1  ;;  %v5158_v55 = vld [vmem:[%s8696_s3 + $0x138] sm:$0xf0] }
 0x41a   : > { %3708 = vmatpush.bf16.msra.mxu2 %v7503_v62  ;;  %3737 = vmatpush.bf16.msra.mxu3 %v7508_v12  ;;  %v2794_v62 = vmax.f32 %v2782_v53, 0.0  ;;  %v7876_v12 = vor.u32 %v5606_v51, %v5164_v59  ;;  %v2618_v11 = vadd.f32 %v2551_v24, %v7482_v33  ;;  %v2619_v27 = vadd.f32 %v2590_v18, %v7484_v40  ;;  %v8983_v40 = vld [vmem:[#allocation33_spill] sm:$0xff]  ;;  %v5156_v53 = vld [vmem:[%s8696_s3 + $0x130] sm:$0xf]  ;;  %v5148_v51 = vld [vmem:[%s8696_s3 + $0x120] sm:$0xf] }
 0x41b   : > { %v2750_v25 = vmax.f32 %v7089_v9, %v2726_v20  ;;  %v2751_v44 = vmax.f32 %v7092_v22, %v2727_v10  ;;  %3307 = vmatpush.bf16.msrb.mxu1 %v7859_v63  ;;  %v5605_v9 = vld [vmem:[%s8696_s3 + $0x144] sm:$0xf]  ;;  %v5166_v22 = vld [vmem:[%s8696_s3 + $0x148] sm:$0xf0]  ;;  %v2374_v33 = vadd.f32 %v7486_v61, %v7122_v38  ;;  %v2413_v7 = vadd.f32 %v7488_v15, %v8983_v40 }
 0x41c   : > { %v7885_v36 = vor.u32 %v5605_v9, %v5166_v22  ;;  %3279 = vmatpush.bf16.msrb.mxu0 %v7876_v12  ;;  %v2806_v45 = vpack.c.bf16 %v2794_v62, %v2794_v62  ;;  %v5602_v9 = vld [vmem:[%s8696_s3 + $0x124] sm:$0xf0]  ;;  %v5601_v22 = vld [vmem:[%s8696_s3 + $0x124] sm:$0xf] }
 0x41d   : > { %v2771_v57 = vmax.f32 %v2750_v25, %v2751_v44  ;;  %v2518_v28 = vadd.f32 %v7490_v21, %v2374_v33  ;;  %v2519_v13 = vadd.f32 %v7492_v56, %v2413_v7  ;;  %v5604_v21 = vld [vmem:[%s8696_s3 + $0x134] sm:$0xf0]  ;;  %v5603_v56 = vld [vmem:[%s8696_s3 + $0x134] sm:$0xf]  ;;  %v8986_v44 = vld [vmem:[#allocation30_spill] sm:$0xff] }
 0x41e   : > { %3709 = vmatpush.bf16.msra.mxu2 %v7537_v34  ;;  %3738 = vmatpush.bf16.msra.mxu3 %v7542_v16  ;;  %v2859_v19 = vunpack.c.l.b16 %v2806_v45  ;;  %v7913_v35 = vor.u32 %v5604_v21, %v5156_v53  ;;  %v7920_v18 = vor.u32 %v5603_v56, %v5158_v55  ;;  %v8994_v53 = vld [vmem:[#allocation37_spill] sm:$0xff]  ;;  %v8995_v56 = vld [vmem:[#allocation48_spill] sm:$0xff] }
 0x41f   : > { %v2783_v34 = vadd.f32 %v7785_v3, %v2771_v57  ;;  %3308 = vmatpush.bf16.msrb.mxu1 %v7885_v36  ;;  %v8987_v57 = vld [vmem:[#allocation31_spill] sm:$0xff] }
 0x420   : > { %v2661_v46 = vpop.f32.mrf.mxu2  ;;  %v2700_v26 = vpop.f32.mrf.mxu3  ;;  %3280 = vmatpush.bf16.msrb.mxu0 %v7913_v35 }
 0x421   : > { %v2795_v8 = vmax.f32 %v2783_v34, 0.0  ;;  %v2728_v1 = vadd.f32 %v2661_v46, %v2618_v11  ;;  %v2729_v39 = vadd.f32 %v2700_v26, %v2619_v27  ;;  %v2553_v43 = vpop.f32.mrf.mxu0  ;;  %v2592_v16 = vpop.f32.mrf.mxu1  ;;  %v7939_v11 = vor.u32 %v5602_v9, %v5148_v51  ;;  %v5150_v27 = vld [vmem:[%s8696_s3 + $0x128] sm:$0xf0] }
 0x422   : > { %3710 = vmatpush.bf16.msra.mxu2 %v7611_v58  ;;  %3739 = vmatpush.bf16.msra.mxu3 %v7619_v60  ;;  %v8985_v58 = vld [vmem:[#allocation27_spill] sm:$0xff]  ;;  %v2620_v61 = vadd.f32 %v2553_v43, %v2518_v28  ;;  %v2621_v60 = vadd.f32 %v2592_v16, %v2519_v13  ;;  %v7944_v46 = vor.u32 %v5601_v22, %v5150_v27  ;;  %v5140_v43 = vld [vmem:[%s8696_s3 + $0x110] sm:$0xf]  ;;  %v5600_v16 = vld [vmem:[%s8696_s3 + $0x114] sm:$0xf0] }
 0x423   : > { %v2807_v5 = vpack.c.bf16 %v2795_v8, %v2795_v8  ;;  %v2752_v32 = vmax.f32 %v8984_v29, %v2728_v1  ;;  %v2753_v52 = vmax.f32 %v8985_v58, %v2729_v39  ;;  %3309 = vmatpush.bf16.msrb.mxu1 %v7920_v18  ;;  %v8988_v8 = vld [vmem:[#allocation7_spill] sm:$0xff]  ;;  %v5142_v58 = vld [vmem:[%s8696_s3 + $0x118] sm:$0xf0]  ;;  %v8990_v28 = vld [vmem:[#allocation12_spill] sm:$0xff] }
 0x424   : > { %3281 = vmatpush.bf16.msrb.mxu0 %v7939_v11 }
 0x425   : > { %v2860_v41 = vunpack.c.l.b16 %v2807_v5  ;;  %v2772_v47 = vmax.f32 %v2752_v32, %v2753_v52  ;;  %v7961_v32 = vor.u32 %v5600_v16, %v5140_v43  ;;  %v8989_v52 = vld [vmem:[#allocation35_spill] sm:$0xff]  ;;  %v5348_v43 = vld [vmem:[%s8696_s3 + $0x270] sm:$0xf]  ;;  %v5644_v16 = vld [vmem:[%s8696_s3 + $0x274] sm:$0xf0] }
 0x426   : > { %3711 = vmatpush.bf16.msra.mxu2 %v7659_v54  ;;  %3740 = vmatpush.bf16.msra.mxu3 %v7670_v17  ;;  %v2379_v13 = vadd.f32 %v8990_v28, %v8989_v52 }
 0x427   : > { %v7901_v38 = vpack.c.b16 %v2860_v41, %v2859_v19  ;;  %v2784_v15 = vadd.f32 %v7785_v3, %v2772_v47  ;;  %3310 = vmatpush.bf16.msrb.mxu1 %v7944_v46  ;;  %v8991_v19 = vld [vmem:[#allocation38_spill] sm:$0xff]  ;;  %v8992_v41 = vld [vmem:[#allocation13_spill] sm:$0xff] }
 0x428   : > { %v2663_v54 = vpop.f32.mrf.mxu2  ;;  %v2702_v17 = vpop.f32.mrf.mxu3  ;;  %v2418_v47 = vadd.f32 %v8992_v41, %v8991_v19  ;;  %3282 = vmatpush.bf16.msrb.mxu0 %v7961_v32  ;;  %v5340_v19 = vld [vmem:[%s8696_s3 + $0x260] sm:$0xf]  ;;  %v5642_v41 = vld [vmem:[%s8696_s3 + $0x264] sm:$0xf0] }
 0x429   : > { %v2730_v4 = vadd.f32 %v2663_v54, %v2620_v61  ;;  %v2731_v20 = vadd.f32 %v2702_v17, %v2621_v60  ;;  %2966 = vmatmul.bf16.gmra.mxu0 %v7901_v38  ;;  %2995 = vmatmul.bf16.gmra.mxu1 %v7901_v38  ;;  %v2556_v10 = vpop.f32.mrf.mxu0  ;;  %v2595_v24 = vpop.f32.mrf.mxu1  ;;  %v2796_v25 = vmax.f32 %v2784_v15, 0.0  ;;  %v8993_v61 = vld [vmem:[#allocation32_spill] sm:$0xff]  ;;  %v2522_v54 = vadd.f32 %v8995_v56, %v2379_v13  ;;  %v8996_v17 = vld [vmem:[#allocation49_spill] sm:$0xff]  ;;  %v5342_v56 = vld [vmem:[%s8696_s3 + $0x268] sm:$0xf0] }
 0x42a   : > { %3461 = vmatmul.bf16.vlgmr.msrb.gmra.mxu2 %v7901_v38  ;;  %3490 = vmatmul.bf16.vlgmr.msrb.gmra.mxu3 %v7901_v38  ;;  %v2622_v45 = vadd.f32 %v2556_v10, %v7520_v6  ;;  %v2623_v1 = vadd.f32 %v2595_v24, %v8988_v8  ;;  %v5599_v6 = vld [vmem:[%s8696_s3 + $0x114] sm:$0xf]  ;;  %v2523_v55 = vadd.f32 %v8996_v17, %v2418_v47  ;;  %v8997_v8 = vld [vmem:[#allocation34_spill] sm:$0xff] }
 0x42b   : > { %v2754_v62 = vmax.f32 %v8986_v44, %v2730_v4  ;;  %v2755_v59 = vmax.f32 %v8987_v57, %v2731_v20  ;;  %3820 = vmatpush.bf16.msrb.mxu2 %v7788_v2  ;;  %3849 = vmatpush.bf16.msrb.mxu3 %v7795_v49  ;;  %v2808_v2 = vpack.c.bf16 %v2796_v25, %v2796_v25  ;;  %v5598_v4 = vld [vmem:[%s8696_s3 + $0x104] sm:$0xf0]  ;;  %v5597_v20 = vld [vmem:[%s8696_s3 + $0x104] sm:$0xf]  ;;  %v9002_v17 = vld [vmem:[#allocation52_spill] sm:$0xff] }
 0x42c   : > { %v5641_v47 = vld [vmem:[%s8696_s3 + $0x264] sm:$0xf] }
 0x42d   : > { %v2773_v34 = vmax.f32 %v2754_v62, %v2755_v59  ;;  %v2861_v10 = vunpack.c.l.b16 %v2808_v2  ;;  %v5134_v62 = vld [vmem:[%s8696_s3 + $0x108] sm:$0xf0]  ;;  %v8998_v2 = vld [vmem:[#allocation36_spill] sm:$0xff] }
 0x42e   : > { %v7995_v57 = vor.u32 %v5597_v20, %v5134_v62  ;;  %v9006_v62 = vld [vmem:[#allocation11_spill] sm:$0xff] }
 0x42f   : > { %v2785_v26 = vadd.f32 %v7785_v3, %v2773_v34  ;;  %3821 = vmatpush.bf16.msrb.mxu2 %v7814_v31  ;;  %3850 = vmatpush.bf16.msrb.mxu3 %v7823_v14  ;;  %v7971_v31 = vor.u32 %v5599_v6, %v5142_v58  ;;  %v5132_v14 = vld [vmem:[%s8696_s3 + $0x100] sm:$0xf]  ;;  %v5643_v6 = vld [vmem:[%s8696_s3 + $0x274] sm:$0xf] }
 0x430   : > { %v2666_v39 = vpop.f32.mrf.mxu2  ;;  %v2705_v49 = vpop.f32.mrf.mxu3  ;;  %v7989_v44 = vor.u32 %v5598_v4, %v5132_v14  ;;  %v8050_v14 = vor.u32 %v5641_v47, %v5342_v56  ;;  %v9003_v4 = vld [vmem:[#allocation2_spill] sm:$0xff]  ;;  %v5638_v56 = vld [vmem:[%s8696_s3 + $0x244] sm:$0xf0] }
 0x431   : > { %v2797_v33 = vmax.f32 %v2785_v26, 0.0  ;;  %v2732_v40 = vadd.f32 %v2666_v39, %v2622_v45  ;;  %v2733_v7 = vadd.f32 %v2705_v49, %v2623_v1  ;;  %v2558_v5 = vpop.f32.mrf.mxu0  ;;  %v2597_v29 = vpop.f32.mrf.mxu1  ;;  %3311 = vmatpush.bf16.msrb.mxu1 %v7971_v31 }
 0x432   : > { %v2624_v51 = vadd.f32 %v2558_v5, %v2522_v54  ;;  %v2625_v9 = vadd.f32 %v2597_v29, %v2523_v55  ;;  %3283 = vmatpush.bf16.msrb.mxu0 %v7989_v44  ;;  %v9000_v5 = vld [vmem:[#allocation51_spill] sm:$0xff]  ;;  %v9001_v54 = vld [vmem:[#allocation9_spill] sm:$0xff] }
 0x433   : > { %v2809_v15 = vpack.c.bf16 %v2797_v33, %v2797_v33  ;;  %v2756_v60 = vmax.f32 %v8993_v61, %v2732_v40  ;;  %v2757_v21 = vmax.f32 %v8994_v53, %v2733_v7  ;;  %3822 = vmatpush.bf16.msrb.mxu2 %v7851_v37  ;;  %3851 = vmatpush.bf16.msrb.mxu3 %v7859_v63  ;;  %v8999_v40 = vld [vmem:[#allocation50_spill] sm:$0xff] }
 0x434   : > { %v8020_v33 = vor.u32 %v5644_v16, %v5348_v43  ;;  %v2384_v55 = vadd.f32 %v9002_v17, %v9001_v54  ;;  %v5332_v16 = vld [vmem:[%s8696_s3 + $0x250] sm:$0xf] }
 0x435   : > { %v2862_v24 = vunpack.c.l.b16 %v2809_v15  ;;  %v2774_v25 = vmax.f32 %v2756_v60, %v2757_v21  ;;  %3312 = vmatpush.bf16.msrb.mxu1 %v7995_v57  ;;  %v8043_v21 = vor.u32 %v5642_v41, %v5340_v19 }
 0x436   : > { %3630 = vmatpush.bf16.msra.mxu0 %v8020_v33 }
 0x437   : > { %v7997_v59 = vpack.c.b16 %v2862_v24, %v2861_v10  ;;  %v2786_v37 = vadd.f32 %v7785_v3, %v2774_v25  ;;  %3823 = vmatpush.bf16.msrb.mxu2 %v7876_v12  ;;  %3852 = vmatpush.bf16.msrb.mxu3 %v7885_v36  ;;  %v5350_v36 = vld [vmem:[%s8696_s3 + $0x278] sm:$0xf0]  ;;  %v9005_v24 = vld [vmem:[#allocation39_spill] sm:$0xff] }
 0x438   : > { %v2668_v22 = vpop.f32.mrf.mxu2  ;;  %v2707_v34 = vpop.f32.mrf.mxu3  ;;  %v8028_v58 = vor.u32 %v5643_v6, %v5350_v36  ;;  %v9010_v36 = vld [vmem:[#allocation62_spill] sm:$0xff] }
 0x439   : > { %v2734_v27 = vadd.f32 %v2668_v22, %v2624_v51  ;;  %v2735_v26 = vadd.f32 %v2707_v34, %v2625_v9  ;;  %2971 = vmatmul.bf16.gmra.mxu0 %v7997_v59  ;;  %3000 = vmatmul.bf16.gmra.mxu1 %v7997_v59  ;;  %v2561_v63 = vpop.f32.mrf.mxu0  ;;  %v2600_v45 = vpop.f32.mrf.mxu1  ;;  %v2798_v49 = vmax.f32 %v2786_v37, 0.0  ;;  %v9007_v9 = vld [vmem:[#allocation54_spill] sm:$0xff]  ;;  %v9008_v22 = vld [vmem:[#allocation55_spill] sm:$0xff] }
 0x43a   : > { %3466 = vmatmul.bf16.gmra.mxu2 %v7997_v59  ;;  %3495 = vmatmul.bf16.gmra.mxu3 %v7997_v59  ;;  %v2626_v7 = vadd.f32 %v2561_v63, %v8999_v40  ;;  %v2627_v29 = vadd.f32 %v2600_v45, %v9000_v5  ;;  %v2526_v37 = vadd.f32 %v9007_v9, %v2384_v55  ;;  %v5334_v5 = vld [vmem:[%s8696_s3 + $0x258] sm:$0xf0] }
 0x43b   : > { %v2758_v1 = vmax.f32 %v8997_v8, %v2734_v27  ;;  %v2759_v39 = vmax.f32 %v8998_v2, %v2735_v26  ;;  %3824 = vmatpush.bf16.msrb.mxu2 %v7913_v35  ;;  %3853 = vmatpush.bf16.msrb.mxu3 %v7920_v18  ;;  %v2810_v52 = vpack.c.bf16 %v2798_v49, %v2798_v49 }
 0x43c   : > { %3659 = vmatpush.bf16.msra.mxu1 %v8028_v58  ;;  %3631 = vmatpush.bf16.msra.mxu0 %v8043_v21 }
 0x43d   : > { %v2775_v12 = vmax.f32 %v2758_v1, %v2759_v39  ;;  %v2863_v27 = vunpack.c.l.b16 %v2810_v52 }
 0x43f   : > { %v2787_v35 = vadd.f32 %v7785_v3, %v2775_v12  ;;  %3825 = vmatpush.bf16.msrb.mxu2 %v7939_v11  ;;  %v9004_v11 = vld [vmem:[#allocation53_spill] sm:$0xff]  ;;  %3854 = vmatpush.bf16.msrb.mxu3 %v7944_v46 }
 0x440   : > { %v2671_v28 = vpop.f32.mrf.mxu2  ;;  %v2710_v13 = vpop.f32.mrf.mxu3  ;;  %v2423_v20 = vadd.f32 %v9004_v11, %v9003_v4  ;;  %3660 = vmatpush.bf16.msra.mxu1 %v8050_v14  ;;  %v5326_v11 = vld [vmem:[%s8696_s3 + $0x248] sm:$0xf0] }
 0x441   : > { %v2799_v18 = vmax.f32 %v2787_v35, 0.0  ;;  %v2736_v15 = vadd.f32 %v2671_v28, %v2626_v7  ;;  %v2737_v61 = vadd.f32 %v2710_v13, %v2627_v29  ;;  %v2563_v60 = vpop.f32.mrf.mxu0  ;;  %v2602_v53 = vpop.f32.mrf.mxu1  ;;  %v5639_v7 = vld [vmem:[%s8696_s3 + $0x254] sm:$0xf]  ;;  %v9011_v29 = vld [vmem:[#allocation10_spill] sm:$0xff] }
 0x442   : > { %v2527_v34 = vadd.f32 %v9008_v22, %v2423_v20  ;;  %v2628_v8 = vadd.f32 %v2563_v60, %v2526_v37  ;;  %v9012_v28 = vld [vmem:[#allocation8_spill] sm:$0xff]  ;;  %v8089_v19 = vor.u32 %v5639_v7, %v5334_v5  ;;  %v9013_v20 = vld [vmem:[#allocation5_spill] sm:$0xff]  ;;  %v9017_v22 = vld [vmem:[#allocation3_spill] sm:$0xff] }
 0x443   : > { %v2811_v10 = vpack.c.bf16 %v2799_v18, %v2799_v18  ;;  %v2760_v25 = vmax.f32 %v9005_v24, %v2736_v15  ;;  %v2761_v51 = vmax.f32 %v9006_v62, %v2737_v61  ;;  %3826 = vmatpush.bf16.msrb.mxu2 %v7961_v32  ;;  %3855 = vmatpush.bf16.msrb.mxu3 %v7971_v31  ;;  %v5640_v31 = vld [vmem:[%s8696_s3 + $0x254] sm:$0xf0]  ;;  %v9015_v62 = vld [vmem:[#allocation42_spill] sm:$0xff] }
 0x444   : > { %v2629_v1 = vadd.f32 %v2602_v53, %v2527_v34  ;;  %v8079_v40 = vor.u32 %v5640_v31, %v5332_v16  ;;  %3661 = vmatpush.bf16.msra.mxu1 %v8089_v19  ;;  %v5324_v53 = vld [vmem:[%s8696_s3 + $0x240] sm:$0xf] }
 0x445   : > { %v2864_v26 = vunpack.c.l.b16 %v2811_v10  ;;  %v2776_v63 = vmax.f32 %v2760_v25, %v2761_v51  ;;  %v8104_v4 = vor.u32 %v5638_v56, %v5324_v53  ;;  %v9014_v10 = vld [vmem:[#allocation63_spill] sm:$0xff]  ;;  %v9016_v51 = vld [vmem:[#allocation64_spill] sm:$0xff]  ;;  %v9021_v5 = vld [vmem:[#allocation26_spill] sm:$0xff] }
 0x446   : > { %3632 = vmatpush.bf16.msra.mxu0 %v8079_v40  ;;  %v2389_v24 = vadd.f32 %v9014_v10, %v9013_v20  ;;  %v2428_v9 = vadd.f32 %v9016_v51, %v9015_v62  ;;  %v5633_v20 = vld [vmem:[%s8696_s3 + $0x224] sm:$0xf] }
 0x447   : > { %v8062_v45 = vpack.c.b16 %v2864_v26, %v2863_v27  ;;  %v2788_v46 = vadd.f32 %v7785_v3, %v2776_v63  ;;  %3827 = vmatpush.bf16.msrb.mxu2 %v7989_v44  ;;  %v9009_v44 = vld [vmem:[#allocation61_spill] sm:$0xff]  ;;  %3856 = vmatpush.bf16.msrb.mxu3 %v7995_v57  ;;  %v5637_v57 = vld [vmem:[%s8696_s3 + $0x244] sm:$0xf]  ;;  %v9019_v63 = vld [vmem:[#allocation68_spill] sm:$0xff] }
 0x448   : > { %v2673_v2 = vpop.f32.mrf.mxu2  ;;  %v2712_v39 = vpop.f32.mrf.mxu3  ;;  %v8111_v25 = vor.u32 %v5637_v57, %v5326_v11  ;;  %v9018_v27 = vld [vmem:[#allocation14_spill] sm:$0xff]  ;;  %v5634_v11 = vld [vmem:[%s8696_s3 + $0x224] sm:$0xf0] }
 0x449   : > { %v2738_v32 = vadd.f32 %v2673_v2, %v2628_v8  ;;  %v2739_v49 = vadd.f32 %v2712_v39, %v2629_v1  ;;  %2976 = vmatmul.bf16.gmra.mxu0 %v8062_v45  ;;  %3005 = vmatmul.bf16.gmra.mxu1 %v8062_v45  ;;  %v2566_v12 = vpop.f32.mrf.mxu0  ;;  %v2605_v43 = vpop.f32.mrf.mxu1  ;;  %v2800_v41 = vmax.f32 %v2788_v46, 0.0  ;;  %v2530_v8 = vadd.f32 %v9019_v63, %v2389_v24  ;;  %v9020_v2 = vld [vmem:[#allocation69_spill] sm:$0xff]  ;;  %v9024_v63 = vld [vmem:[#allocation22_spill] sm:$0xff] }
 0x44a   : > { %3471 = vmatmul.bf16.gmra.mxu2 %v8062_v45  ;;  %3500 = vmatmul.bf16.gmra.mxu3 %v8062_v45  ;;  %v2630_v6 = vadd.f32 %v2566_v12, %v9009_v44  ;;  %v2631_v35 = vadd.f32 %v2605_v43, %v9010_v36  ;;  %v2531_v39 = vadd.f32 %v9020_v2, %v2428_v9 }
 0x44b   : > { %v2762_v52 = vmax.f32 %v9011_v29, %v2738_v32  ;;  %v2763_v13 = vmax.f32 %v9012_v28, %v2739_v49  ;;  %v2812_v15 = vpack.c.bf16 %v2800_v41, %v2800_v41  ;;  %3633 = vmatpush.bf16.msra.mxu0 %v8104_v4  ;;  %3662 = vmatpush.bf16.msra.mxu1 %v8111_v25  ;;  %v5316_v29 = vld [vmem:[%s8696_s3 + $0x230] sm:$0xf]  ;;  %v5635_v28 = vld [vmem:[%s8696_s3 + $0x234] sm:$0xf]  ;;  %v5318_v41 = vld [vmem:[%s8696_s3 + $0x238] sm:$0xf0] }
 0x44d   : > { %v2777_v47 = vmax.f32 %v2762_v52, %v2763_v13  ;;  %v3369_v32 = vunpack.c.l.b16 %v2812_v15  ;;  %v5636_v52 = vld [vmem:[%s8696_s3 + $0x234] sm:$0xf0]  ;;  %v9023_v15 = vld [vmem:[#allocation40_spill] sm:$0xff] }
 0x44e   : > { %v8137_v13 = vor.u32 %v5636_v52, %v5316_v29  ;;  %v9032_v29 = vld [vmem:[#allocation46_spill] sm:$0xff]  ;;  %v9033_v52 = vld [vmem:[#allocation47_spill] sm:$0xff] }
 0x44f   : > { %v2789_v18 = vadd.f32 %v7785_v3, %v2777_v47  ;;  %v9022_v47 = vld [vmem:[#allocation15_spill] sm:$0xff] }
 0x450   : > { %v2676_v61 = vpop.f32.mrf.mxu2  ;;  %v2715_v60 = vpop.f32.mrf.mxu3  ;;  %3634 = vmatpush.bf16.msra.mxu0 %v8137_v13 }
 0x451   : > { %v2801_v54 = vmax.f32 %v2789_v18, 0.0  ;;  %v2740_v17 = vadd.f32 %v2676_v61, %v2630_v6  ;;  %v2741_v55 = vadd.f32 %v2715_v60, %v2631_v35  ;;  %v2568_v1 = vpop.f32.mrf.mxu0  ;;  %v2607_v46 = vpop.f32.mrf.mxu1  ;;  %v8144_v60 = vor.u32 %v5635_v28, %v5318_v41  ;;  %v9035_v41 = vld [vmem:[#allocation18_spill] sm:$0xff] }
 0x452   : > { %v2632_v16 = vadd.f32 %v2568_v1, %v2530_v8  ;;  %v2633_v31 = vadd.f32 %v2607_v46, %v2531_v39  ;;  %v5300_v8 = vld [vmem:[%s8696_s3 + $0x210] sm:$0xf]  ;;  %v5632_v1 = vld [vmem:[%s8696_s3 + $0x214] sm:$0xf0]  ;;  %v5631_v46 = vld [vmem:[%s8696_s3 + $0x214] sm:$0xf] }
 0x453   : > { %v2813_v37 = vpack.c.bf16 %v2801_v54, %v2801_v54  ;;  %v2764_v34 = vmax.f32 %v9017_v22, %v2740_v17  ;;  %v2765_v26 = vmax.f32 %v9018_v27, %v2741_v55  ;;  %3663 = vmatpush.bf16.msra.mxu1 %v8144_v60  ;;  %v5308_v55 = vld [vmem:[%s8696_s3 + $0x220] sm:$0xf]  ;;  %v5301_v2 = vor.u32 %v5632_v1, %v5300_v8  ;;  %v5302_v39 = vld [vmem:[%s8696_s3 + $0x218] sm:$0xf0]  ;;  %v9045_v8 = vld [vmem:[#allocation59_spill] sm:$0xff] }
 0x454   : > { %v5309_v10 = vor.u32 %v5634_v11, %v5308_v55  ;;  %v9046_v1 = vld [vmem:[#allocation60_spill] sm:$0xff] }
 0x455   : > { %v3370_v49 = vunpack.c.l.b16 %v2813_v37  ;;  %v2778_v12 = vmax.f32 %v2764_v34, %v2765_v26 }
 0x456   : > { %3635 = vmatpush.bf16.msra.mxu0 %v5309_v10 }
 0x457   : > { %v8121_v43 = vpack.c.b16 %v3370_v49, %v3369_v32  ;;  %v2790_v36 = vadd.f32 %v7785_v3, %v2778_v12  ;;  %v5305_v32 = vor.u32 %v5631_v46, %v5302_v39  ;;  %v5292_v49 = vld [vmem:[%s8696_s3 + $0x200] sm:$0xf]  ;;  %v5630_v12 = vld [vmem:[%s8696_s3 + $0x204] sm:$0xf0]  ;;  %v9047_v46 = vld [vmem:[#allocation65_spill] sm:$0xff] }
 0x458   : > { %v2678_v44 = vpop.f32.mrf.mxu2  ;;  %v2717_v6 = vpop.f32.mrf.mxu3 }
 0x459   : > { %v2742_v35 = vadd.f32 %v2678_v44, %v2632_v16  ;;  %v2743_v7 = vadd.f32 %v2717_v6, %v2633_v31  ;;  %3284 = vmatmul.bf16.vlgmr.msrb.gmra.mxu0 %v9021_v5  ;;  %3313 = vmatmul.bf16.vlgmr.msrb.gmra.mxu1 %v9021_v5  ;;  %v2802_v56 = vmax.f32 %v2790_v36, 0.0  ;;  %v5293_v16 = vor.u32 %v5630_v12, %v5292_v49  ;;  %v9025_v44 = vld [vmem:[#allocation41_spill] sm:$0xff]  ;;  %v9026_v6 = vld [vmem:[#allocation4_spill] sm:$0xff]  ;;  %v9027_v36 = vld [vmem:[#allocation43_spill] sm:$0xff] }
 0x45a   : > { %3476 = vmatmul.bf16.gmra.mxu2 %v8121_v43  ;;  %3505 = vmatmul.bf16.gmra.mxu3 %v8121_v43 }
 0x45b   : > { %v2766_v18 = vmax.f32 %v9022_v47, %v2742_v35  ;;  %v2767_v61 = vmax.f32 %v9023_v15, %v2743_v7  ;;  %v2814_v62 = vpack.c.bf16 %v2802_v56, %v2802_v56  ;;  %3636 = vmatpush.bf16.msra.mxu0 %v5301_v2  ;;  %v9029_v35 = vld [vmem:[#allocation16_spill] sm:$0xff]  ;;  %v9036_v47 = vld [vmem:[#allocation23_spill] sm:$0xff] }
 0x45c   : > { %v9030_v7 = vld [vmem:[#allocation44_spill] sm:$0xff] }
 0x45d   : > { %v2779_v53 = vmax.f32 %v2766_v18, %v2767_v61  ;;  %v3970_v37 = vunpack.c.l.b16 %v2814_v62  ;;  %v9037_v18 = vld [vmem:[#allocation21_spill] sm:$0xff]  ;;  %v9038_v15 = vld [vmem:[#allocation20_spill] sm:$0xff] }
 0x45e   : > { %v9039_v61 = vld [vmem:[#allocation25_spill] sm:$0xff]  ;;  %v9042_v62 = vld [vmem:[#allocation56_spill] sm:$0xff] }
 0x45f   : > { %v2791_v57 = vadd.f32 %v7785_v3, %v2779_v53  ;;  %v5310_v3 = vld [vmem:[%s8696_s3 + $0x228] sm:$0xf0]  ;;  %3637 = vmatpush.bf16.msra.mxu0 %v5293_v16 }
 0x460   : > { %v8149_v54 = vpop.f32.mrf.mxu2  ;;  %v8151_v17 = vpop.f32.mrf.mxu3  ;;  %v5313_v51 = vor.u32 %v5633_v20, %v5310_v3 }
 0x461   : > { %v2803_v24 = vmax.f32 %v2791_v57, 0.0  ;;  %v9041_v57 = vld [vmem:[#allocation6_spill] sm:$0xff] }
 0x462   : > { %3664 = vmatpush.bf16.msra.mxu1 %v5313_v51 }
 0x463   : > { %v2815_v9 = vpack.c.bf16 %v2803_v24, %v2803_v24  ;;  %3762 = vmatpush.bf16.msrb.mxu0 %v9025_v44 }
 0x465   : > { %v3971_v22 = vunpack.c.l.b16 %v2815_v9 }
 0x466   : > { %3665 = vmatpush.bf16.msra.mxu1 %v5305_v32 }
 0x467   : > { %v8165_v34 = vpack.c.b16 %v3971_v22, %v3970_v37  ;;  %3763 = vmatpush.bf16.msrb.mxu0 %v9027_v36  ;;  %v9044_v22 = vld [vmem:[#allocation58_spill] sm:$0xff] }
 0x468   : > { %v8167_v27 = vpop.f32.mrf.mxu2  ;;  %v8169_v26 = vpop.f32.mrf.mxu3 }
 0x469   : > { %3289 = vmatmul.bf16.gmra.mxu0 %v9024_v63  ;;  %3318 = vmatmul.bf16.gmra.mxu1 %v9024_v63 }
 0x46a   : > { %3712 = vmatmul.bf16.vlgmr.msra.gmra.mxu2 %v9021_v5  ;;  %3741 = vmatmul.bf16.vlgmr.msra.gmra.mxu3 %v9021_v5  ;;  %v9031_v5 = vld [vmem:[#allocation45_spill] sm:$0xff] }
 0x46b   : > { %3974 = vmatpush.bf16.msra.mxu2 %v8020_v33  ;;  %4003 = vmatpush.bf16.msra.mxu3 %v8028_v58  ;;  %v5629_v33 = vld [vmem:[%s8696_s3 + $0x204] sm:$0xf]  ;;  %v5294_v58 = vld [vmem:[%s8696_s3 + $0x208] sm:$0xf0] }
 0x46c   : > { %3764 = vmatpush.bf16.msrb.mxu0 %v9029_v35  ;;  %v9053_v35 = vld [vmem:[#allocation73_spill] sm:$0xff] }
 0x46f   : > { %3975 = vmatpush.bf16.msra.mxu2 %v8043_v21  ;;  %4004 = vmatpush.bf16.msra.mxu3 %v8050_v14  ;;  %v5297_v21 = vor.u32 %v5629_v33, %v5294_v58  ;;  %v9049_v33 = vld [vmem:[#allocation67_spill] sm:$0xff] }
 0x470   : > { %v8203_v31 = vpop.f32.mrf.mxu2  ;;  %v8205_v14 = vpop.f32.mrf.mxu3  ;;  %3765 = vmatpush.bf16.msrb.mxu0 %v9031_v5  ;;  %v9051_v58 = vld [vmem:[#allocation71_spill] sm:$0xff] }
 0x471   : > { %3666 = vmatpush.bf16.msra.mxu1 %v5297_v21 }
 0x473   : > { %3976 = vmatpush.bf16.msra.mxu2 %v8079_v40  ;;  %4005 = vmatpush.bf16.msra.mxu3 %v8089_v19  ;;  %v9028_v40 = vld [vmem:[#allocation17_spill] sm:$0xff] }
 0x474   : > { %3766 = vmatpush.bf16.msrb.mxu0 %v9033_v52 }
 0x475   : > { %3791 = vmatpush.bf16.msrb.mxu1 %v9026_v6 }
 0x477   : > { %3977 = vmatpush.bf16.msra.mxu2 %v8104_v4  ;;  %4006 = vmatpush.bf16.msra.mxu3 %v8111_v25 }
 0x478   : > { %v8221_v19 = vpop.f32.mrf.mxu2  ;;  %v8223_v4 = vpop.f32.mrf.mxu3  ;;  %3767 = vmatpush.bf16.msrb.mxu0 %v9035_v41 }
 0x479   : > { %3294 = vmatmul.bf16.gmra.mxu0 %v6786_v0  ;;  %3323 = vmatmul.bf16.gmra.mxu1 %v6786_v0 }
 0x47a   : > { %3717 = vmatmul.bf16.gmra.mxu2 %v9024_v63  ;;  %3746 = vmatmul.bf16.gmra.mxu3 %v9024_v63 }
 0x47b   : > { %3792 = vmatpush.bf16.msrb.mxu1 %v9028_v40  ;;  %3978 = vmatpush.bf16.msra.mxu2 %v8137_v13  ;;  %v9034_v13 = vld [vmem:[#allocation19_spill] sm:$0xff]  ;;  %v9052_v40 = vld [vmem:[#allocation72_spill] sm:$0xff] }
 0x47c   : > { %4007 = vmatpush.bf16.msra.mxu3 %v8144_v60  ;;  %3768 = vmatpush.bf16.msrb.mxu0 %v9038_v15  ;;  %v9040_v60 = vld [vmem:[#allocation24_spill] sm:$0xff] }
 0x47f   : > { %3793 = vmatpush.bf16.msrb.mxu1 %v9030_v7  ;;  %3979 = vmatpush.bf16.msra.mxu2 %v5309_v10 }
 0x480   : > { %4008 = vmatpush.bf16.msra.mxu3 %v5313_v51  ;;  %v8230_v25 = vpop.f32.mrf.mxu2  ;;  %v8232_v28 = vpop.f32.mrf.mxu3  ;;  %3769 = vmatpush.bf16.msrb.mxu0 %v9040_v60  ;;  %v9043_v51 = vld [vmem:[#allocation57_spill] sm:$0xff] }
 0x483   : > { %3794 = vmatpush.bf16.msrb.mxu1 %v9032_v29  ;;  %3980 = vmatpush.bf16.msra.mxu2 %v5301_v2 }
 0x484   : > { %4009 = vmatpush.bf16.msra.mxu3 %v5305_v32 }
 0x487   : > { %3795 = vmatpush.bf16.msrb.mxu1 %v9034_v13  ;;  %3981 = vmatpush.bf16.msra.mxu2 %v5293_v16  ;;  %v9050_v16 = vld [vmem:[#allocation70_spill] sm:$0xff] }
 0x488   : > { %4010 = vmatpush.bf16.msra.mxu3 %v5297_v21  ;;  %v8244_v53 = vpop.f32.mrf.mxu2  ;;  %v8246_v56 = vpop.f32.mrf.mxu3 }
 0x489   : > { %3299 = vmatmul.bf16.gmra.mxu0 %v9036_v47  ;;  %3328 = vmatmul.bf16.gmra.mxu1 %v9036_v47 }
 0x48a   : > { %3722 = vmatmul.bf16.gmra.mxu2 %v6786_v0  ;;  %3751 = vmatmul.bf16.gmra.mxu3 %v6786_v0 }
 0x48b   : > { %3796 = vmatpush.bf16.msrb.mxu1 %v9037_v18 }
 0x48f   : > { %3797 = vmatpush.bf16.msrb.mxu1 %v9039_v61 }
 0x490   : > { %v3139_v3 = vpop.f32.mrf.mxu2  ;;  %v3168_v24 = vpop.f32.mrf.mxu3 }
 0x493   : > { %3798 = vmatpush.bf16.msrb.mxu1 %v9041_v57  ;;  %v9054_v57 = vld [vmem:[#allocation28_spill] sm:$0xff] }
 0x496   : > { %v2962_v55 = vpop.f32.mrf.mxu0  ;;  %v2991_v11 = vpop.f32.mrf.mxu1 }
 0x497   : > { %v8250_v20 = vadd.f32 %v8149_v54, %v2962_v55  ;;  %v8253_v10 = vadd.f32 %v8151_v17, %v2991_v11 }
 0x498   : > { %v3141_v2 = vpop.f32.mrf.mxu2  ;;  %v3170_v39 = vpop.f32.mrf.mxu3 }
 0x499   : > { %3638 = vmatmul.bf16.vlgmr.msra.gmra.mxu0 %v9024_v63  ;;  %3667 = vmatmul.bf16.vlgmr.msra.gmra.mxu1 %v9024_v63 }
 0x49a   : > { %3727 = vmatmul.bf16.gmra.mxu2 %v9036_v47  ;;  %3756 = vmatmul.bf16.gmra.mxu3 %v9036_v47 }
 0x49b   : > { %3894 = vmatpush.bf16.msra.mxu0 %v9042_v62  ;;  %3923 = vmatpush.bf16.msra.mxu1 %v9043_v51 }
 0x49e   : > { %v2964_v9 = vpop.f32.mrf.mxu0  ;;  %v2993_v54 = vpop.f32.mrf.mxu1 }
 0x49f   : > { %v8262_v37 = vadd.f32 %v8167_v27, %v2964_v9  ;;  %v8265_v17 = vadd.f32 %v8169_v26, %v2993_v54  ;;  %3895 = vmatpush.bf16.msra.mxu0 %v9044_v22  ;;  %3924 = vmatpush.bf16.msra.mxu1 %v9045_v8  ;;  %v9048_v26 = vld [vmem:[#allocation66_spill] sm:$0xff] }
 0x4a3   : > { %3896 = vmatpush.bf16.msra.mxu0 %v9046_v1  ;;  %3925 = vmatpush.bf16.msra.mxu1 %v9047_v46 }
 0x4a6   : > { %v2967_v32 = vpop.f32.mrf.mxu0  ;;  %v2996_v49 = vpop.f32.mrf.mxu1 }
 0x4a7   : > { %v8272_v12 = vadd.f32 %v8203_v31, %v2967_v32  ;;  %v8275_v27 = vadd.f32 %v8205_v14, %v2996_v49  ;;  %3897 = vmatpush.bf16.msra.mxu0 %v9048_v26  ;;  %3926 = vmatpush.bf16.msra.mxu1 %v9049_v33 }
 0x4a9   : > { %3643 = vmatmul.bf16.gmra.mxu0 %v6786_v0  ;;  %3672 = vmatmul.bf16.gmra.mxu1 %v6786_v0 }
 0x4aa   : > { %3828 = vmatmul.bf16.vlgmr.msrb.gmra.mxu2 %v7901_v38  ;;  %3857 = vmatmul.bf16.vlgmr.msrb.gmra.mxu3 %v7901_v38 }
 0x4ab   : > { %3898 = vmatpush.bf16.msra.mxu0 %v9050_v16  ;;  %3927 = vmatpush.bf16.msra.mxu1 %v9051_v58 }
 0x4ad   : > { %v3462_v21 = vpop.f32.mrf.mxu2  ;;  %v3491_v31 = vpop.f32.mrf.mxu3 }
 0x4ae   : > { %v2969_v14 = vpop.f32.mrf.mxu0  ;;  %v2998_v44 = vpop.f32.mrf.mxu1 }
 0x4af   : > { %v8286_v6 = vadd.f32 %v8221_v19, %v2969_v14  ;;  %v8289_v36 = vadd.f32 %v8223_v4, %v2998_v44  ;;  %3899 = vmatpush.bf16.msra.mxu0 %v9052_v40  ;;  %3928 = vmatpush.bf16.msra.mxu1 %v9053_v35 }
 0x4b3   : > { %3900 = vmatpush.bf16.msra.mxu0 %v7739_v48  ;;  %3929 = vmatpush.bf16.msra.mxu1 %v7744_v23 }
 0x4b5   : > { %v3464_v7 = vpop.f32.mrf.mxu2  ;;  %v3493_v5 = vpop.f32.mrf.mxu3 }
 0x4b6   : > { %v2972_v29 = vpop.f32.mrf.mxu0  ;;  %v3001_v52 = vpop.f32.mrf.mxu1 }
 0x4b7   : > { %v8296_v13 = vadd.f32 %v8230_v25, %v2972_v29  ;;  %v8299_v19 = vadd.f32 %v8232_v28, %v3001_v52  ;;  %3901 = vmatpush.bf16.msra.mxu0 %v7763_v42  ;;  %3930 = vmatpush.bf16.msra.mxu1 %v7770_v30 }
 0x4b9   : > { %3648 = vmatmul.bf16.gmra.mxu0 %v9036_v47  ;;  %3677 = vmatmul.bf16.gmra.mxu1 %v9036_v47 }
 0x4ba   : > { %3833 = vmatmul.bf16.gmra.mxu2 %v7997_v59  ;;  %3862 = vmatmul.bf16.gmra.mxu3 %v7997_v59 }
 0x4bd   : > { %v3467_v23 = vpop.f32.mrf.mxu2  ;;  %v3496_v48 = vpop.f32.mrf.mxu3 }
 0x4be   : > { %v2974_v4 = vpop.f32.mrf.mxu0  ;;  %v3003_v25 = vpop.f32.mrf.mxu1 }
 0x4bf   : > { %v8308_v41 = vadd.f32 %v8244_v53, %v2974_v4  ;;  %v8311_v28 = vadd.f32 %v8246_v56, %v3003_v25 }
 0x4c5   : > { %v3469_v42 = vpop.f32.mrf.mxu2  ;;  %v3498_v30 = vpop.f32.mrf.mxu3 }
 0x4c6   : > { %v2977_v18 = vpop.f32.mrf.mxu0  ;;  %v3006_v15 = vpop.f32.mrf.mxu1 }
 0x4c7   : > { %v8313_v61 = vadd.f32 %v3139_v3, %v2977_v18  ;;  %v8315_v60 = vadd.f32 %v3168_v24, %v3006_v15 }
 0x4c9   : > { %3653 = vmatmul.bf16.gmra.mxu0 %v9054_v57  ;;  %3682 = vmatmul.bf16.gmra.mxu1 %v9054_v57 }
 0x4ca   : > { %3838 = vmatmul.bf16.gmra.mxu2 %v8062_v45  ;;  %3867 = vmatmul.bf16.gmra.mxu3 %v8062_v45 }
 0x4cd   : > { %v3472_v53 = vpop.f32.mrf.mxu2  ;;  %v3501_v55 = vpop.f32.mrf.mxu3 }
 0x4ce   : > { %v2979_v56 = vpop.f32.mrf.mxu0  ;;  %v3008_v11 = vpop.f32.mrf.mxu1 }
 0x4cf   : > { %v8321_v62 = vadd.f32 %v3141_v2, %v2979_v56  ;;  %v8323_v51 = vadd.f32 %v3170_v39, %v3008_v11 }
 0x4d5   : > { %v3474_v3 = vpop.f32.mrf.mxu2  ;;  %v3503_v9 = vpop.f32.mrf.mxu3 }
 0x4d6   : > { %v3285_v24 = vpop.f32.mrf.mxu0  ;;  %v3314_v54 = vpop.f32.mrf.mxu1 }
 0x4d7   : > { %v3334_v22 = vadd.f32 %v3285_v24, %v8250_v20  ;;  %v3335_v8 = vadd.f32 %v3314_v54, %v8253_v10 }
 0x4d9   : > { %3770 = vmatmul.bf16.vlgmr.msrb.gmra.mxu0 %v7839_v50  ;;  %3799 = vmatmul.bf16.vlgmr.msrb.gmra.mxu1 %v7839_v50  ;;  %v8329_v1 = vadd.f32 %v3462_v21, %v3334_v22  ;;  %v8331_v46 = vadd.f32 %v3491_v31, %v3335_v8 }
 0x4da   : > { %3843 = vmatmul.bf16.gmra.mxu2 %v8121_v43  ;;  %3872 = vmatmul.bf16.gmra.mxu3 %v8121_v43 }
 0x4dd   : > { %v3477_v2 = vpop.f32.mrf.mxu2  ;;  %v3506_v39 = vpop.f32.mrf.mxu3 }
 0x4de   : > { %v3287_v32 = vpop.f32.mrf.mxu0  ;;  %v3316_v49 = vpop.f32.mrf.mxu1 }
 0x4df   : > { %v3336_v20 = vadd.f32 %v3287_v32, %v8262_v37  ;;  %v3337_v10 = vadd.f32 %v3316_v49, %v8265_v17 }
 0x4e1   : > { %v8337_v26 = vadd.f32 %v3464_v7, %v3336_v20  ;;  %v8339_v33 = vadd.f32 %v3493_v5, %v3337_v10 }
 0x4e5   : > { %v3479_v50 = vpop.f32.mrf.mxu2  ;;  %v3508_v16 = vpop.f32.mrf.mxu3 }
 0x4e6   : > { %v3290_v58 = vpop.f32.mrf.mxu0  ;;  %v3319_v21 = vpop.f32.mrf.mxu1 }
 0x4e7   : > { %v3338_v31 = vadd.f32 %v3290_v58, %v8272_v12  ;;  %v3339_v14 = vadd.f32 %v3319_v21, %v8275_v27 }
 0x4e9   : > { %3775 = vmatmul.bf16.gmra.mxu0 %v7901_v38  ;;  %3804 = vmatmul.bf16.gmra.mxu1 %v7901_v38  ;;  %v8345_v44 = vadd.f32 %v3467_v23, %v3338_v31  ;;  %v8347_v37 = vadd.f32 %v3496_v48, %v3339_v14 }
 0x4ea   : > { %3982 = vmatmul.bf16.vlgmr.msra.gmra.mxu2 %v7997_v59  ;;  %4011 = vmatmul.bf16.vlgmr.msra.gmra.mxu3 %v7997_v59 }
 0x4ed   : > { %v8351_v17 = vpop.f32.mrf.mxu2  ;;  %v8353_v40 = vpop.f32.mrf.mxu3 }
 0x4ee   : > { %v3292_v35 = vpop.f32.mrf.mxu0  ;;  %v3321_v12 = vpop.f32.mrf.mxu1 }
 0x4ef   : > { %v3340_v27 = vadd.f32 %v3292_v35, %v8286_v6  ;;  %v3341_v7 = vadd.f32 %v3321_v12, %v8289_v36 }
 0x4f1   : > { %v8357_v5 = vadd.f32 %v3469_v42, %v3340_v27  ;;  %v8359_v38 = vadd.f32 %v3498_v30, %v3341_v7 }
 0x4f5   : > { %v8361_v29 = vpop.f32.mrf.mxu2  ;;  %v8363_v52 = vpop.f32.mrf.mxu3 }
 0x4f6   : > { %v3295_v23 = vpop.f32.mrf.mxu0  ;;  %v3324_v48 = vpop.f32.mrf.mxu1 }
 0x4f7   : > { %v3342_v4 = vadd.f32 %v3295_v23, %v8296_v13  ;;  %v3343_v25 = vadd.f32 %v3324_v48, %v8299_v19 }
 0x4f9   : > { %3780 = vmatmul.bf16.gmra.mxu0 %v7997_v59  ;;  %3809 = vmatmul.bf16.gmra.mxu1 %v7997_v59  ;;  %v3519_v6 = vadd.f32 %v3472_v53, %v3342_v4  ;;  %v3520_v36 = vadd.f32 %v3501_v55, %v3343_v25 }
 0x4fa   : > { %3987 = vmatmul.bf16.gmra.mxu2 %v8062_v45  ;;  %4016 = vmatmul.bf16.gmra.mxu3 %v8062_v45 }
 0x4fd   : > { %v8371_v42 = vpop.f32.mrf.mxu2  ;;  %v8373_v30 = vpop.f32.mrf.mxu3 }
 0x4fe   : > { %v3297_v18 = vpop.f32.mrf.mxu0  ;;  %v3326_v15 = vpop.f32.mrf.mxu1 }
 0x4ff   : > { %v3344_v13 = vadd.f32 %v3297_v18, %v8308_v41  ;;  %v3345_v19 = vadd.f32 %v3326_v15, %v8311_v28 }
 0x501   : > { %v3521_v56 = vadd.f32 %v3474_v3, %v3344_v13  ;;  %v3522_v11 = vadd.f32 %v3503_v9, %v3345_v19 }
 0x505   : > { %v8377_v53 = vpop.f32.mrf.mxu2  ;;  %v8379_v55 = vpop.f32.mrf.mxu3 }
 0x506   : > { %v3300_v24 = vpop.f32.mrf.mxu0  ;;  %v3329_v59 = vpop.f32.mrf.mxu1 }
 0x507   : > { %v3346_v54 = vadd.f32 %v3300_v24, %v8313_v61  ;;  %v3347_v22 = vadd.f32 %v3329_v59, %v8315_v60 }
 0x509   : > { %3785 = vmatmul.bf16.gmra.mxu0 %v8062_v45  ;;  %3814 = vmatmul.bf16.gmra.mxu1 %v8062_v45  ;;  %v3523_v8 = vadd.f32 %v3477_v2, %v3346_v54  ;;  %v3524_v41 = vadd.f32 %v3506_v39, %v3347_v22 }
 0x50a   : > { %3992 = vmatmul.bf16.gmra.mxu2 %v8121_v43  ;;  %4021 = vmatmul.bf16.gmra.mxu3 %v8121_v43 }
 0x50d   : > { %v8389_v49 = vpop.f32.mrf.mxu2  ;;  %v8391_v61 = vpop.f32.mrf.mxu3 }
 0x50e   : > { %v3302_v28 = vpop.f32.mrf.mxu0  ;;  %v3331_v3 = vpop.f32.mrf.mxu1 }
 0x50f   : > { %v3348_v9 = vadd.f32 %v3302_v28, %v8321_v62  ;;  %v3349_v32 = vadd.f32 %v3331_v3, %v8323_v51 }
 0x511   : > { %v3525_v60 = vadd.f32 %v3479_v50, %v3348_v9  ;;  %v3526_v20 = vadd.f32 %v3508_v16, %v3349_v32 }
 0x515   : > { %v8403_v43 = vpop.f32.mrf.mxu2  ;;  %v8405_v62 = vpop.f32.mrf.mxu3 }
 0x516   : > { %v3639_v10 = vpop.f32.mrf.mxu0  ;;  %v3668_v45 = vpop.f32.mrf.mxu1 }
 0x517   : > { %v8394_v2 = vadd.f32 %v3639_v10, %v8329_v1  ;;  %v8397_v39 = vadd.f32 %v3668_v45, %v8331_v46 }
 0x519   : > { %3902 = vmatmul.bf16.vlgmr.msra.gmra.mxu0 %v9024_v63  ;;  %3931 = vmatmul.bf16.vlgmr.msra.gmra.mxu1 %v9024_v63 }
 0x51a   : > { %3997 = vmatmul.bf16.gmra.mxu2 %v8165_v34  ;;  %4026 = vmatmul.bf16.gmra.mxu3 %v8165_v34 }
 0x51d   : > { %v8411_v1 = vpop.f32.mrf.mxu2  ;;  %v8413_v46 = vpop.f32.mrf.mxu3 }
 0x51e   : > { %v8407_v51 = vpop.f32.mrf.mxu0  ;;  %v8409_v50 = vpop.f32.mrf.mxu1 }
 0x525   : > { %v8425_v14 = vpop.f32.mrf.mxu2  ;;  %v8427_v35 = vpop.f32.mrf.mxu3 }
 0x526   : > { %v3644_v16 = vpop.f32.mrf.mxu0  ;;  %v3673_v58 = vpop.f32.mrf.mxu1 }
 0x527   : > { %v8416_v63 = vadd.f32 %v3644_v16, %v8345_v44  ;;  %v8419_v21 = vadd.f32 %v3673_v58, %v8347_v37 }
 0x529   : > { %3907 = vmatmul.bf16.gmra.mxu0 %v6786_v0  ;;  %3936 = vmatmul.bf16.gmra.mxu1 %v6786_v0 }
 0x52d   : > { %v3829_v23 = vpop.f32.mrf.mxu2  ;;  %v3858_v48 = vpop.f32.mrf.mxu3 }
 0x52e   : > { %v8423_v34 = vpop.f32.mrf.mxu0  ;;  %v3675_v31 = vpop.f32.mrf.mxu1 }
 0x52f   : > { %v8430_v12 = vadd.f32 %v3675_v31, %v8359_v38 }
 0x535   : > { %v8442_v38 = vpop.f32.mrf.mxu2  ;;  %v8444_v15 = vpop.f32.mrf.mxu3 }
 0x536   : > { %v3649_v27 = vpop.f32.mrf.mxu0  ;;  %v3678_v44 = vpop.f32.mrf.mxu1 }
 0x537   : > { %v8432_v7 = vadd.f32 %v3649_v27, %v3519_v6  ;;  %v8434_v37 = vadd.f32 %v3678_v44, %v3520_v36 }
 0x539   : > { %3912 = vmatmul.bf16.gmra.mxu0 %v9036_v47  ;;  %3941 = vmatmul.bf16.gmra.mxu1 %v9036_v47 }
 0x53d   : > { %v3834_v47 = vpop.f32.mrf.mxu2  ;;  %v3863_v24 = vpop.f32.mrf.mxu3 }
 0x53e   : > { %v3651_v0 = vpop.f32.mrf.mxu0  ;;  %v3680_v4 = vpop.f32.mrf.mxu1 }
 0x53f   : > { %v8438_v25 = vadd.f32 %v3651_v0, %v3521_v56  ;;  %v8440_v18 = vadd.f32 %v3680_v4, %v3522_v11  ;;  %v5652_v4 = vld [vmem:[%s8698_s5 + $0x38] sm:$0xff] }
 0x540   : > { %4255 = vmatpush.bf16.msrb.mxu1 %v5652_v4 }
 0x545   : > { %v8456_v3 = vpop.f32.mrf.mxu2 }
 0x546   : > { %v3654_v6 = vpop.f32.mrf.mxu0  ;;  %v3683_v13 = vpop.f32.mrf.mxu1 }
 0x547   : > { %v8446_v36 = vadd.f32 %v3654_v6, %v3523_v8  ;;  %v8448_v19 = vadd.f32 %v3683_v13, %v3524_v41  ;;  %v8458_v8 = vpop.f32.mrf.mxu3 }
 0x549   : > { %3917 = vmatmul.bf16.gmra.mxu0 %v9054_v57  ;;  %3946 = vmatmul.bf16.gmra.mxu1 %v9054_v57 }
 0x54e   : > { %v3656_v56 = vpop.f32.mrf.mxu0  ;;  %v3685_v59 = vpop.f32.mrf.mxu1 }
 0x54f   : > { %v8452_v11 = vadd.f32 %v3656_v56, %v3525_v60  ;;  %v8454_v54 = vadd.f32 %v3685_v59, %v3526_v20  ;;  %v3839_v20 = vpop.f32.mrf.mxu2  ;;  %v3868_v45 = vpop.f32.mrf.mxu3  ;;  %v5650_v59 = vld [vmem:[%s8698_s5 + $0x28] sm:$0xff] }
 0x551   : > { %9055 = vst [vmem:[#allocation33_spill] sm:$0xff] %v8452_v11 }
 0x552   : > { %9056 = vst [vmem:[#allocation29_spill] sm:$0xff] %v8454_v54 }
 0x556   : > { %v3771_v22 = vpop.f32.mrf.mxu0  ;;  %v3800_v28 = vpop.f32.mrf.mxu1 }
 0x557   : > { %v3772_v41 = vadd.f32 %v3771_v22, %v8351_v17  ;;  %v3801_v9 = vadd.f32 %v3800_v28, %v8353_v40  ;;  %v8476_v40 = vpop.f32.mrf.mxu2 }
 0x559   : > { %v8462_v32 = vadd.f32 %v3829_v23, %v3772_v41  ;;  %v8464_v57 = vadd.f32 %v3858_v48, %v3801_v9  ;;  %v8478_v23 = vpop.f32.mrf.mxu3  ;;  %v5649_v41 = vld [vmem:[%s8698_s5 + $0x20] sm:$0xff] }
 0x55e   : > { %v8466_v10 = vpop.f32.mrf.mxu0  ;;  %v8468_v60 = vpop.f32.mrf.mxu1 }
 0x561   : > { %v3873_v6 = vpop.f32.mrf.mxu3 }
 0x566   : > { %v3776_v16 = vpop.f32.mrf.mxu0  ;;  %v3805_v58 = vpop.f32.mrf.mxu1 }
 0x567   : > { %v3777_v31 = vadd.f32 %v3776_v16, %v8371_v42  ;;  %v3806_v27 = vadd.f32 %v3805_v58, %v8373_v30  ;;  %v3844_v42 = vpop.f32.mrf.mxu2  ;;  %v5651_v30 = vld [vmem:[%s8698_s5 + $0x30] sm:$0xff] }
 0x568   : > { %4256 = vmatpush.bf16.msrb.mxu1 %v5651_v30  ;;  %v5659_v58 = vld [vmem:[%s8698_s5 + $0x70] sm:$0xff] }
 0x569   : > { %v8472_v44 = vadd.f32 %v3834_v47, %v3777_v31  ;;  %v8474_v17 = vadd.f32 %v3863_v24, %v3806_v27  ;;  %v5647_v31 = vld [vmem:[%s8698_s5 + $0x10] sm:$0xff] }
 0x56c   : > { %4257 = vmatpush.bf16.msrb.mxu1 %v5650_v59  ;;  %v5646_v59 = vld [vmem:[%s8698_s5 + $0x8] sm:$0xff] }
 0x56e   : > { %v8480_v48 = vpop.f32.mrf.mxu0  ;;  %v8482_v0 = vpop.f32.mrf.mxu1 }
 0x570   : > { %4258 = vmatpush.bf16.msrb.mxu1 %v5649_v41 }
 0x576   : > { %v3781_v13 = vpop.f32.mrf.mxu0  ;;  %v3810_v47 = vpop.f32.mrf.mxu1 }
 0x577   : > { %v3782_v24 = vadd.f32 %v3781_v13, %v8389_v49  ;;  %v3811_v56 = vadd.f32 %v3810_v47, %v8391_v61  ;;  %v8506_v49 = vpop.f32.mrf.mxu2  ;;  %v8508_v61 = vpop.f32.mrf.mxu3 }
 0x578   : > { %9057 = vst [vmem:[#allocation27_spill] sm:$0xff] %v8508_v61  ;;  %v5666_v61 = vld [vmem:[%s8698_s5 + $0xa8] sm:$0xff] }
 0x579   : > { %v8495_v22 = vadd.f32 %v3839_v20, %v3782_v24  ;;  %v8497_v28 = vadd.f32 %v3868_v45, %v3811_v56  ;;  %v5660_v20 = vld [vmem:[%s8698_s5 + $0x78] sm:$0xff]  ;;  %v5658_v56 = vld [vmem:[%s8698_s5 + $0x68] sm:$0xff] }
 0x57a   : > { %v5648_v45 = vld [vmem:[%s8698_s5 + $0x18] sm:$0xff]  ;;  %4187 = vmatpush.bf16.msrb.mxu0 %v5660_v20 }
 0x57b   : > { %4259 = vmatpush.bf16.msrb.mxu1 %v5648_v45  ;;  %v5657_v45 = vld [vmem:[%s8698_s5 + $0x60] sm:$0xff] }
 0x57e   : > { %v8502_v9 = vpop.f32.mrf.mxu0  ;;  %v8504_v16 = vpop.f32.mrf.mxu1  ;;  %4188 = vmatpush.bf16.msrb.mxu0 %v5659_v58 }
 0x57f   : > { %4260 = vmatpush.bf16.msrb.mxu1 %v5647_v31  ;;  %v3983_v47 = vpop.f32.mrf.mxu2  ;;  %v4012_v24 = vpop.f32.mrf.mxu3  ;;  %v5656_v31 = vld [vmem:[%s8698_s5 + $0x58] sm:$0xff] }
 0x582   : > { %4189 = vmatpush.bf16.msrb.mxu0 %v5658_v56  ;;  %v5655_v56 = vld [vmem:[%s8698_s5 + $0x50] sm:$0xff] }
 0x583   : > { %4261 = vmatpush.bf16.msrb.mxu1 %v5646_v59 }
 0x586   : > { %v3786_v27 = vpop.f32.mrf.mxu0  ;;  %v3815_v4 = vpop.f32.mrf.mxu1  ;;  %4190 = vmatpush.bf16.msrb.mxu0 %v5657_v45 }
 0x587   : > { %v3787_v30 = vadd.f32 %v3786_v27, %v8411_v1  ;;  %v3816_v13 = vadd.f32 %v3815_v4, %v8413_v46  ;;  %v5668_v1 = vld [vmem:[%s8698_s5 + $0xb8] sm:$0xff]  ;;  %v3985_v27 = vpop.f32.mrf.mxu2  ;;  %v4014_v4 = vpop.f32.mrf.mxu3 }
 0x588   : > { %v5676_v46 = vld [vmem:[%s8698_s5 + $0xf8] sm:$0xff]  ;;  %4340 = vmatpush.bf16.msrb.mxu2 %v5668_v1 }
 0x589   : > { %v8530_v41 = vadd.f32 %v3844_v42, %v3787_v30  ;;  %v8532_v20 = vadd.f32 %v3873_v6, %v3816_v13  ;;  %v5645_v6 = vld [vmem:[%s8698_s5] sm:$0xff]  ;;  %4427 = vmatpush.bf16.msrb.mxu3 %v5676_v46  ;;  %v5667_v30 = vld [vmem:[%s8698_s5 + $0xb0] sm:$0xff] }
 0x58a   : > { %4262 = vmatpush.bf16.msrb.mxu1 %v5645_v6  ;;  %4191 = vmatpush.bf16.msrb.mxu0 %v5656_v31  ;;  %v5675_v13 = vld [vmem:[%s8698_s5 + $0xf0] sm:$0xff]  ;;  %v3774_v6 = vadd.f32 %v8466_v10, %v8361_v29  ;;  %v3803_v31 = vadd.f32 %v8468_v60, %v8363_v52  ;;  %v8579_v29 = vld [vmem:[%s8697_s4] ss:$0 sm:$0xff] }
 0x58c   : > { %4341 = vmatpush.bf16.msrb.mxu2 %v5667_v30 }
 0x58d   : > { %4428 = vmatpush.bf16.msrb.mxu3 %v5675_v13 }
 0x58e   : > { %v8543_v58 = vpop.f32.mrf.mxu0  ;;  %v8545_v42 = vpop.f32.mrf.mxu1  ;;  %4192 = vmatpush.bf16.msrb.mxu0 %v5655_v56 }
 0x58f   : > { %v3988_v52 = vpop.f32.mrf.mxu2  ;;  %v4017_v10 = vpop.f32.mrf.mxu3 }
 0x590   : > { %4342 = vmatpush.bf16.msrb.mxu2 %v5666_v61 }
 0x596   : > { %v3903_v59 = vpop.f32.mrf.mxu0  ;;  %v3932_v1 = vpop.f32.mrf.mxu1 }
 0x597   : > { %v3952_v46 = vadd.f32 %v3903_v59, %v8462_v32  ;;  %v3953_v45 = vadd.f32 %v3932_v1, %v8464_v57  ;;  %v5654_v32 = vld [vmem:[%s8698_s5 + $0x48] sm:$0xff] }
 0x598   : > { %4193 = vmatpush.bf16.msrb.mxu0 %v5654_v32 }
 0x599   : > { %v4032_v54 = vadd.f32 %v3983_v47, %v3952_v46  ;;  %v4033_v11 = vadd.f32 %v4012_v24, %v3953_v45  ;;  %v3880_v47 = vadd.f32 %v8442_v38, %v3774_v6  ;;  %v3881_v24 = vadd.f32 %v8444_v15, %v3803_v31  ;;  %v5664_v45 = vld [vmem:[%s8698_s5 + $0x98] sm:$0xff] }
 0x59a   : > { %v3690_v38 = vadd.f32 %v8407_v51, %v8337_v26  ;;  %v3691_v15 = vadd.f32 %v8409_v50, %v8339_v33  ;;  %v5673_v26 = vld [vmem:[%s8698_s5 + $0xe0] sm:$0xff]  ;;  %v5663_v33 = vld [vmem:[%s8698_s5 + $0x90] sm:$0xff] }
 0x59b   : > { %v4049_v57 = vmax.f32 %v8394_v2, %v4032_v54  ;;  %v4050_v30 = vmax.f32 %v8397_v39, %v4033_v11  ;;  %v5674_v2 = vld [vmem:[%s8698_s5 + $0xe8] sm:$0xff]  ;;  %v5665_v39 = vld [vmem:[%s8698_s5 + $0xa0] sm:$0xff] }
 0x59c   : > { %v5653_v11 = vld [vmem:[%s8698_s5 + $0x40] sm:$0xff]  ;;  %4429 = vmatpush.bf16.msrb.mxu3 %v5674_v2  ;;  %4343 = vmatpush.bf16.msrb.mxu2 %v5665_v39  ;;  %v3808_v2 = vadd.f32 %v8482_v0, %v8379_v55  ;;  %v5672_v0 = vld [vmem:[%s8698_s5 + $0xd8] sm:$0xff] }
 0x59d   : > { %v4065_v60 = vmax.f32 %v4049_v57, %v4050_v30  ;;  %4194 = vmatpush.bf16.msrb.mxu0 %v5653_v11 }
 0x59e   : > { %v3905_v54 = vpop.f32.mrf.mxu0  ;;  %v3934_v61 = vpop.f32.mrf.mxu1  ;;  %v3885_v55 = vadd.f32 %v8458_v8, %v3808_v2 }
 0x59f   : > { %v3954_v13 = vadd.f32 %v3905_v54, %v3880_v47  ;;  %v3955_v56 = vadd.f32 %v3934_v61, %v3881_v24  ;;  %v4076_v59 = vadd.f32 %v8579_v29, %v4065_v60  ;;  %v3779_v24 = vadd.f32 %v8480_v48, %v8377_v53 }
 0x5a0   : > { %4344 = vmatpush.bf16.msrb.mxu2 %v5664_v45  ;;  %4430 = vmatpush.bf16.msrb.mxu3 %v5673_v26 }
 0x5a1   : > { %v4034_v1 = vadd.f32 %v3985_v27, %v3954_v13  ;;  %v4035_v46 = vadd.f32 %v4014_v4, %v3955_v56  ;;  %v4084_v32 = vmax.f32 %v4076_v59, 0.0  ;;  %v3990_v27 = vpop.f32.mrf.mxu2  ;;  %v4019_v4 = vpop.f32.mrf.mxu3  ;;  %v5662_v13 = vld [vmem:[%s8698_s5 + $0x88] sm:$0xff] }
 0x5a3   : > { %v4051_v6 = vmax.f32 %v3690_v38, %v4034_v1  ;;  %v4052_v31 = vmax.f32 %v3691_v15, %v4035_v46  ;;  %v4092_v39 = vpack.c.bf16 %v4084_v32, %v4084_v32  ;;  %v3884_v38 = vadd.f32 %v8456_v3, %v3779_v24 }
 0x5a4   : > { %4345 = vmatpush.bf16.msrb.mxu2 %v5663_v33  ;;  %4431 = vmatpush.bf16.msrb.mxu3 %v5672_v0  ;;  %v3694_v3 = vadd.f32 %v8423_v34, %v8357_v5 }
 0x5a5   : > { %v4066_v57 = vmax.f32 %v4051_v6, %v4052_v31  ;;  %v4203_v53 = vunpack.c.l.b16 %v4092_v39  ;;  %v5670_v39 = vld [vmem:[%s8698_s5 + $0xc8] sm:$0xff] }
 0x5a6   : > { %v3908_v51 = vpop.f32.mrf.mxu0  ;;  %v3937_v50 = vpop.f32.mrf.mxu1 }
 0x5a7   : > { %v4077_v30 = vadd.f32 %v8579_v29, %v4066_v57  ;;  %v3956_v60 = vadd.f32 %v3908_v51, %v8472_v44  ;;  %v3957_v47 = vadd.f32 %v3937_v50, %v8474_v17  ;;  %v5671_v51 = vld [vmem:[%s8698_s5 + $0xd0] sm:$0xff] }
 0x5a8   : > { %4346 = vmatpush.bf16.msrb.mxu2 %v5662_v13  ;;  %4432 = vmatpush.bf16.msrb.mxu3 %v5671_v51  ;;  %v9058_v51 = vld [vmem:[#allocation27_spill] sm:$0xff] }
 0x5a9   : > { %v4085_v11 = vmax.f32 %v4077_v30, 0.0  ;;  %v4036_v54 = vadd.f32 %v3988_v52, %v3956_v60  ;;  %v4037_v61 = vadd.f32 %v4017_v10, %v3957_v47  ;;  %v5661_v52 = vld [vmem:[%s8698_s5 + $0x80] sm:$0xff]  ;;  %v3993_v46 = vpop.f32.mrf.mxu2  ;;  %v4022_v8 = vpop.f32.mrf.mxu3 }
 0x5ab   : > { %v4093_v56 = vpack.c.bf16 %v4085_v11, %v4085_v11  ;;  %v4053_v44 = vmax.f32 %v8416_v63, %v4036_v54  ;;  %v4054_v17 = vmax.f32 %v8419_v21, %v4037_v61 }
 0x5ac   : > { %4347 = vmatpush.bf16.msrb.mxu2 %v5661_v52  ;;  %4433 = vmatpush.bf16.msrb.mxu3 %v5670_v39 }
 0x5ad   : > { %v4204_v48 = vunpack.c.l.b16 %v4093_v56  ;;  %v4067_v15 = vmax.f32 %v4053_v44, %v4054_v17  ;;  %v5669_v56 = vld [vmem:[%s8698_s5 + $0xc0] sm:$0xff] }
 0x5ae   : > { %v3910_v10 = vpop.f32.mrf.mxu0  ;;  %v3939_v63 = vpop.f32.mrf.mxu1 }
 0x5af   : > { %v3958_v59 = vadd.f32 %v3910_v10, %v3884_v38  ;;  %v3959_v21 = vadd.f32 %v3939_v63, %v3885_v55  ;;  %v4205_v1 = vpack.c.b16 %v4204_v48, %v4203_v53  ;;  %v4078_v45 = vadd.f32 %v8579_v29, %v4067_v15 }
 0x5b0   : > { %4434 = vmatpush.bf16.msrb.mxu3 %v5669_v56  ;;  %v5677_v56 = vld [vmem:[%s8700_s7] sm:$0xff] }
 0x5b1   : > { %v4038_v6 = vadd.f32 %v3990_v27, %v3958_v59  ;;  %v4039_v31 = vadd.f32 %v4019_v4, %v3959_v21  ;;  %4263 = vmatmul.bf16.vlgmr.msrb.gmra.mxu1 %v4205_v1  ;;  %v4086_v26 = vmax.f32 %v4078_v45, 0.0  ;;  %v3784_v27 = vadd.f32 %v8502_v9, %v8403_v43  ;;  %v3995_v11 = vpop.f32.mrf.mxu2  ;;  %v4024_v54 = vpop.f32.mrf.mxu3 }
 0x5b3   : > { %v4055_v32 = vmax.f32 %v3694_v3, %v4038_v6  ;;  %v4056_v57 = vmax.f32 %v8430_v12, %v4039_v31  ;;  %v3813_v12 = vadd.f32 %v8504_v16, %v8405_v62  ;;  %v4094_v4 = vpack.c.bf16 %v4086_v26, %v4086_v26 }
 0x5b4   : > { %v3888_v43 = vadd.f32 %v8476_v40, %v3784_v27 }
 0x5b5   : > { %v4068_v33 = vmax.f32 %v4055_v32, %v4056_v57  ;;  %v4135_v9 = vunpack.c.l.b16 %v4094_v4  ;;  %v3889_v13 = vadd.f32 %v8478_v23, %v3813_v12 }
 0x5b6   : > { %v3913_v50 = vpop.f32.mrf.mxu0  ;;  %v3942_v30 = vpop.f32.mrf.mxu1 }
 0x5b7   : > { %v4079_v5 = vadd.f32 %v8579_v29, %v4068_v33  ;;  %v3960_v34 = vadd.f32 %v3913_v50, %v8495_v22  ;;  %v3961_v60 = vadd.f32 %v3942_v30, %v8497_v28 }
 0x5b9   : > { %v4087_v47 = vmax.f32 %v4079_v5, 0.0  ;;  %v4040_v24 = vadd.f32 %v3993_v46, %v3960_v34  ;;  %v4041_v2 = vadd.f32 %v4022_v8, %v3961_v60  ;;  %v3998_v23 = vpop.f32.mrf.mxu2  ;;  %v4027_v0 = vpop.f32.mrf.mxu3  ;;  %v3789_v46 = vadd.f32 %v8543_v58, %v8425_v14 }
 0x5bb   : > { %v4095_v22 = vpack.c.bf16 %v4087_v47, %v4087_v47  ;;  %v4057_v28 = vmax.f32 %v8432_v7, %v4040_v24  ;;  %v4058_v61 = vmax.f32 %v8434_v37, %v4041_v2  ;;  %v3892_v26 = vadd.f32 %v8506_v49, %v3789_v46  ;;  %v9060_v49 = vld [vmem:[#allocation29_spill] sm:$0xff] }
 0x5bd   : > { %v4136_v62 = vunpack.c.l.b16 %v4095_v22  ;;  %v4069_v16 = vmax.f32 %v4057_v28, %v4058_v61 }
 0x5be   : > { %v3915_v44 = vpop.f32.mrf.mxu0  ;;  %v3944_v17 = vpop.f32.mrf.mxu1 }
 0x5bf   : > { %v3962_v38 = vadd.f32 %v3915_v44, %v3888_v43  ;;  %v3963_v53 = vadd.f32 %v3944_v17, %v3889_v13  ;;  %v4137_v48 = vpack.c.b16 %v4136_v62, %v4135_v9  ;;  %v4080_v7 = vadd.f32 %v8579_v29, %v4069_v16  ;;  %v4458_v43 = vld [vmem:[%s8700_s7 + $0x18] sm:$0x1]  ;;  %v5678_v13 = vld [vmem:[%s8700_s7 + $0x8] sm:$0xff] }
 0x5c0   : > { %v4476_v9 = vunpack.c.l.b16 %v4458_v43 }
 0x5c1   : > { %v4042_v37 = vadd.f32 %v3995_v11, %v3962_v38  ;;  %v4043_v15 = vadd.f32 %v4024_v54, %v3963_v53  ;;  %4195 = vmatmul.bf16.vlgmr.msrb.gmra.mxu0 %v4137_v48  ;;  %v4088_v52 = vmax.f32 %v4080_v7, 0.0  ;;  %v4000_v5 = vpop.f32.mrf.mxu2  ;;  %v4029_v34 = vpop.f32.mrf.mxu3 }
 0x5c2   : > { %v4480_v62 = vpack.c.b16 %v4476_v9, %v4476_v9 }
 0x5c3   : > { %v4059_v40 = vmax.f32 %v8438_v25, %v4042_v37  ;;  %v4060_v55 = vmax.f32 %v8440_v18, %v4043_v15  ;;  %v3818_v25 = vadd.f32 %v8545_v42, %v8427_v35  ;;  %v4096_v8 = vpack.c.bf16 %v4088_v52, %v4088_v52 }
 0x5c4   : > { %v4490_v16 = vsel %vm4488_vm2, %v4480_v62, 0 }
 0x5c5   : > { %v4070_v10 = vmax.f32 %v4059_v40, %v4060_v55  ;;  %v3893_v50 = vadd.f32 %v9058_v51, %v3818_v25  ;;  %4496 = vmatpush.bf16.msra.mxu0 %v4490_v16  ;;  %v5692_v25 = vld [vmem:[%s8701_s8] ss:$0 sm:$0xff] }
 0x5c6   : > { %v3918_v63 = vpop.f32.mrf.mxu0  ;;  %v3947_v59 = vpop.f32.mrf.mxu1 }
 0x5c7   : > { %v4081_v21 = vadd.f32 %v8579_v29, %v4070_v10  ;;  %v3964_v1 = vadd.f32 %v3918_v63, %v8530_v41  ;;  %v3965_v3 = vadd.f32 %v3947_v59, %v8532_v20  ;;  %v4288_v41 = vunpack.c.l.b16 %v4096_v8 }
 0x5c9   : > { %v4089_v18 = vmax.f32 %v4081_v21, 0.0  ;;  %v4044_v45 = vadd.f32 %v3998_v23, %v3964_v1  ;;  %v4045_v6 = vadd.f32 %v4027_v0, %v3965_v3  ;;  %v5691_v0 = vld [vmem:[%s8699_s6] ss:$0 sm:$0xff] }
 0x5cb   : > { %v4097_v31 = vpack.c.bf16 %v4089_v18, %v4089_v18  ;;  %v4061_v32 = vmax.f32 %v8446_v36, %v4044_v45  ;;  %v4062_v57 = vmax.f32 %v8448_v19, %v4045_v6  ;;  %v9059_v19 = vld [vmem:[#allocation33_spill] sm:$0xff] }
 0x5cd   : > { %v4289_v33 = vunpack.c.l.b16 %v4097_v31  ;;  %v4071_v20 = vmax.f32 %v4061_v32, %v4062_v57 }
 0x5ce   : > { %v3920_v14 = vpop.f32.mrf.mxu0  ;;  %v3949_v58 = vpop.f32.mrf.mxu1 }
 0x5cf   : > { %v3966_v30 = vadd.f32 %v3920_v14, %v3892_v26  ;;  %v3967_v35 = vadd.f32 %v3949_v58, %v3893_v50  ;;  %v4290_v42 = vpack.c.b16 %v4289_v33, %v4288_v41  ;;  %v4082_v60 = vadd.f32 %v8579_v29, %v4071_v20 }
 0x5d1   : > { %v4046_v27 = vadd.f32 %v4000_v5, %v3966_v30  ;;  %v4047_v36 = vadd.f32 %v4029_v34, %v3967_v35  ;;  %4348 = vmatmul.bf16.vlgmr.msrb.gmra.mxu2 %v4290_v42  ;;  %v4090_v47 = vmax.f32 %v4082_v60, 0.0 }
 0x5d3   : > { %v4063_v12 = vmax.f32 %v9059_v19, %v4046_v27  ;;  %v4064_v4 = vmax.f32 %v9060_v49, %v4047_v36  ;;  %v4098_v39 = vpack.c.bf16 %v4090_v47, %v4090_v47 }
 0x5d5   : > { %v4072_v24 = vmax.f32 %v4063_v12, %v4064_v4  ;;  %v4375_v22 = vunpack.c.l.b16 %v4098_v39 }
 0x5d7   : > { %v4083_v2 = vadd.f32 %v8579_v29, %v4072_v24  ;;  %v5679_v29 = vld [vmem:[%s8700_s7 + $0x10] sm:$0xff] }
 0x5d8   : > { %4497 = vmatpush.bf16.msra.mxu0 %v5679_v29 }
 0x5d9   : > { %v4091_v11 = vmax.f32 %v4083_v2, 0.0 }
 0x5db   : > { %v4099_v54 = vpack.c.bf16 %v4091_v11, %v4091_v11 }
 0x5dc   : > { %4498 = vmatpush.bf16.msra.mxu0 %v5678_v13 }
 0x5dd   : > { %v4376_v28 = vunpack.c.l.b16 %v4099_v54 }
 0x5df   : > { %v4377_v61 = vpack.c.b16 %v4376_v28, %v4375_v22 }
 0x5e0   : > { %4499 = vmatpush.bf16.msra.mxu0 %v5677_v56 }
 0x5e1   : > { %4435 = vmatmul.bf16.vlgmr.msrb.gmra.mxu3 %v4377_v61 }
 0x62e   : > { %v4264_v17 = vpop.f32.mrf.mxu1 }
 0x636   : > { %v4266_v15 = vpop.f32.mrf.mxu1 }
 0x63e   : > { %v4196_v44 = vpop.f32.mrf.mxu0 }
 0x63f   : > { %v4265_v48 = vadd.f32 %v4264_v17, %v4196_v44 }
 0x646   : > { %v4198_v7 = vpop.f32.mrf.mxu0 }
 0x647   : > { %v4267_v55 = vadd.f32 %v4266_v15, %v4198_v7 }
 0x654   : > { %v4349_v38 = vpop.f32.mrf.mxu2 }
 0x655   : > { %v4354_v37 = vadd.f32 %v4349_v38, %v4265_v48 }
 0x65c   : > { %v4351_v40 = vpop.f32.mrf.mxu2 }
 0x65d   : > { %v4355_v52 = vadd.f32 %v4351_v40, %v4267_v55 }
 0x664   : > { %v4436_v53 = vpop.f32.mrf.mxu3 }
 0x665   : > { %v4441_v23 = vadd.f32 %v4436_v53, %v4354_v37 }
 0x667   : > { %v4447_v63 = vadd.f32 %v5691_v0, %v4441_v23 }
 0x669   : > { %v4449_v1 = vmax.f32 %v4447_v63, 0.0 }
 0x66c   : > { %v4438_v10 = vpop.f32.mrf.mxu3 }
 0x66d   : > { %v4442_v59 = vadd.f32 %v4438_v10, %v4355_v52 }
 0x66f   : > { %v4448_v21 = vadd.f32 %v5691_v0, %v4442_v59 }
 0x671   : > { %v4450_v3 = vmax.f32 %v4448_v21, 0.0 }
 0x673   : > { %v4451_v46 = vpack.c.bf16 %v4450_v3, %v4449_v1 }
 0x675   : > { %5542 = vmatmul.msk.bf16.vlgmr.msra.gmra.mxu0 %vm4484_vm3, %v4451_v46 }
 0x6f2   : > { %v4501_v8 = vpop.f32.mrf.mxu0 }
 0x6f3   : > { %v4502_v18 = vadd.f32 %v5692_v25, %v4501_v8 }
 0x6f5   : > { %4506 = vmax.xlane.f32.xlu0 %v4502_v18 }
 0x6fa   : > { %v4503_v45 = vpop.f32.mrf.mxu0 }
 0x6fb   : > { %v4504_v6 = vadd.f32 %v5692_v25, %v4503_v45 }
 0x6fd   : > { %4508 = vmax.xlane.f32.xlu0 %v4504_v6 }
 0x768   : > { %v4507_v31 = vpop.xlane.xlu0 %4506 }
 0x769   : > { %v4510_v32 = vsub.f32 %v4502_v18, %v4507_v31 }
 0x76b   : > { %v4512_v57 = vmul.f32 1.442695, %v4510_v32 }
 0x76d   : > { %5693 = vpow2.f32 %v4512_v57 }
 0x770   : > { %v4509_v26 = vpop.xlane.xlu0 %4508 }
 0x771   : > { %v4511_v41 = vsub.f32 %v4504_v6, %v4509_v26 }
 0x773   : > { %v5694_v33 = vpop.eup %5693  ;;  %v4514_v20 = vmul.f32 1.442695, %v4511_v41 }
 0x774   : > { %4516 = vadd.xlane.f32.xlu1 %v5694_v33 }
 0x775   : > { %5695 = vpow2.f32 %v4514_v20 }
 0x77b   : > { %v5696_v51 = vpop.eup %5695 }
 0x77c   : > { %4518 = vadd.xlane.f32.xlu1 %v5696_v51 }
 0x7e7   : > { %v4517_v50 = vpop.xlane.xlu1 %4516 }
 0x7e8   : > { %5697 = vlog2.f32 %v4517_v50 }
 0x7ee   : > { %v5698_v14 = vpop.eup %5697 }
 0x7ef   : > { %v4521_v58 = vmul.f32 0.6931472, %v5698_v14  ;;  %v4519_v30 = vpop.xlane.xlu1 %4518 }
 0x7f0   : > { %5699 = vlog2.f32 %v4519_v30 }
 0x7f1   : > { %v4524_v35 = vsub.f32 %v4510_v32, %v4521_v58 }
 0x7f3   : > { %4526 = vst [vmem:[%s332_s15] sm:$0xff] %v4524_v35 }
 0x7f6   : > { %v5700_v42 = vpop.eup %5699 }
 0x7f7   : > { %v4523_v5 = vmul.f32 0.6931472, %v5700_v42 }
 0x7f9   : > { %v4525_v34 = vsub.f32 %v4511_v41, %v4523_v5 }
 0x7fb   : > { %4527 = vst [vmem:[%s332_s15 + $0x8] sm:$0xff] %v4525_v34 }
 0x7fc PF: > { %s19_s30 = sadd.s32 1, %s5708_s30  }
 0x7fd   : > { %p16_p5 = scmp.ge.s32.totalorder %s19_s30, 4  }
 0x7ff   :  { %18 = sbr.rel (!%p16_p5) target bundleno = 1 (0x1), region = 100 }

</bundles_post_ra>
